<compile_context>
chip_gen: v5e
topology: v5e:2x2
jax: 0.10.0
libtpu: 0.0.40
codegen_flags: <defaults>
</compile_context>

<pallas_src>
import jax
import jax.numpy as jnp
from jax.experimental import pallas as pl
from jax.experimental.pallas import tpu as pltpu


def add_pe_kernel(x_ref, pe_ref, o_ref):
    # x_ref / o_ref blocks: (TB, TS, E); pe_ref block: (1, TS, E).
    # Broadcast-add over the folded batch dim; single VPU add per vreg.
    o_ref[...] = (x_ref[...] + pe_ref[...]).astype(o_ref.dtype)


_SEQ_TILE_CANDIDATES = (2048, 1024, 512, 256, 128, 64, 32, 16, 8)


def _pick_tiles(B, S, E, itemsize, vmem_budget_bytes=12 << 20):
    """Pick (batch_tile, seq_tile).

    Peak pipelined VMEM ~= 2 buffers * (x_block + out_block + pe_block)
                         = 2 * (2*TB + 1) * TS * E * itemsize.
    Kept under ~12 MiB so it fits v5e's 16 MiB default scoped VMEM (and is far
    below v6e's 128 MiB / v7x's 64 MiB) without any vmem_limit override.
    """
    def footprint(tb, ts):
        return 2 * (2 * tb + 1) * ts * E * itemsize

    if S < 8:
        # Tiny sequence: block must cover the full (non-8-aligned) dim.
        return (B if footprint(B, S) <= vmem_budget_bytes else 1), S

    for tb in (B, 1):                       # prefer folding the whole batch
        for ts in _SEQ_TILE_CANDIDATES:
            if ts > S:                      # no tile larger than the seq length
                continue
            if footprint(tb, ts) <= vmem_budget_bytes:
                return tb, ts
    return 1, 8                             # last-resort minimal tile


def learned_positional_encoding(x, position_embeddings, *, batch_tile=None,
                                seq_tile=None, in_place=False):
    """x: (B, S, E); position_embeddings: (1, S, E) -> (B, S, E) = x + PE."""
    B, S, E = x.shape
    assert position_embeddings.shape == (1, S, E), (
        f"position_embeddings must be (1, {S}, {E}), got {position_embeddings.shape}")

    # Keep the add (and all HBM traffic) in x's dtype: cast the parameter once here.
    pe = position_embeddings.astype(x.dtype)

    itemsize = jnp.dtype(x.dtype).itemsize
    tb_auto, ts_auto = _pick_tiles(B, S, E, itemsize)
    tb = batch_tile if batch_tile is not None else tb_auto
    ts = seq_tile if seq_tile is not None else ts_auto

    # Seq tiles outermost; batch tiles innermost so the PE block index is constant
    # across consecutive steps and its DMA is not re-issued per batch tile.
    grid = (pl.cdiv(S, ts), pl.cdiv(B, tb))

    extra_kwargs = {}
    if in_place:
        # Caller doesn't need x afterwards: reuse its HBM buffer for the output.
        extra_kwargs["input_output_aliases"] = {0: 0}

    return pl.pallas_call(
        add_pe_kernel,
        out_shape=jax.ShapeDtypeStruct(x.shape, x.dtype),
        grid_spec=pltpu.PrefetchScalarGridSpec(
            num_scalar_prefetch=0,
            grid=grid,
            in_specs=[
                # x: (tb, ts, E) tiles; full lane-dense embedding dim.
                pl.BlockSpec((tb, ts, E), lambda s, b: (b, s, 0)),
                # PE: one (1, ts, E) tile per seq tile, shared by every batch tile.
                pl.BlockSpec((1, ts, E), lambda s, b: (0, s, 0)),
            ],
            out_specs=pl.BlockSpec((tb, ts, E), lambda s, b: (b, s, 0)),
        ),
        compiler_params=pltpu.CompilerParams(
            dimension_semantics=("parallel", "parallel")),
        **extra_kwargs,
    )(x, pe)


def learned_positional_encoding_ref(x, position_embeddings):
    """Pure-JAX reference mirroring the PyTorch forward."""
    return x + position_embeddings.astype(x.dtype)


if __name__ == "__main__":
    key = jax.random.PRNGKey(0)

    # The module hard-codes position_embeddings of shape (1, 1728, 512), so x is
    # (B, 1728, 512).  B=2 keeps the test small (~7 MiB of f32).
    B, S, E = 2, 1728, 512

    k1, k2 = jax.random.split(key, 2)
    x = jax.random.normal(k1, (B, S, E), jnp.float32)
    # nn.Parameter(torch.zeros(...)) initializes to zero; use random values here
    # so the test actually exercises the add.
    position_embeddings = jax.random.normal(k2, (1, S, E), jnp.float32) * 0.02

    out = learned_positional_encoding(x, position_embeddings)
    jax.block_until_ready(out)

    ref = learned_positional_encoding_ref(x, position_embeddings)
    assert out.shape == ref.shape and out.dtype == ref.dtype
    max_err = float(jnp.max(jnp.abs(out - ref)))
    assert jnp.allclose(out, ref, atol=1e-6, rtol=1e-6), f"max_err={max_err}"
    print("KERNEL_OK")
</pallas_src>

<mosaic_0001>
module attributes {stable_mosaic.version = 11 : i64} {
  func.func @add_pe_kernel(%arg0: i32, %arg1: i32, %arg2: memref<2x512x512xf32, #tpu.memory_space<vmem>>, %arg3: memref<1x512x512xf32, #tpu.memory_space<vmem>>, %arg4: memref<2x512x512xf32, #tpu.memory_space<vmem>>) attributes {dimension_semantics = [#tpu.dimension_semantics<parallel>, #tpu.dimension_semantics<parallel>], iteration_bounds = array<i64: 4, 1>, scalar_prefetch = 0 : i64, scratch_operands = 0 : i64, tpu.core_type = #tpu.core_type<tc>, window_params = [{transform_indices = @transform_0, window_bounds = array<i64: 2, 512, 512>}, {transform_indices = @transform_1, window_bounds = array<i64: 1, 512, 512>}, {transform_indices = @transform_2, window_bounds = array<i64: 2, 512, 512>}]} {
    %c0 = arith.constant 0 : index
    %c0_0 = arith.constant 0 : index
    %c0_1 = arith.constant 0 : index
    %0 = vector.load %arg2[%c0, %c0_0, %c0_1] : memref<2x512x512xf32, #tpu.memory_space<vmem>>, vector<2x512x512xf32>
    %c0_2 = arith.constant 0 : index
    %c0_3 = arith.constant 0 : index
    %c0_4 = arith.constant 0 : index
    %1 = vector.load %arg3[%c0_2, %c0_3, %c0_4] : memref<1x512x512xf32, #tpu.memory_space<vmem>>, vector<1x512x512xf32>
    %2 = vector.broadcast %1 : vector<1x512x512xf32> to vector<2x512x512xf32>
    %3 = arith.addf %0, %2 : vector<2x512x512xf32>
    %c0_5 = arith.constant 0 : index
    %c0_6 = arith.constant 0 : index
    %c0_7 = arith.constant 0 : index
    %4 = vector.load %arg4[%c0_5, %c0_6, %c0_7] : memref<2x512x512xf32, #tpu.memory_space<vmem>>, vector<2x512x512xf32>
    tpu.vector_store %arg4[%c0_5, %c0_6, %c0_7], %3 {strides = array<i32>} : memref<2x512x512xf32, #tpu.memory_space<vmem>>, vector<2x512x512xf32>,
    return
  }
  func.func @transform_0(%arg0: i32, %arg1: i32) -> (i32, i32, i32) {
    %c0_i32 = arith.constant 0 : i32
    %c0_i32_0 = arith.constant 0 : i32
    return %arg1, %arg0, %c0_i32 : i32, i32, i32
  }
  func.func @transform_1(%arg0: i32, %arg1: i32) -> (i32, i32, i32) {
    %c0_i32 = arith.constant 0 : i32
    %c0_i32_0 = arith.constant 0 : i32
    %c0_i32_1 = arith.constant 0 : i32
    return %c0_i32, %arg0, %c0_i32_0 : i32, i32, i32
  }
  func.func @transform_2(%arg0: i32, %arg1: i32) -> (i32, i32, i32) {
    %c0_i32 = arith.constant 0 : i32
    %c0_i32_0 = arith.constant 0 : i32
    return %arg1, %arg0, %c0_i32 : i32, i32, i32
  }
}

</mosaic_0001>

<bundles_post_ra>
// kernel: tpu_custom_call.1
= control target key start
LH: loop header
LB: loop body
LE: loop exit
PB: predicated region body
PF: predicated region fallthrough
CT: control target
= control target key end

     0   :  { %7 = vsyncpa [#allocation3], 0  ;;  %s4485_s0 = inlined_call_operand.hbm [shape: f32[2,1728,512], index: 0, kind: input, shape index: {}]   ;;  %s4486_s1 = inlined_call_operand.hbm [shape: f32[1,1728,512], index: 1, kind: input, shape index: {}]   ;;  %s4487_s2 = inlined_call_operand.hbm [shape: f32[2,1728,512], index: 2, kind: output, shape index: {}]  }
   0x1   :  { %9 = vsyncpa [#allocation3 + $0x1], 0 }
   0x2   :  { %10 = vsyncpa [#allocation6], 0 }
   0x3   :  { %12 = vsyncpa [#allocation6 + $0x1], 0 }
   0x4   :  { %13 = vsyncpa [#allocation4], 0 }
   0x5   :  { %15 = vsyncpa [#allocation4 + $0x1], 0  ;;  %s2750_s9 = smov 0   ;;  %s2752_s10 = smov 0  }
   0x6   :  { %s2754_s11 = smov 0   ;;  %s2756_s12 = smov 0  }
   0x7   :  { %s2758_s13 = smov 0   ;;  %s2760_s14 = smov 0  }
   0x8 LB: > { %s2243_s15 = sadd.s32 4294967295, %s2719_s14   ;;  %s2244_s16 = sadd.s32 4294967294, %s2719_s14   ;;  %s2719_s14 = sphi %s2760_s14, %s21_s14   ;;  %s2715_s13 = sphi %s2758_s13, %s4502_s13   ;;  %s2711_s12 = sphi %s2756_s12, %s4501_s12   ;;  %s2707_s11 = sphi %s2754_s11, %s4500_s11   ;;  %s2703_s10 = sphi %s2752_s10, %s4499_s10   ;;  %s2699_s9 = sphi %s2750_s9, %s4498_s9  }
   0x9   : > { %s33_s17 = sadd.s32 1, %s2715_s13  ;;  %s42_s18 = sadd.s32 1, %s2707_s11 }
   0xa   : > { %p35_p0 = scmp.ge.s32.totalorder %s33_s17, 4  ;;  %p49_p1 = scmp.ne.s32.totalorder %s2707_s11, %s2703_s10 }
   0xb   : > { %p50_p2 = scmp.eq.s32.totalorder %s2719_s14, 0  ;;  %p55_p3 = scmp.ne.s32.totalorder %s2703_s10, %s2699_s9 }
   0xc   : > { %s4504_s17 = smov (%p35_p0, %s33_s17), 0  ;;  %p56_p5 = scmp.eq.s32.totalorder %s2243_s15, 0 }
   0xd   : > { %4489 = sst [smem:[#allocation15_spill]] %s4504_s17  ;;  %p2791_p4 = por %p50_p2, %p49_p1 }
   0xe   : > { %s38_s20 = ssub.s32 %s2715_s13, %s4504_s17  ;;  %p107_p6 = scmp.eq.s32.totalorder %s2243_s15, 3 }
   0xf   : > { %p40_p7 = scmp.eq.s32.totalorder %s38_s20, 0  ;;  %p2797_p8 = por %p56_p5, %p55_p3 }
  0x10   : > { %p2801_p9 = por %p107_p6, %p49_p1  ;;  %p113_p10 = scmp.eq.s32.totalorder %s2244_s16, 3 }
  0x11   : > { %s2806_s23 = scalar_select %p40_p7, %s2707_s11, %s42_s18  }
  0x12   : > { %p2808_p11 = por %p113_p10, %p55_p3  ;;  %p2246_p12 = scmp.ge.s32.totalorder %s2719_s14, 4 }
  0x14   : > { %129 = sbr.rel (%p2246_p12) target bundleno = 85 (0x55), region = 16 }
  0x19   : > { %132 = sbr.rel (!%p2791_p4) target bundleno = 49 (0x31), region = 20 }
  0x1e   : > { %s133_s25 = sand.u32 1, %s2707_s11   ;;  %s2248_s26 = sshll.u32 %s2715_s13, 6 }
  0x1f   : > { %s2247_s27 = sshll.u32 %s133_s25, 12  ;;  %s140_s28 = ssub.s32 216, %s2248_s26 }
  0x20   : > { %p141_p13 = scmp.lt.s32.totalorder %s140_s28, 64  ;;  %s2820_s4 = scalar_lea.sflag [#allocation3], %s133_s25 }
  0x21   : > { %s137_s5 = scalar_lea.vmem [#allocation2], %s2247_s27 }
  0x22   : > { %s4506_s28 = smov (!%p141_p13, %s140_s28), 64 }
  0x23   : > { %s2284_s29 = sshll.u32 %s4506_s28, 6 }
  0x24   : > { %s145_s30 = ssub.s32 4096, %s2284_s29 }
  0x25   : > { %s146_s3 = sshll.u32 %s145_s30, 4 }
  0x26   : > { %147 = vsyncadd %s2820_s4, %s146_s3  ;;  %p2823_p0 = scmp.ne.s32.totalorder %s2284_s29, 0  ;;  %s2286_s7 = sshll.u32 %s2715_s13, 11 }
  0x27   : > { %s153_s16 = scalar_lea.hbm %s4485_s0, %s2286_s7  ;;  %s160_s18 = sld [smem:[#allocation0]]  }
  0x28   : > { %s168_s20 = sshll.u32 %s153_s16, 4  ;;  %s170_s26 = sshll.u32 %s137_s5, 4  ;;  %s169_s20 = int_to_ptr.hbm [resolvable:$true] %s168_s20  ;;  %s171_s26 = int_to_ptr.vmem [resolvable:$true] %s170_s26 }
  0x29   : > { %s2288_s25 = sshll.u32 %s4506_s28, 10  ;;  %s2721_s27 = smov 110592  }
  0x2a   : > { %177 = sst [smem:[#allocation9]] %s2721_s27  ;;  %s2722_s30 = smov 32768  }
  0x2b   : > { %179 = sst [smem:[#allocation9 + $0x1]] %s2722_s30  ;;  %s2723_s17 = smov 512  }
  0x2c   : > { %181 = sst [smem:[#allocation9 + $0x2]] %s4506_s28  ;;  %s2724_s8 = smov 32  }
  0x2d   : > { %s2256_s29 = sshll.u32 %s160_s18, 26  ;;  %183 = sst [smem:[#allocation9 + $0x3]] %s2723_s17 }
  0x2e   : > { %s2257_s3 = sadd.s32 134217728, %s2256_s29  ;;  %185 = sst [smem:[#allocation9 + $0x4]] %s2723_s17 }
  0x2f   : > { %187 = sst [smem:[#allocation9 + $0x5]] %s2724_s8  ;;  %s2725_s7 = smov [#allocation8]  }
  0x30   : > { %189 = dma.general (%p2823_p0), %s169_s20, %s2288_s25, %s171_s26, %s2820_s4, %s2725_s7, [#allocation9], %s2257_s3, 0  }
  0x31 PF: > { %192 = sbr.rel (!%p2791_p4) target bundleno = 85 (0x55), region = 24  ;;  %s193_s5 = sand.u32 (%p2791_p4), 1, %s2707_s11  }
  0x32   : > { %s2260_s15 = sshll.u32 (%p2791_p4), %s2715_s13, 6  ;;  %s2259_s16 = sshll.u32 (%p2791_p4), %s193_s5, 11 }
  0x33   : > { %s199_s18 = ssub.s32 (%p2791_p4), 216, %s2260_s15  ;;  %s2843_s30 = scalar_lea.sflag (%p2791_p4), [#allocation6], %s193_s5 }
  0x34   : > { %p200_p1 = scmp.lt.s32.totalorder (%p2791_p4), %s199_s18, 64  ;;  %s197_s4 = scalar_lea.vmem (%p2791_p4), [#allocation5], %s2259_s16 }
  0x36   : > { %s4508_s18 = smov (!%p200_p1, %s199_s18), 64 }
  0x37   : > { %s2289_s17 = sshll.u32 %s4508_s18, 5 }
  0x38   : > { %s204_s28 = ssub.s32 2048, %s2289_s17 }
  0x39   : > { %s205_s27 = sshll.u32 %s204_s28, 4 }
  0x3a   : > { %206 = vsyncadd %s2843_s30, %s205_s27  ;;  %p2846_p2 = scmp.ne.s32.totalorder %s2289_s17, 0  ;;  %s2291_s6 = sshll.u32 %s2715_s13, 11 }
  0x3b   : > { %s210_s25 = scalar_lea.hbm %s4486_s1, %s2291_s6  ;;  %s2854_s29 = sshll.u32 %s197_s4, 4  ;;  %s215_s29 = int_to_ptr.vmem [resolvable:$true] %s2854_s29 }
  0x3c   : > { %s212_s3 = sshll.u32 %s210_s25, 4  ;;  %s2267_s8 = sshll.u32 %s4508_s18, 9  ;;  %s2857_s3 = int_to_ptr.hbm [resolvable:$true] %s212_s3 }
  0x3d   : > { %s2622_s7 = sshra.s32 %s2857_s3, 4  ;;  %s2624_s5 = sshrl.u32 %s2267_s8, 4  ;;  %s2623_s7 = int_to_ptr.hbm [resolvable:$true] %s2622_s7 }
  0x3e   : > { %s2629_s15 = scalar_lea.hbm %s2623_s7, %s2624_s5  ;;  %s2633_s28 = scalar_lea.hbm %s4486_s1, 6912 }
  0x3f   : > { %p2630_p3 = scmp.ne.s32.totalorder %s2623_s7, %s2629_s15  ;;  %p2635_p6 = scmp.lt.s32.totalorder %s2633_s28, %s2629_s15 }
  0x41   : > { %p2631_p4 = pnand %p2630_p3, %p2846_p2 }
  0x43   : > { %p2632_p5 = pneg %p2631_p4 }
  0x45   : > { %p2637_p7 = pnand %p2635_p6, %p2632_p5 }
  0x47   : > { %2640 = shalt.err (!%p2637_p7)
}
  0x48   : > { %s2641_s27 = sshra.s32 %s215_s29, 4  ;;  %s2726_s6 = smov [#allocation5]   ;;  %s2642_s27 = int_to_ptr.vmem [resolvable:$true] %s2641_s27 }
  0x49   : > { %s2648_s4 = scalar_lea.vmem %s2642_s27, %s2624_s5  ;;  %s2652_s20 = scalar_lea.vmem %s2726_s6, 4096 }
  0x4a   : > { %p2649_p10 = scmp.ne.s32.totalorder %s2642_s27, %s2648_s4  ;;  %p2654_p0 = scmp.lt.s32.totalorder %s2652_s20, %s2648_s4 }
  0x4c   : > { %p2650_p12 = pnand %p2649_p10, %p2846_p2 }
  0x4e   : > { %p2651_p13 = pneg %p2650_p12 }
  0x50   : > { %p2656_p1 = pnand %p2654_p0, %p2651_p13 }
  0x52   : > { %2659 = shalt.err (!%p2656_p1)
}
  0x53   : > { %s2727_s26 = smov 512   ;;  %s2728_s25 = smov 32  }
  0x54   : > { %220 = dma.hbm_to_vmem [thread:$0]  (%p2846_p2), %s2857_s3, %s2267_s8, %s215_s29, %s2843_s30, %s2727_s26, %s2727_s26, %s2728_s25  }
  0x55 PF: > { %p2268_p3 = scmp.ge.s32.totalorder %s2719_s14, 1  ;;  %p222_p4 = scmp.lt.s32.totalorder %s2719_s14, 5 }
  0x57   : > { %p223_p5 = pnand %p2268_p3, %p222_p4 }
  0x58   : > { %s2883_s7 = sand.u32 (!%p223_p5), 1, %s2703_s10  }
  0x59   : > { %226 = sbr.rel (%p223_p5) target bundleno = 633 (0x279), region = 28  ;;  %s2269_s5 = sshll.u32 (!%p223_p5), %s2883_s7, 12 }
  0x5a   : > { %s229_s15 = scalar_lea.sflag (!%p223_p5), [#allocation3], %s2883_s7  ;;  %s2887_s19 = scalar_lea.vmem (!%p223_p5), [#allocation2], %s2269_s5 }
  0x5e   : > { %2686 = dma.done.wait (%p2797_p8), %s229_s15, 65536  }
  0x5f   : > { %2688 = vsyncadd (%p2797_p8), %s229_s15, 4294901760  ;;  %s2270_s18 = sshll.u32 %s2883_s7, 11  ;;  %s239_s30 = scalar_lea.sflag [#allocation6], %s2883_s7 }
  0x60   : > { %s2895_s29 = scalar_lea.vmem [#allocation5], %s2270_s18 }
  0x61   : > { %2690 = dma.done.wait (%p2797_p8), %s239_s30, 32768  }
  0x62   : > { %2692 = vsyncadd (%p2797_p8), %s239_s30, 4294934528  ;;  %v289_v0 = vld [vmem:[%s2887_s19] sm:$0xff]  ;;  %v290_v2 = vld [vmem:[%s2887_s19 + $0x8] sm:$0xff]  ;;  %s2910_s21 = scalar_lea.vmem [#allocation7], %s2269_s5  ;;  %s2082_s3 = scalar_lea.sflag [#allocation4], %s2883_s7 }
  0x63   : > { %v801_v1 = vld [vmem:[%s2895_s29] sm:$0xff]  ;;  %v802_v4 = vld [vmem:[%s2895_s29 + $0x8] sm:$0xff]  ;;  %v291_v5 = vld [vmem:[%s2887_s19 + $0x10] sm:$0xff] }
  0x64   : > { %v1057_v3 = vadd.f32 %v801_v1, %v289_v0  ;;  %v803_v6 = vld [vmem:[%s2895_s29 + $0x10] sm:$0xff]  ;;  %v1058_v7 = vadd.f32 %v802_v4, %v290_v2  ;;  %v292_v9 = vld [vmem:[%s2887_s19 + $0x18] sm:$0xff]  ;;  %v293_v11 = vld [vmem:[%s2887_s19 + $0x20] sm:$0xff] }
  0x65   : > { %v1059_v8 = vadd.f32 %v803_v6, %v291_v5  ;;  %v804_v10 = vld [vmem:[%s2895_s29 + $0x18] sm:$0xff]  ;;  %v805_v13 = vld [vmem:[%s2895_s29 + $0x20] sm:$0xff]  ;;  %v294_v14 = vld [vmem:[%s2887_s19 + $0x28] sm:$0xff] }
  0x66   : > { %1569 = vst [vmem:[%s2910_s21] sm:$0xff] %v1057_v3  ;;  %v1060_v12 = vadd.f32 %v804_v10, %v292_v9  ;;  %v806_v15 = vld [vmem:[%s2895_s29 + $0x28] sm:$0xff]  ;;  %v1061_v16 = vadd.f32 %v805_v13, %v293_v11  ;;  %v295_v18 = vld [vmem:[%s2887_s19 + $0x30] sm:$0xff]  ;;  %v296_v20 = vld [vmem:[%s2887_s19 + $0x38] sm:$0xff] }
  0x67   : > { %1570 = vst [vmem:[%s2910_s21 + $0x8] sm:$0xff] %v1058_v7  ;;  %v1062_v17 = vadd.f32 %v806_v15, %v294_v14  ;;  %v807_v19 = vld [vmem:[%s2895_s29 + $0x30] sm:$0xff]  ;;  %v808_v22 = vld [vmem:[%s2895_s29 + $0x38] sm:$0xff]  ;;  %v297_v23 = vld [vmem:[%s2887_s19 + $0x40] sm:$0xff] }
  0x68   : > { %1571 = vst [vmem:[%s2910_s21 + $0x10] sm:$0xff] %v1059_v8  ;;  %v1063_v21 = vadd.f32 %v807_v19, %v295_v18  ;;  %v809_v24 = vld [vmem:[%s2895_s29 + $0x40] sm:$0xff]  ;;  %v1064_v25 = vadd.f32 %v808_v22, %v296_v20  ;;  %v298_v26 = vld [vmem:[%s2887_s19 + $0x48] sm:$0xff]  ;;  %v299_v28 = vld [vmem:[%s2887_s19 + $0x50] sm:$0xff] }
  0x69   : > { %1572 = vst [vmem:[%s2910_s21 + $0x18] sm:$0xff] %v1060_v12  ;;  %v810_v27 = vld [vmem:[%s2895_s29 + $0x48] sm:$0xff]  ;;  %v1065_v29 = vadd.f32 %v809_v24, %v297_v23  ;;  %v811_v30 = vld [vmem:[%s2895_s29 + $0x50] sm:$0xff]  ;;  %v300_v31 = vld [vmem:[%s2887_s19 + $0x58] sm:$0xff] }
  0x6a   : > { %1573 = vst [vmem:[%s2910_s21 + $0x20] sm:$0xff] %v1061_v16  ;;  %v812_v32 = vld [vmem:[%s2895_s29 + $0x58] sm:$0xff]  ;;  %v1066_v33 = vadd.f32 %v810_v27, %v298_v26  ;;  %v301_v34 = vld [vmem:[%s2887_s19 + $0x60] sm:$0xff]  ;;  %v1067_v36 = vadd.f32 %v811_v30, %v299_v28  ;;  %v302_v37 = vld [vmem:[%s2887_s19 + $0x68] sm:$0xff] }
  0x6b   : > { %1574 = vst [vmem:[%s2910_s21 + $0x28] sm:$0xff] %v1062_v17  ;;  %v813_v35 = vld [vmem:[%s2895_s29 + $0x60] sm:$0xff]  ;;  %v814_v38 = vld [vmem:[%s2895_s29 + $0x68] sm:$0xff]  ;;  %v1068_v39 = vadd.f32 %v812_v32, %v300_v31  ;;  %v303_v40 = vld [vmem:[%s2887_s19 + $0x70] sm:$0xff] }
  0x6c   : > { %1575 = vst [vmem:[%s2910_s21 + $0x30] sm:$0xff] %v1063_v21  ;;  %v815_v41 = vld [vmem:[%s2895_s29 + $0x70] sm:$0xff]  ;;  %v1069_v42 = vadd.f32 %v813_v35, %v301_v34  ;;  %v304_v43 = vld [vmem:[%s2887_s19 + $0x78] sm:$0xff]  ;;  %v1070_v45 = vadd.f32 %v814_v38, %v302_v37  ;;  %v305_v46 = vld [vmem:[%s2887_s19 + $0x80] sm:$0xff] }
  0x6d   : > { %1576 = vst [vmem:[%s2910_s21 + $0x38] sm:$0xff] %v1064_v25  ;;  %v816_v44 = vld [vmem:[%s2895_s29 + $0x78] sm:$0xff]  ;;  %v817_v47 = vld [vmem:[%s2895_s29 + $0x80] sm:$0xff]  ;;  %v1071_v48 = vadd.f32 %v815_v41, %v303_v40  ;;  %v306_v49 = vld [vmem:[%s2887_s19 + $0x88] sm:$0xff] }
  0x6e   : > { %1577 = vst [vmem:[%s2910_s21 + $0x40] sm:$0xff] %v1065_v29  ;;  %v818_v50 = vld [vmem:[%s2895_s29 + $0x88] sm:$0xff]  ;;  %v1072_v51 = vadd.f32 %v816_v44, %v304_v43  ;;  %v307_v52 = vld [vmem:[%s2887_s19 + $0x90] sm:$0xff]  ;;  %v1073_v54 = vadd.f32 %v817_v47, %v305_v46  ;;  %v308_v55 = vld [vmem:[%s2887_s19 + $0x98] sm:$0xff] }
  0x6f   : > { %1578 = vst [vmem:[%s2910_s21 + $0x48] sm:$0xff] %v1066_v33  ;;  %v819_v53 = vld [vmem:[%s2895_s29 + $0x90] sm:$0xff]  ;;  %v820_v56 = vld [vmem:[%s2895_s29 + $0x98] sm:$0xff]  ;;  %v1074_v57 = vadd.f32 %v818_v50, %v306_v49  ;;  %v309_v58 = vld [vmem:[%s2887_s19 + $0xa0] sm:$0xff] }
  0x70   : > { %1579 = vst [vmem:[%s2910_s21 + $0x50] sm:$0xff] %v1067_v36  ;;  %v821_v59 = vld [vmem:[%s2895_s29 + $0xa0] sm:$0xff]  ;;  %v1075_v60 = vadd.f32 %v819_v53, %v307_v52  ;;  %v310_v61 = vld [vmem:[%s2887_s19 + $0xa8] sm:$0xff]  ;;  %v1076_v63 = vadd.f32 %v820_v56, %v308_v55  ;;  %v311_v0 = vld [vmem:[%s2887_s19 + $0xb0] sm:$0xff] }
  0x71   : > { %1580 = vst [vmem:[%s2910_s21 + $0x58] sm:$0xff] %v1068_v39  ;;  %v822_v62 = vld [vmem:[%s2895_s29 + $0xa8] sm:$0xff]  ;;  %v823_v1 = vld [vmem:[%s2895_s29 + $0xb0] sm:$0xff]  ;;  %v1077_v2 = vadd.f32 %v821_v59, %v309_v58  ;;  %v312_v3 = vld [vmem:[%s2887_s19 + $0xb8] sm:$0xff] }
  0x72   : > { %1581 = vst [vmem:[%s2910_s21 + $0x60] sm:$0xff] %v1069_v42  ;;  %v824_v4 = vld [vmem:[%s2895_s29 + $0xb8] sm:$0xff]  ;;  %v1078_v5 = vadd.f32 %v822_v62, %v310_v61  ;;  %v313_v6 = vld [vmem:[%s2887_s19 + $0xc0] sm:$0xff]  ;;  %v1079_v8 = vadd.f32 %v823_v1, %v311_v0  ;;  %v314_v9 = vld [vmem:[%s2887_s19 + $0xc8] sm:$0xff] }
  0x73   : > { %1582 = vst [vmem:[%s2910_s21 + $0x68] sm:$0xff] %v1070_v45  ;;  %v825_v7 = vld [vmem:[%s2895_s29 + $0xc0] sm:$0xff]  ;;  %v826_v10 = vld [vmem:[%s2895_s29 + $0xc8] sm:$0xff]  ;;  %v1080_v11 = vadd.f32 %v824_v4, %v312_v3  ;;  %v315_v12 = vld [vmem:[%s2887_s19 + $0xd0] sm:$0xff] }
  0x74   : > { %1583 = vst [vmem:[%s2910_s21 + $0x70] sm:$0xff] %v1071_v48  ;;  %v827_v13 = vld [vmem:[%s2895_s29 + $0xd0] sm:$0xff]  ;;  %v1081_v14 = vadd.f32 %v825_v7, %v313_v6  ;;  %v316_v15 = vld [vmem:[%s2887_s19 + $0xd8] sm:$0xff]  ;;  %v1082_v17 = vadd.f32 %v826_v10, %v314_v9  ;;  %v317_v18 = vld [vmem:[%s2887_s19 + $0xe0] sm:$0xff] }
  0x75   : > { %1584 = vst [vmem:[%s2910_s21 + $0x78] sm:$0xff] %v1072_v51  ;;  %v828_v16 = vld [vmem:[%s2895_s29 + $0xd8] sm:$0xff]  ;;  %v829_v19 = vld [vmem:[%s2895_s29 + $0xe0] sm:$0xff]  ;;  %v1083_v20 = vadd.f32 %v827_v13, %v315_v12  ;;  %v318_v21 = vld [vmem:[%s2887_s19 + $0xe8] sm:$0xff] }
  0x76   : > { %1585 = vst [vmem:[%s2910_s21 + $0x80] sm:$0xff] %v1073_v54  ;;  %v830_v22 = vld [vmem:[%s2895_s29 + $0xe8] sm:$0xff]  ;;  %v1084_v23 = vadd.f32 %v828_v16, %v316_v15  ;;  %v319_v24 = vld [vmem:[%s2887_s19 + $0xf0] sm:$0xff]  ;;  %v1085_v26 = vadd.f32 %v829_v19, %v317_v18  ;;  %v320_v27 = vld [vmem:[%s2887_s19 + $0xf8] sm:$0xff] }
  0x77   : > { %1586 = vst [vmem:[%s2910_s21 + $0x88] sm:$0xff] %v1074_v57  ;;  %v831_v25 = vld [vmem:[%s2895_s29 + $0xf0] sm:$0xff]  ;;  %v832_v28 = vld [vmem:[%s2895_s29 + $0xf8] sm:$0xff]  ;;  %v1086_v29 = vadd.f32 %v830_v22, %v318_v21  ;;  %v321_v30 = vld [vmem:[%s2887_s19 + $0x100] sm:$0xff] }
  0x78   : > { %1587 = vst [vmem:[%s2910_s21 + $0x90] sm:$0xff] %v1075_v60  ;;  %v833_v31 = vld [vmem:[%s2895_s29 + $0x100] sm:$0xff]  ;;  %v1087_v32 = vadd.f32 %v831_v25, %v319_v24  ;;  %v322_v33 = vld [vmem:[%s2887_s19 + $0x108] sm:$0xff]  ;;  %v1088_v35 = vadd.f32 %v832_v28, %v320_v27  ;;  %v323_v36 = vld [vmem:[%s2887_s19 + $0x110] sm:$0xff] }
  0x79   : > { %1588 = vst [vmem:[%s2910_s21 + $0x98] sm:$0xff] %v1076_v63  ;;  %v834_v34 = vld [vmem:[%s2895_s29 + $0x108] sm:$0xff]  ;;  %v835_v37 = vld [vmem:[%s2895_s29 + $0x110] sm:$0xff]  ;;  %v1089_v38 = vadd.f32 %v833_v31, %v321_v30  ;;  %v324_v39 = vld [vmem:[%s2887_s19 + $0x118] sm:$0xff] }
  0x7a   : > { %1589 = vst [vmem:[%s2910_s21 + $0xa0] sm:$0xff] %v1077_v2  ;;  %v836_v40 = vld [vmem:[%s2895_s29 + $0x118] sm:$0xff]  ;;  %v1090_v41 = vadd.f32 %v834_v34, %v322_v33  ;;  %v325_v42 = vld [vmem:[%s2887_s19 + $0x120] sm:$0xff]  ;;  %v1091_v44 = vadd.f32 %v835_v37, %v323_v36  ;;  %v326_v45 = vld [vmem:[%s2887_s19 + $0x128] sm:$0xff] }
  0x7b   : > { %1590 = vst [vmem:[%s2910_s21 + $0xa8] sm:$0xff] %v1078_v5  ;;  %v837_v43 = vld [vmem:[%s2895_s29 + $0x120] sm:$0xff]  ;;  %v838_v46 = vld [vmem:[%s2895_s29 + $0x128] sm:$0xff]  ;;  %v1092_v47 = vadd.f32 %v836_v40, %v324_v39  ;;  %v327_v48 = vld [vmem:[%s2887_s19 + $0x130] sm:$0xff] }
  0x7c   : > { %1591 = vst [vmem:[%s2910_s21 + $0xb0] sm:$0xff] %v1079_v8  ;;  %v839_v49 = vld [vmem:[%s2895_s29 + $0x130] sm:$0xff]  ;;  %v1093_v50 = vadd.f32 %v837_v43, %v325_v42  ;;  %v328_v51 = vld [vmem:[%s2887_s19 + $0x138] sm:$0xff]  ;;  %v1094_v53 = vadd.f32 %v838_v46, %v326_v45  ;;  %v329_v54 = vld [vmem:[%s2887_s19 + $0x140] sm:$0xff] }
  0x7d   : > { %1592 = vst [vmem:[%s2910_s21 + $0xb8] sm:$0xff] %v1080_v11  ;;  %v840_v52 = vld [vmem:[%s2895_s29 + $0x138] sm:$0xff]  ;;  %v841_v55 = vld [vmem:[%s2895_s29 + $0x140] sm:$0xff]  ;;  %v1095_v56 = vadd.f32 %v839_v49, %v327_v48  ;;  %v330_v57 = vld [vmem:[%s2887_s19 + $0x148] sm:$0xff] }
  0x7e   : > { %1593 = vst [vmem:[%s2910_s21 + $0xc0] sm:$0xff] %v1081_v14  ;;  %v842_v58 = vld [vmem:[%s2895_s29 + $0x148] sm:$0xff]  ;;  %v1096_v59 = vadd.f32 %v840_v52, %v328_v51  ;;  %v331_v60 = vld [vmem:[%s2887_s19 + $0x150] sm:$0xff]  ;;  %v1097_v62 = vadd.f32 %v841_v55, %v329_v54  ;;  %v332_v63 = vld [vmem:[%s2887_s19 + $0x158] sm:$0xff] }
  0x7f   : > { %1594 = vst [vmem:[%s2910_s21 + $0xc8] sm:$0xff] %v1082_v17  ;;  %v843_v61 = vld [vmem:[%s2895_s29 + $0x150] sm:$0xff]  ;;  %v844_v0 = vld [vmem:[%s2895_s29 + $0x158] sm:$0xff]  ;;  %v1098_v1 = vadd.f32 %v842_v58, %v330_v57  ;;  %v333_v2 = vld [vmem:[%s2887_s19 + $0x160] sm:$0xff] }
  0x80   : > { %1595 = vst [vmem:[%s2910_s21 + $0xd0] sm:$0xff] %v1083_v20  ;;  %v845_v3 = vld [vmem:[%s2895_s29 + $0x160] sm:$0xff]  ;;  %v1099_v4 = vadd.f32 %v843_v61, %v331_v60  ;;  %v334_v5 = vld [vmem:[%s2887_s19 + $0x168] sm:$0xff]  ;;  %v1100_v7 = vadd.f32 %v844_v0, %v332_v63  ;;  %v335_v8 = vld [vmem:[%s2887_s19 + $0x170] sm:$0xff] }
  0x81   : > { %1596 = vst [vmem:[%s2910_s21 + $0xd8] sm:$0xff] %v1084_v23  ;;  %v846_v6 = vld [vmem:[%s2895_s29 + $0x168] sm:$0xff]  ;;  %v847_v9 = vld [vmem:[%s2895_s29 + $0x170] sm:$0xff]  ;;  %v1101_v10 = vadd.f32 %v845_v3, %v333_v2  ;;  %v336_v11 = vld [vmem:[%s2887_s19 + $0x178] sm:$0xff] }
  0x82   : > { %1597 = vst [vmem:[%s2910_s21 + $0xe0] sm:$0xff] %v1085_v26  ;;  %v848_v12 = vld [vmem:[%s2895_s29 + $0x178] sm:$0xff]  ;;  %v1102_v13 = vadd.f32 %v846_v6, %v334_v5  ;;  %v337_v14 = vld [vmem:[%s2887_s19 + $0x180] sm:$0xff]  ;;  %v1103_v16 = vadd.f32 %v847_v9, %v335_v8  ;;  %v338_v17 = vld [vmem:[%s2887_s19 + $0x188] sm:$0xff] }
  0x83   : > { %1598 = vst [vmem:[%s2910_s21 + $0xe8] sm:$0xff] %v1086_v29  ;;  %v849_v15 = vld [vmem:[%s2895_s29 + $0x180] sm:$0xff]  ;;  %v850_v18 = vld [vmem:[%s2895_s29 + $0x188] sm:$0xff]  ;;  %v1104_v19 = vadd.f32 %v848_v12, %v336_v11  ;;  %v339_v20 = vld [vmem:[%s2887_s19 + $0x190] sm:$0xff] }
  0x84   : > { %1599 = vst [vmem:[%s2910_s21 + $0xf0] sm:$0xff] %v1087_v32  ;;  %v851_v21 = vld [vmem:[%s2895_s29 + $0x190] sm:$0xff]  ;;  %v1105_v22 = vadd.f32 %v849_v15, %v337_v14  ;;  %v340_v23 = vld [vmem:[%s2887_s19 + $0x198] sm:$0xff]  ;;  %v1106_v25 = vadd.f32 %v850_v18, %v338_v17  ;;  %v341_v26 = vld [vmem:[%s2887_s19 + $0x1a0] sm:$0xff] }
  0x85   : > { %1600 = vst [vmem:[%s2910_s21 + $0xf8] sm:$0xff] %v1088_v35  ;;  %v852_v24 = vld [vmem:[%s2895_s29 + $0x198] sm:$0xff]  ;;  %v853_v27 = vld [vmem:[%s2895_s29 + $0x1a0] sm:$0xff]  ;;  %v1107_v28 = vadd.f32 %v851_v21, %v339_v20  ;;  %v342_v29 = vld [vmem:[%s2887_s19 + $0x1a8] sm:$0xff] }
  0x86   : > { %1601 = vst [vmem:[%s2910_s21 + $0x100] sm:$0xff] %v1089_v38  ;;  %v854_v30 = vld [vmem:[%s2895_s29 + $0x1a8] sm:$0xff]  ;;  %v1108_v31 = vadd.f32 %v852_v24, %v340_v23  ;;  %v343_v32 = vld [vmem:[%s2887_s19 + $0x1b0] sm:$0xff]  ;;  %v1109_v34 = vadd.f32 %v853_v27, %v341_v26  ;;  %v344_v35 = vld [vmem:[%s2887_s19 + $0x1b8] sm:$0xff] }
  0x87   : > { %1602 = vst [vmem:[%s2910_s21 + $0x108] sm:$0xff] %v1090_v41  ;;  %v855_v33 = vld [vmem:[%s2895_s29 + $0x1b0] sm:$0xff]  ;;  %v856_v36 = vld [vmem:[%s2895_s29 + $0x1b8] sm:$0xff]  ;;  %v1110_v37 = vadd.f32 %v854_v30, %v342_v29  ;;  %v345_v38 = vld [vmem:[%s2887_s19 + $0x1c0] sm:$0xff] }
  0x88   : > { %1603 = vst [vmem:[%s2910_s21 + $0x110] sm:$0xff] %v1091_v44  ;;  %v857_v39 = vld [vmem:[%s2895_s29 + $0x1c0] sm:$0xff]  ;;  %v1111_v40 = vadd.f32 %v855_v33, %v343_v32  ;;  %v346_v41 = vld [vmem:[%s2887_s19 + $0x1c8] sm:$0xff]  ;;  %v1112_v43 = vadd.f32 %v856_v36, %v344_v35  ;;  %v347_v44 = vld [vmem:[%s2887_s19 + $0x1d0] sm:$0xff] }
  0x89   : > { %1604 = vst [vmem:[%s2910_s21 + $0x118] sm:$0xff] %v1092_v47  ;;  %v858_v42 = vld [vmem:[%s2895_s29 + $0x1c8] sm:$0xff]  ;;  %v859_v45 = vld [vmem:[%s2895_s29 + $0x1d0] sm:$0xff]  ;;  %v1113_v46 = vadd.f32 %v857_v39, %v345_v38  ;;  %v348_v47 = vld [vmem:[%s2887_s19 + $0x1d8] sm:$0xff] }
  0x8a   : > { %1605 = vst [vmem:[%s2910_s21 + $0x120] sm:$0xff] %v1093_v50  ;;  %v860_v48 = vld [vmem:[%s2895_s29 + $0x1d8] sm:$0xff]  ;;  %v1114_v49 = vadd.f32 %v858_v42, %v346_v41  ;;  %v349_v50 = vld [vmem:[%s2887_s19 + $0x1e0] sm:$0xff]  ;;  %v1115_v52 = vadd.f32 %v859_v45, %v347_v44  ;;  %v862_v54 = vld [vmem:[%s2895_s29 + $0x1e8] sm:$0xff] }
  0x8b   : > { %1606 = vst [vmem:[%s2910_s21 + $0x128] sm:$0xff] %v1094_v53  ;;  %v861_v51 = vld [vmem:[%s2895_s29 + $0x1e0] sm:$0xff]  ;;  %v350_v53 = vld [vmem:[%s2887_s19 + $0x1e8] sm:$0xff]  ;;  %v1116_v55 = vadd.f32 %v860_v48, %v348_v47  ;;  %v863_v57 = vld [vmem:[%s2895_s29 + $0x1f0] sm:$0xff] }
  0x8c   : > { %1607 = vst [vmem:[%s2910_s21 + $0x130] sm:$0xff] %v1095_v56  ;;  %v351_v56 = vld [vmem:[%s2887_s19 + $0x1f0] sm:$0xff]  ;;  %v1117_v58 = vadd.f32 %v861_v51, %v349_v50  ;;  %v864_v60 = vld [vmem:[%s2895_s29 + $0x1f8] sm:$0xff]  ;;  %v1118_v61 = vadd.f32 %v862_v54, %v350_v53  ;;  %v865_v63 = vld [vmem:[%s2895_s29 + $0x200] sm:$0xff] }
  0x8d   : > { %1608 = vst [vmem:[%s2910_s21 + $0x138] sm:$0xff] %v1096_v59  ;;  %v352_v59 = vld [vmem:[%s2887_s19 + $0x1f8] sm:$0xff]  ;;  %v1119_v0 = vadd.f32 %v863_v57, %v351_v56  ;;  %v866_v2 = vld [vmem:[%s2895_s29 + $0x208] sm:$0xff]  ;;  %v867_v5 = vld [vmem:[%s2895_s29 + $0x210] sm:$0xff] }
  0x8e   : > { %1609 = vst [vmem:[%s2910_s21 + $0x140] sm:$0xff] %v1097_v62  ;;  %v353_v62 = vld [vmem:[%s2887_s19 + $0x200] sm:$0xff]  ;;  %v1120_v3 = vadd.f32 %v864_v60, %v352_v59  ;;  %v868_v8 = vld [vmem:[%s2895_s29 + $0x218] sm:$0xff]  ;;  %v870_v14 = vld [vmem:[%s2895_s29 + $0x228] sm:$0xff] }
  0x8f   : > { %1610 = vst [vmem:[%s2910_s21 + $0x148] sm:$0xff] %v1098_v1  ;;  %v354_v1 = vld [vmem:[%s2887_s19 + $0x208] sm:$0xff]  ;;  %v1121_v6 = vadd.f32 %v865_v63, %v353_v62  ;;  %v869_v11 = vld [vmem:[%s2895_s29 + $0x220] sm:$0xff]  ;;  %v871_v17 = vld [vmem:[%s2895_s29 + $0x230] sm:$0xff] }
  0x90   : > { %1611 = vst [vmem:[%s2910_s21 + $0x150] sm:$0xff] %v1099_v4  ;;  %v355_v4 = vld [vmem:[%s2887_s19 + $0x210] sm:$0xff]  ;;  %v1122_v9 = vadd.f32 %v866_v2, %v354_v1  ;;  %v872_v20 = vld [vmem:[%s2895_s29 + $0x238] sm:$0xff]  ;;  %v873_v23 = vld [vmem:[%s2895_s29 + $0x240] sm:$0xff] }
  0x91   : > { %1612 = vst [vmem:[%s2910_s21 + $0x158] sm:$0xff] %v1100_v7  ;;  %v356_v7 = vld [vmem:[%s2887_s19 + $0x218] sm:$0xff]  ;;  %v1123_v12 = vadd.f32 %v867_v5, %v355_v4  ;;  %v874_v26 = vld [vmem:[%s2895_s29 + $0x248] sm:$0xff]  ;;  %v875_v29 = vld [vmem:[%s2895_s29 + $0x250] sm:$0xff] }
  0x92   : > { %1613 = vst [vmem:[%s2910_s21 + $0x160] sm:$0xff] %v1101_v10  ;;  %v357_v10 = vld [vmem:[%s2887_s19 + $0x220] sm:$0xff]  ;;  %v1124_v15 = vadd.f32 %v868_v8, %v356_v7  ;;  %v876_v32 = vld [vmem:[%s2895_s29 + $0x258] sm:$0xff]  ;;  %v878_v38 = vld [vmem:[%s2895_s29 + $0x268] sm:$0xff] }
  0x93   : > { %1614 = vst [vmem:[%s2910_s21 + $0x168] sm:$0xff] %v1102_v13  ;;  %v358_v13 = vld [vmem:[%s2887_s19 + $0x228] sm:$0xff]  ;;  %v1125_v18 = vadd.f32 %v869_v11, %v357_v10  ;;  %v877_v35 = vld [vmem:[%s2895_s29 + $0x260] sm:$0xff]  ;;  %v879_v41 = vld [vmem:[%s2895_s29 + $0x270] sm:$0xff] }
  0x94   : > { %1615 = vst [vmem:[%s2910_s21 + $0x170] sm:$0xff] %v1103_v16  ;;  %v359_v16 = vld [vmem:[%s2887_s19 + $0x230] sm:$0xff]  ;;  %v1126_v21 = vadd.f32 %v870_v14, %v358_v13  ;;  %v880_v44 = vld [vmem:[%s2895_s29 + $0x278] sm:$0xff]  ;;  %v881_v47 = vld [vmem:[%s2895_s29 + $0x280] sm:$0xff] }
  0x95   : > { %1616 = vst [vmem:[%s2910_s21 + $0x178] sm:$0xff] %v1104_v19  ;;  %v360_v19 = vld [vmem:[%s2887_s19 + $0x238] sm:$0xff]  ;;  %v1127_v24 = vadd.f32 %v871_v17, %v359_v16  ;;  %v882_v50 = vld [vmem:[%s2895_s29 + $0x288] sm:$0xff]  ;;  %v883_v53 = vld [vmem:[%s2895_s29 + $0x290] sm:$0xff] }
  0x96   : > { %1617 = vst [vmem:[%s2910_s21 + $0x180] sm:$0xff] %v1105_v22  ;;  %v361_v22 = vld [vmem:[%s2887_s19 + $0x240] sm:$0xff]  ;;  %v1128_v27 = vadd.f32 %v872_v20, %v360_v19  ;;  %v884_v56 = vld [vmem:[%s2895_s29 + $0x298] sm:$0xff]  ;;  %v886_v62 = vld [vmem:[%s2895_s29 + $0x2a8] sm:$0xff] }
  0x97   : > { %1618 = vst [vmem:[%s2910_s21 + $0x188] sm:$0xff] %v1106_v25  ;;  %v362_v25 = vld [vmem:[%s2887_s19 + $0x248] sm:$0xff]  ;;  %v1129_v30 = vadd.f32 %v873_v23, %v361_v22  ;;  %v885_v59 = vld [vmem:[%s2895_s29 + $0x2a0] sm:$0xff]  ;;  %v887_v1 = vld [vmem:[%s2895_s29 + $0x2b0] sm:$0xff] }
  0x98   : > { %1619 = vst [vmem:[%s2910_s21 + $0x190] sm:$0xff] %v1107_v28  ;;  %v363_v28 = vld [vmem:[%s2887_s19 + $0x250] sm:$0xff]  ;;  %v1130_v33 = vadd.f32 %v874_v26, %v362_v25  ;;  %v888_v4 = vld [vmem:[%s2895_s29 + $0x2b8] sm:$0xff]  ;;  %v889_v7 = vld [vmem:[%s2895_s29 + $0x2c0] sm:$0xff] }
  0x99   : > { %1620 = vst [vmem:[%s2910_s21 + $0x198] sm:$0xff] %v1108_v31  ;;  %v364_v31 = vld [vmem:[%s2887_s19 + $0x258] sm:$0xff]  ;;  %v1131_v36 = vadd.f32 %v875_v29, %v363_v28  ;;  %v890_v10 = vld [vmem:[%s2895_s29 + $0x2c8] sm:$0xff]  ;;  %v891_v13 = vld [vmem:[%s2895_s29 + $0x2d0] sm:$0xff] }
  0x9a   : > { %1621 = vst [vmem:[%s2910_s21 + $0x1a0] sm:$0xff] %v1109_v34  ;;  %v365_v34 = vld [vmem:[%s2887_s19 + $0x260] sm:$0xff]  ;;  %v1132_v39 = vadd.f32 %v876_v32, %v364_v31  ;;  %v892_v16 = vld [vmem:[%s2895_s29 + $0x2d8] sm:$0xff]  ;;  %v894_v22 = vld [vmem:[%s2895_s29 + $0x2e8] sm:$0xff] }
  0x9b   : > { %1622 = vst [vmem:[%s2910_s21 + $0x1a8] sm:$0xff] %v1110_v37  ;;  %v366_v37 = vld [vmem:[%s2887_s19 + $0x268] sm:$0xff]  ;;  %v1133_v42 = vadd.f32 %v877_v35, %v365_v34  ;;  %v893_v19 = vld [vmem:[%s2895_s29 + $0x2e0] sm:$0xff]  ;;  %v895_v25 = vld [vmem:[%s2895_s29 + $0x2f0] sm:$0xff] }
  0x9c   : > { %1623 = vst [vmem:[%s2910_s21 + $0x1b0] sm:$0xff] %v1111_v40  ;;  %v367_v40 = vld [vmem:[%s2887_s19 + $0x270] sm:$0xff]  ;;  %v1134_v45 = vadd.f32 %v878_v38, %v366_v37  ;;  %v896_v28 = vld [vmem:[%s2895_s29 + $0x2f8] sm:$0xff]  ;;  %v897_v31 = vld [vmem:[%s2895_s29 + $0x300] sm:$0xff] }
  0x9d   : > { %1624 = vst [vmem:[%s2910_s21 + $0x1b8] sm:$0xff] %v1112_v43  ;;  %v368_v43 = vld [vmem:[%s2887_s19 + $0x278] sm:$0xff]  ;;  %v1135_v48 = vadd.f32 %v879_v41, %v367_v40  ;;  %v898_v34 = vld [vmem:[%s2895_s29 + $0x308] sm:$0xff]  ;;  %v899_v37 = vld [vmem:[%s2895_s29 + $0x310] sm:$0xff] }
  0x9e   : > { %1625 = vst [vmem:[%s2910_s21 + $0x1c0] sm:$0xff] %v1113_v46  ;;  %v369_v46 = vld [vmem:[%s2887_s19 + $0x280] sm:$0xff]  ;;  %v1136_v51 = vadd.f32 %v880_v44, %v368_v43  ;;  %v900_v40 = vld [vmem:[%s2895_s29 + $0x318] sm:$0xff] }
  0x9f   : > { %1626 = vst [vmem:[%s2910_s21 + $0x1c8] sm:$0xff] %v1114_v49  ;;  %v370_v49 = vld [vmem:[%s2887_s19 + $0x288] sm:$0xff]  ;;  %v1137_v54 = vadd.f32 %v881_v47, %v369_v46  ;;  %v901_v43 = vld [vmem:[%s2895_s29 + $0x320] sm:$0xff] }
  0xa0   : > { %1627 = vst [vmem:[%s2910_s21 + $0x1d0] sm:$0xff] %v1115_v52  ;;  %v371_v52 = vld [vmem:[%s2887_s19 + $0x290] sm:$0xff]  ;;  %v1138_v57 = vadd.f32 %v882_v50, %v370_v49  ;;  %v902_v46 = vld [vmem:[%s2895_s29 + $0x328] sm:$0xff] }
  0xa1   : > { %1628 = vst [vmem:[%s2910_s21 + $0x1d8] sm:$0xff] %v1116_v55  ;;  %v372_v55 = vld [vmem:[%s2887_s19 + $0x298] sm:$0xff]  ;;  %v1139_v60 = vadd.f32 %v883_v53, %v371_v52  ;;  %v903_v49 = vld [vmem:[%s2895_s29 + $0x330] sm:$0xff] }
  0xa2   : > { %1629 = vst [vmem:[%s2910_s21 + $0x1e0] sm:$0xff] %v1117_v58  ;;  %v373_v58 = vld [vmem:[%s2887_s19 + $0x2a0] sm:$0xff]  ;;  %v1140_v63 = vadd.f32 %v884_v56, %v372_v55  ;;  %v904_v52 = vld [vmem:[%s2895_s29 + $0x338] sm:$0xff] }
  0xa3   : > { %1630 = vst [vmem:[%s2910_s21 + $0x1e8] sm:$0xff] %v1118_v61  ;;  %v374_v61 = vld [vmem:[%s2887_s19 + $0x2a8] sm:$0xff]  ;;  %v1141_v2 = vadd.f32 %v885_v59, %v373_v58  ;;  %v905_v55 = vld [vmem:[%s2895_s29 + $0x340] sm:$0xff] }
  0xa4   : > { %1631 = vst [vmem:[%s2910_s21 + $0x1f0] sm:$0xff] %v1119_v0  ;;  %v375_v0 = vld [vmem:[%s2887_s19 + $0x2b0] sm:$0xff]  ;;  %v1142_v5 = vadd.f32 %v886_v62, %v374_v61  ;;  %v906_v58 = vld [vmem:[%s2895_s29 + $0x348] sm:$0xff] }
  0xa5   : > { %1632 = vst [vmem:[%s2910_s21 + $0x1f8] sm:$0xff] %v1120_v3  ;;  %v376_v3 = vld [vmem:[%s2887_s19 + $0x2b8] sm:$0xff]  ;;  %v1143_v8 = vadd.f32 %v887_v1, %v375_v0  ;;  %v907_v61 = vld [vmem:[%s2895_s29 + $0x350] sm:$0xff] }
  0xa6   : > { %1633 = vst [vmem:[%s2910_s21 + $0x200] sm:$0xff] %v1121_v6  ;;  %v377_v6 = vld [vmem:[%s2887_s19 + $0x2c0] sm:$0xff]  ;;  %v1144_v11 = vadd.f32 %v888_v4, %v376_v3  ;;  %v908_v0 = vld [vmem:[%s2895_s29 + $0x358] sm:$0xff] }
  0xa7   : > { %1634 = vst [vmem:[%s2910_s21 + $0x208] sm:$0xff] %v1122_v9  ;;  %v378_v9 = vld [vmem:[%s2887_s19 + $0x2c8] sm:$0xff]  ;;  %v1145_v14 = vadd.f32 %v889_v7, %v377_v6  ;;  %v909_v3 = vld [vmem:[%s2895_s29 + $0x360] sm:$0xff] }
  0xa8   : > { %1635 = vst [vmem:[%s2910_s21 + $0x210] sm:$0xff] %v1123_v12  ;;  %v379_v12 = vld [vmem:[%s2887_s19 + $0x2d0] sm:$0xff]  ;;  %v1146_v17 = vadd.f32 %v890_v10, %v378_v9  ;;  %v910_v6 = vld [vmem:[%s2895_s29 + $0x368] sm:$0xff] }
  0xa9   : > { %1636 = vst [vmem:[%s2910_s21 + $0x218] sm:$0xff] %v1124_v15  ;;  %v380_v15 = vld [vmem:[%s2887_s19 + $0x2d8] sm:$0xff]  ;;  %v1147_v20 = vadd.f32 %v891_v13, %v379_v12  ;;  %v911_v9 = vld [vmem:[%s2895_s29 + $0x370] sm:$0xff] }
  0xaa   : > { %1637 = vst [vmem:[%s2910_s21 + $0x220] sm:$0xff] %v1125_v18  ;;  %v381_v18 = vld [vmem:[%s2887_s19 + $0x2e0] sm:$0xff]  ;;  %v1148_v23 = vadd.f32 %v892_v16, %v380_v15  ;;  %v912_v12 = vld [vmem:[%s2895_s29 + $0x378] sm:$0xff] }
  0xab   : > { %1638 = vst [vmem:[%s2910_s21 + $0x228] sm:$0xff] %v1126_v21  ;;  %v382_v21 = vld [vmem:[%s2887_s19 + $0x2e8] sm:$0xff]  ;;  %v1149_v26 = vadd.f32 %v893_v19, %v381_v18  ;;  %v913_v15 = vld [vmem:[%s2895_s29 + $0x380] sm:$0xff] }
  0xac   : > { %1639 = vst [vmem:[%s2910_s21 + $0x230] sm:$0xff] %v1127_v24  ;;  %v383_v24 = vld [vmem:[%s2887_s19 + $0x2f0] sm:$0xff]  ;;  %v1150_v29 = vadd.f32 %v894_v22, %v382_v21  ;;  %v914_v18 = vld [vmem:[%s2895_s29 + $0x388] sm:$0xff] }
  0xad   : > { %1640 = vst [vmem:[%s2910_s21 + $0x238] sm:$0xff] %v1128_v27  ;;  %v384_v27 = vld [vmem:[%s2887_s19 + $0x2f8] sm:$0xff]  ;;  %v1151_v32 = vadd.f32 %v895_v25, %v383_v24  ;;  %v915_v21 = vld [vmem:[%s2895_s29 + $0x390] sm:$0xff] }
  0xae   : > { %1641 = vst [vmem:[%s2910_s21 + $0x240] sm:$0xff] %v1129_v30  ;;  %v385_v30 = vld [vmem:[%s2887_s19 + $0x300] sm:$0xff]  ;;  %v1152_v35 = vadd.f32 %v896_v28, %v384_v27  ;;  %v916_v24 = vld [vmem:[%s2895_s29 + $0x398] sm:$0xff] }
  0xaf   : > { %1642 = vst [vmem:[%s2910_s21 + $0x248] sm:$0xff] %v1130_v33  ;;  %v386_v33 = vld [vmem:[%s2887_s19 + $0x308] sm:$0xff]  ;;  %v1153_v38 = vadd.f32 %v897_v31, %v385_v30  ;;  %v917_v27 = vld [vmem:[%s2895_s29 + $0x3a0] sm:$0xff] }
  0xb0   : > { %1643 = vst [vmem:[%s2910_s21 + $0x250] sm:$0xff] %v1131_v36  ;;  %v387_v36 = vld [vmem:[%s2887_s19 + $0x310] sm:$0xff]  ;;  %v1154_v41 = vadd.f32 %v898_v34, %v386_v33  ;;  %v918_v30 = vld [vmem:[%s2895_s29 + $0x3a8] sm:$0xff] }
  0xb1   : > { %1644 = vst [vmem:[%s2910_s21 + $0x258] sm:$0xff] %v1132_v39  ;;  %v388_v39 = vld [vmem:[%s2887_s19 + $0x318] sm:$0xff]  ;;  %v1155_v44 = vadd.f32 %v899_v37, %v387_v36  ;;  %v919_v33 = vld [vmem:[%s2895_s29 + $0x3b0] sm:$0xff] }
  0xb2   : > { %1645 = vst [vmem:[%s2910_s21 + $0x260] sm:$0xff] %v1133_v42  ;;  %v389_v42 = vld [vmem:[%s2887_s19 + $0x320] sm:$0xff]  ;;  %v1156_v47 = vadd.f32 %v900_v40, %v388_v39  ;;  %v920_v36 = vld [vmem:[%s2895_s29 + $0x3b8] sm:$0xff] }
  0xb3   : > { %1646 = vst [vmem:[%s2910_s21 + $0x268] sm:$0xff] %v1134_v45  ;;  %v390_v45 = vld [vmem:[%s2887_s19 + $0x328] sm:$0xff]  ;;  %v1157_v50 = vadd.f32 %v901_v43, %v389_v42  ;;  %v921_v39 = vld [vmem:[%s2895_s29 + $0x3c0] sm:$0xff] }
  0xb4   : > { %1647 = vst [vmem:[%s2910_s21 + $0x270] sm:$0xff] %v1135_v48  ;;  %v391_v48 = vld [vmem:[%s2887_s19 + $0x330] sm:$0xff]  ;;  %v1158_v53 = vadd.f32 %v902_v46, %v390_v45  ;;  %v922_v42 = vld [vmem:[%s2895_s29 + $0x3c8] sm:$0xff] }
  0xb5   : > { %1648 = vst [vmem:[%s2910_s21 + $0x278] sm:$0xff] %v1136_v51  ;;  %v392_v51 = vld [vmem:[%s2887_s19 + $0x338] sm:$0xff]  ;;  %v1159_v56 = vadd.f32 %v903_v49, %v391_v48  ;;  %v923_v45 = vld [vmem:[%s2895_s29 + $0x3d0] sm:$0xff] }
  0xb6   : > { %1649 = vst [vmem:[%s2910_s21 + $0x280] sm:$0xff] %v1137_v54  ;;  %v393_v54 = vld [vmem:[%s2887_s19 + $0x340] sm:$0xff]  ;;  %v1160_v59 = vadd.f32 %v904_v52, %v392_v51  ;;  %v924_v48 = vld [vmem:[%s2895_s29 + $0x3d8] sm:$0xff] }
  0xb7   : > { %1650 = vst [vmem:[%s2910_s21 + $0x288] sm:$0xff] %v1138_v57  ;;  %v394_v57 = vld [vmem:[%s2887_s19 + $0x348] sm:$0xff]  ;;  %v1161_v62 = vadd.f32 %v905_v55, %v393_v54  ;;  %v925_v51 = vld [vmem:[%s2895_s29 + $0x3e0] sm:$0xff] }
  0xb8   : > { %1651 = vst [vmem:[%s2910_s21 + $0x290] sm:$0xff] %v1139_v60  ;;  %v395_v60 = vld [vmem:[%s2887_s19 + $0x350] sm:$0xff]  ;;  %v1162_v1 = vadd.f32 %v906_v58, %v394_v57  ;;  %v926_v54 = vld [vmem:[%s2895_s29 + $0x3e8] sm:$0xff] }
  0xb9   : > { %1652 = vst [vmem:[%s2910_s21 + $0x298] sm:$0xff] %v1140_v63  ;;  %v396_v63 = vld [vmem:[%s2887_s19 + $0x358] sm:$0xff]  ;;  %v1163_v4 = vadd.f32 %v907_v61, %v395_v60  ;;  %v927_v57 = vld [vmem:[%s2895_s29 + $0x3f0] sm:$0xff] }
  0xba   : > { %1653 = vst [vmem:[%s2910_s21 + $0x2a0] sm:$0xff] %v1141_v2  ;;  %v397_v2 = vld [vmem:[%s2887_s19 + $0x360] sm:$0xff]  ;;  %v1164_v7 = vadd.f32 %v908_v0, %v396_v63  ;;  %v928_v60 = vld [vmem:[%s2895_s29 + $0x3f8] sm:$0xff] }
  0xbb   : > { %1654 = vst [vmem:[%s2910_s21 + $0x2a8] sm:$0xff] %v1142_v5  ;;  %v398_v5 = vld [vmem:[%s2887_s19 + $0x368] sm:$0xff]  ;;  %v1165_v10 = vadd.f32 %v909_v3, %v397_v2  ;;  %v929_v63 = vld [vmem:[%s2895_s29 + $0x400] sm:$0xff] }
  0xbc   : > { %1655 = vst [vmem:[%s2910_s21 + $0x2b0] sm:$0xff] %v1143_v8  ;;  %v399_v8 = vld [vmem:[%s2887_s19 + $0x370] sm:$0xff]  ;;  %v1166_v13 = vadd.f32 %v910_v6, %v398_v5  ;;  %v930_v2 = vld [vmem:[%s2895_s29 + $0x408] sm:$0xff] }
  0xbd   : > { %1656 = vst [vmem:[%s2910_s21 + $0x2b8] sm:$0xff] %v1144_v11  ;;  %v400_v11 = vld [vmem:[%s2887_s19 + $0x378] sm:$0xff]  ;;  %v1167_v16 = vadd.f32 %v911_v9, %v399_v8  ;;  %v931_v5 = vld [vmem:[%s2895_s29 + $0x410] sm:$0xff] }
  0xbe   : > { %1657 = vst [vmem:[%s2910_s21 + $0x2c0] sm:$0xff] %v1145_v14  ;;  %v401_v14 = vld [vmem:[%s2887_s19 + $0x380] sm:$0xff]  ;;  %v1168_v19 = vadd.f32 %v912_v12, %v400_v11  ;;  %v932_v8 = vld [vmem:[%s2895_s29 + $0x418] sm:$0xff] }
  0xbf   : > { %1658 = vst [vmem:[%s2910_s21 + $0x2c8] sm:$0xff] %v1146_v17  ;;  %v402_v17 = vld [vmem:[%s2887_s19 + $0x388] sm:$0xff]  ;;  %v1169_v22 = vadd.f32 %v913_v15, %v401_v14  ;;  %v933_v11 = vld [vmem:[%s2895_s29 + $0x420] sm:$0xff] }
  0xc0   : > { %1659 = vst [vmem:[%s2910_s21 + $0x2d0] sm:$0xff] %v1147_v20  ;;  %v403_v20 = vld [vmem:[%s2887_s19 + $0x390] sm:$0xff]  ;;  %v1170_v25 = vadd.f32 %v914_v18, %v402_v17  ;;  %v934_v14 = vld [vmem:[%s2895_s29 + $0x428] sm:$0xff] }
  0xc1   : > { %1660 = vst [vmem:[%s2910_s21 + $0x2d8] sm:$0xff] %v1148_v23  ;;  %v404_v23 = vld [vmem:[%s2887_s19 + $0x398] sm:$0xff]  ;;  %v1171_v28 = vadd.f32 %v915_v21, %v403_v20  ;;  %v935_v17 = vld [vmem:[%s2895_s29 + $0x430] sm:$0xff] }
  0xc2   : > { %1661 = vst [vmem:[%s2910_s21 + $0x2e0] sm:$0xff] %v1149_v26  ;;  %v405_v26 = vld [vmem:[%s2887_s19 + $0x3a0] sm:$0xff]  ;;  %v1172_v31 = vadd.f32 %v916_v24, %v404_v23  ;;  %v936_v20 = vld [vmem:[%s2895_s29 + $0x438] sm:$0xff] }
  0xc3   : > { %1662 = vst [vmem:[%s2910_s21 + $0x2e8] sm:$0xff] %v1150_v29  ;;  %v406_v29 = vld [vmem:[%s2887_s19 + $0x3a8] sm:$0xff]  ;;  %v1173_v34 = vadd.f32 %v917_v27, %v405_v26  ;;  %v937_v23 = vld [vmem:[%s2895_s29 + $0x440] sm:$0xff] }
  0xc4   : > { %1663 = vst [vmem:[%s2910_s21 + $0x2f0] sm:$0xff] %v1151_v32  ;;  %v407_v32 = vld [vmem:[%s2887_s19 + $0x3b0] sm:$0xff]  ;;  %v1174_v37 = vadd.f32 %v918_v30, %v406_v29  ;;  %v938_v26 = vld [vmem:[%s2895_s29 + $0x448] sm:$0xff] }
  0xc5   : > { %1664 = vst [vmem:[%s2910_s21 + $0x2f8] sm:$0xff] %v1152_v35  ;;  %v408_v35 = vld [vmem:[%s2887_s19 + $0x3b8] sm:$0xff]  ;;  %v1175_v40 = vadd.f32 %v919_v33, %v407_v32  ;;  %v939_v29 = vld [vmem:[%s2895_s29 + $0x450] sm:$0xff] }
  0xc6   : > { %1665 = vst [vmem:[%s2910_s21 + $0x300] sm:$0xff] %v1153_v38  ;;  %v409_v38 = vld [vmem:[%s2887_s19 + $0x3c0] sm:$0xff]  ;;  %v1176_v43 = vadd.f32 %v920_v36, %v408_v35  ;;  %v940_v32 = vld [vmem:[%s2895_s29 + $0x458] sm:$0xff] }
  0xc7   : > { %1666 = vst [vmem:[%s2910_s21 + $0x308] sm:$0xff] %v1154_v41  ;;  %v410_v41 = vld [vmem:[%s2887_s19 + $0x3c8] sm:$0xff]  ;;  %v1177_v46 = vadd.f32 %v921_v39, %v409_v38  ;;  %v941_v35 = vld [vmem:[%s2895_s29 + $0x460] sm:$0xff] }
  0xc8   : > { %1667 = vst [vmem:[%s2910_s21 + $0x310] sm:$0xff] %v1155_v44  ;;  %v411_v44 = vld [vmem:[%s2887_s19 + $0x3d0] sm:$0xff]  ;;  %v1178_v49 = vadd.f32 %v922_v42, %v410_v41  ;;  %v942_v38 = vld [vmem:[%s2895_s29 + $0x468] sm:$0xff] }
  0xc9   : > { %1668 = vst [vmem:[%s2910_s21 + $0x318] sm:$0xff] %v1156_v47  ;;  %v412_v47 = vld [vmem:[%s2887_s19 + $0x3d8] sm:$0xff]  ;;  %v1179_v52 = vadd.f32 %v923_v45, %v411_v44  ;;  %v943_v41 = vld [vmem:[%s2895_s29 + $0x470] sm:$0xff] }
  0xca   : > { %1669 = vst [vmem:[%s2910_s21 + $0x320] sm:$0xff] %v1157_v50  ;;  %v413_v50 = vld [vmem:[%s2887_s19 + $0x3e0] sm:$0xff]  ;;  %v1180_v55 = vadd.f32 %v924_v48, %v412_v47  ;;  %v944_v44 = vld [vmem:[%s2895_s29 + $0x478] sm:$0xff] }
  0xcb   : > { %1670 = vst [vmem:[%s2910_s21 + $0x328] sm:$0xff] %v1158_v53  ;;  %v414_v53 = vld [vmem:[%s2887_s19 + $0x3e8] sm:$0xff]  ;;  %v1181_v58 = vadd.f32 %v925_v51, %v413_v50  ;;  %v945_v47 = vld [vmem:[%s2895_s29 + $0x480] sm:$0xff] }
  0xcc   : > { %1671 = vst [vmem:[%s2910_s21 + $0x330] sm:$0xff] %v1159_v56  ;;  %v415_v56 = vld [vmem:[%s2887_s19 + $0x3f0] sm:$0xff]  ;;  %v1182_v61 = vadd.f32 %v926_v54, %v414_v53  ;;  %v946_v50 = vld [vmem:[%s2895_s29 + $0x488] sm:$0xff] }
  0xcd   : > { %1672 = vst [vmem:[%s2910_s21 + $0x338] sm:$0xff] %v1160_v59  ;;  %v416_v59 = vld [vmem:[%s2887_s19 + $0x3f8] sm:$0xff]  ;;  %v1183_v0 = vadd.f32 %v927_v57, %v415_v56  ;;  %v947_v53 = vld [vmem:[%s2895_s29 + $0x490] sm:$0xff] }
  0xce   : > { %1673 = vst [vmem:[%s2910_s21 + $0x340] sm:$0xff] %v1161_v62  ;;  %v417_v62 = vld [vmem:[%s2887_s19 + $0x400] sm:$0xff]  ;;  %v1184_v3 = vadd.f32 %v928_v60, %v416_v59  ;;  %v948_v56 = vld [vmem:[%s2895_s29 + $0x498] sm:$0xff] }
  0xcf   : > { %1674 = vst [vmem:[%s2910_s21 + $0x348] sm:$0xff] %v1162_v1  ;;  %v418_v1 = vld [vmem:[%s2887_s19 + $0x408] sm:$0xff]  ;;  %v1185_v6 = vadd.f32 %v929_v63, %v417_v62  ;;  %v949_v59 = vld [vmem:[%s2895_s29 + $0x4a0] sm:$0xff] }
  0xd0   : > { %1675 = vst [vmem:[%s2910_s21 + $0x350] sm:$0xff] %v1163_v4  ;;  %v419_v4 = vld [vmem:[%s2887_s19 + $0x410] sm:$0xff]  ;;  %v1186_v9 = vadd.f32 %v930_v2, %v418_v1  ;;  %v950_v62 = vld [vmem:[%s2895_s29 + $0x4a8] sm:$0xff] }
  0xd1   : > { %1676 = vst [vmem:[%s2910_s21 + $0x358] sm:$0xff] %v1164_v7  ;;  %v420_v7 = vld [vmem:[%s2887_s19 + $0x418] sm:$0xff]  ;;  %v1187_v12 = vadd.f32 %v931_v5, %v419_v4  ;;  %v951_v1 = vld [vmem:[%s2895_s29 + $0x4b0] sm:$0xff] }
  0xd2   : > { %1677 = vst [vmem:[%s2910_s21 + $0x360] sm:$0xff] %v1165_v10  ;;  %v421_v10 = vld [vmem:[%s2887_s19 + $0x420] sm:$0xff]  ;;  %v1188_v15 = vadd.f32 %v932_v8, %v420_v7  ;;  %v952_v4 = vld [vmem:[%s2895_s29 + $0x4b8] sm:$0xff] }
  0xd3   : > { %1678 = vst [vmem:[%s2910_s21 + $0x368] sm:$0xff] %v1166_v13  ;;  %v422_v13 = vld [vmem:[%s2887_s19 + $0x428] sm:$0xff]  ;;  %v1189_v18 = vadd.f32 %v933_v11, %v421_v10  ;;  %v953_v7 = vld [vmem:[%s2895_s29 + $0x4c0] sm:$0xff] }
  0xd4   : > { %1679 = vst [vmem:[%s2910_s21 + $0x370] sm:$0xff] %v1167_v16  ;;  %v423_v16 = vld [vmem:[%s2887_s19 + $0x430] sm:$0xff]  ;;  %v1190_v21 = vadd.f32 %v934_v14, %v422_v13  ;;  %v954_v10 = vld [vmem:[%s2895_s29 + $0x4c8] sm:$0xff] }
  0xd5   : > { %1680 = vst [vmem:[%s2910_s21 + $0x378] sm:$0xff] %v1168_v19  ;;  %v424_v19 = vld [vmem:[%s2887_s19 + $0x438] sm:$0xff]  ;;  %v1191_v24 = vadd.f32 %v935_v17, %v423_v16  ;;  %v955_v13 = vld [vmem:[%s2895_s29 + $0x4d0] sm:$0xff] }
  0xd6   : > { %1681 = vst [vmem:[%s2910_s21 + $0x380] sm:$0xff] %v1169_v22  ;;  %v425_v22 = vld [vmem:[%s2887_s19 + $0x440] sm:$0xff]  ;;  %v1192_v27 = vadd.f32 %v936_v20, %v424_v19  ;;  %v956_v16 = vld [vmem:[%s2895_s29 + $0x4d8] sm:$0xff] }
  0xd7   : > { %1682 = vst [vmem:[%s2910_s21 + $0x388] sm:$0xff] %v1170_v25  ;;  %v426_v25 = vld [vmem:[%s2887_s19 + $0x448] sm:$0xff]  ;;  %v1193_v30 = vadd.f32 %v937_v23, %v425_v22  ;;  %v957_v19 = vld [vmem:[%s2895_s29 + $0x4e0] sm:$0xff] }
  0xd8   : > { %1683 = vst [vmem:[%s2910_s21 + $0x390] sm:$0xff] %v1171_v28  ;;  %v427_v28 = vld [vmem:[%s2887_s19 + $0x450] sm:$0xff]  ;;  %v1194_v33 = vadd.f32 %v938_v26, %v426_v25  ;;  %v958_v22 = vld [vmem:[%s2895_s29 + $0x4e8] sm:$0xff] }
  0xd9   : > { %1684 = vst [vmem:[%s2910_s21 + $0x398] sm:$0xff] %v1172_v31  ;;  %v428_v31 = vld [vmem:[%s2887_s19 + $0x458] sm:$0xff]  ;;  %v1195_v36 = vadd.f32 %v939_v29, %v427_v28  ;;  %v959_v25 = vld [vmem:[%s2895_s29 + $0x4f0] sm:$0xff] }
  0xda   : > { %1685 = vst [vmem:[%s2910_s21 + $0x3a0] sm:$0xff] %v1173_v34  ;;  %v429_v34 = vld [vmem:[%s2887_s19 + $0x460] sm:$0xff]  ;;  %v1196_v39 = vadd.f32 %v940_v32, %v428_v31  ;;  %v960_v28 = vld [vmem:[%s2895_s29 + $0x4f8] sm:$0xff] }
  0xdb   : > { %1686 = vst [vmem:[%s2910_s21 + $0x3a8] sm:$0xff] %v1174_v37  ;;  %v430_v37 = vld [vmem:[%s2887_s19 + $0x468] sm:$0xff]  ;;  %v1197_v42 = vadd.f32 %v941_v35, %v429_v34  ;;  %v961_v31 = vld [vmem:[%s2895_s29 + $0x500] sm:$0xff] }
  0xdc   : > { %1687 = vst [vmem:[%s2910_s21 + $0x3b0] sm:$0xff] %v1175_v40  ;;  %v431_v40 = vld [vmem:[%s2887_s19 + $0x470] sm:$0xff]  ;;  %v1198_v45 = vadd.f32 %v942_v38, %v430_v37  ;;  %v962_v34 = vld [vmem:[%s2895_s29 + $0x508] sm:$0xff] }
  0xdd   : > { %1688 = vst [vmem:[%s2910_s21 + $0x3b8] sm:$0xff] %v1176_v43  ;;  %v432_v43 = vld [vmem:[%s2887_s19 + $0x478] sm:$0xff]  ;;  %v1199_v48 = vadd.f32 %v943_v41, %v431_v40  ;;  %v963_v37 = vld [vmem:[%s2895_s29 + $0x510] sm:$0xff] }
  0xde   : > { %1689 = vst [vmem:[%s2910_s21 + $0x3c0] sm:$0xff] %v1177_v46  ;;  %v433_v46 = vld [vmem:[%s2887_s19 + $0x480] sm:$0xff]  ;;  %v1200_v51 = vadd.f32 %v944_v44, %v432_v43  ;;  %v964_v40 = vld [vmem:[%s2895_s29 + $0x518] sm:$0xff] }
  0xdf   : > { %1690 = vst [vmem:[%s2910_s21 + $0x3c8] sm:$0xff] %v1178_v49  ;;  %v434_v49 = vld [vmem:[%s2887_s19 + $0x488] sm:$0xff]  ;;  %v1201_v54 = vadd.f32 %v945_v47, %v433_v46  ;;  %v965_v43 = vld [vmem:[%s2895_s29 + $0x520] sm:$0xff] }
  0xe0   : > { %1691 = vst [vmem:[%s2910_s21 + $0x3d0] sm:$0xff] %v1179_v52  ;;  %v435_v52 = vld [vmem:[%s2887_s19 + $0x490] sm:$0xff]  ;;  %v1202_v57 = vadd.f32 %v946_v50, %v434_v49  ;;  %v966_v46 = vld [vmem:[%s2895_s29 + $0x528] sm:$0xff] }
  0xe1   : > { %1692 = vst [vmem:[%s2910_s21 + $0x3d8] sm:$0xff] %v1180_v55  ;;  %v436_v55 = vld [vmem:[%s2887_s19 + $0x498] sm:$0xff]  ;;  %v1203_v60 = vadd.f32 %v947_v53, %v435_v52  ;;  %v967_v49 = vld [vmem:[%s2895_s29 + $0x530] sm:$0xff] }
  0xe2   : > { %1693 = vst [vmem:[%s2910_s21 + $0x3e0] sm:$0xff] %v1181_v58  ;;  %v437_v58 = vld [vmem:[%s2887_s19 + $0x4a0] sm:$0xff]  ;;  %v1204_v63 = vadd.f32 %v948_v56, %v436_v55  ;;  %v968_v52 = vld [vmem:[%s2895_s29 + $0x538] sm:$0xff] }
  0xe3   : > { %1694 = vst [vmem:[%s2910_s21 + $0x3e8] sm:$0xff] %v1182_v61  ;;  %v438_v61 = vld [vmem:[%s2887_s19 + $0x4a8] sm:$0xff]  ;;  %v1205_v2 = vadd.f32 %v949_v59, %v437_v58  ;;  %v969_v55 = vld [vmem:[%s2895_s29 + $0x540] sm:$0xff] }
  0xe4   : > { %1695 = vst [vmem:[%s2910_s21 + $0x3f0] sm:$0xff] %v1183_v0  ;;  %v439_v0 = vld [vmem:[%s2887_s19 + $0x4b0] sm:$0xff]  ;;  %v1206_v5 = vadd.f32 %v950_v62, %v438_v61  ;;  %v970_v58 = vld [vmem:[%s2895_s29 + $0x548] sm:$0xff] }
  0xe5   : > { %1696 = vst [vmem:[%s2910_s21 + $0x3f8] sm:$0xff] %v1184_v3  ;;  %v440_v3 = vld [vmem:[%s2887_s19 + $0x4b8] sm:$0xff]  ;;  %v1207_v8 = vadd.f32 %v951_v1, %v439_v0  ;;  %v971_v61 = vld [vmem:[%s2895_s29 + $0x550] sm:$0xff] }
  0xe6   : > { %1697 = vst [vmem:[%s2910_s21 + $0x400] sm:$0xff] %v1185_v6  ;;  %v441_v6 = vld [vmem:[%s2887_s19 + $0x4c0] sm:$0xff]  ;;  %v1208_v11 = vadd.f32 %v952_v4, %v440_v3  ;;  %v972_v0 = vld [vmem:[%s2895_s29 + $0x558] sm:$0xff] }
  0xe7   : > { %1698 = vst [vmem:[%s2910_s21 + $0x408] sm:$0xff] %v1186_v9  ;;  %v442_v9 = vld [vmem:[%s2887_s19 + $0x4c8] sm:$0xff]  ;;  %v1209_v14 = vadd.f32 %v953_v7, %v441_v6  ;;  %v973_v3 = vld [vmem:[%s2895_s29 + $0x560] sm:$0xff] }
  0xe8   : > { %1699 = vst [vmem:[%s2910_s21 + $0x410] sm:$0xff] %v1187_v12  ;;  %v443_v12 = vld [vmem:[%s2887_s19 + $0x4d0] sm:$0xff]  ;;  %v1210_v17 = vadd.f32 %v954_v10, %v442_v9  ;;  %v974_v6 = vld [vmem:[%s2895_s29 + $0x568] sm:$0xff] }
  0xe9   : > { %1700 = vst [vmem:[%s2910_s21 + $0x418] sm:$0xff] %v1188_v15  ;;  %v444_v15 = vld [vmem:[%s2887_s19 + $0x4d8] sm:$0xff]  ;;  %v1211_v20 = vadd.f32 %v955_v13, %v443_v12  ;;  %v975_v9 = vld [vmem:[%s2895_s29 + $0x570] sm:$0xff] }
  0xea   : > { %1701 = vst [vmem:[%s2910_s21 + $0x420] sm:$0xff] %v1189_v18  ;;  %v445_v18 = vld [vmem:[%s2887_s19 + $0x4e0] sm:$0xff]  ;;  %v1212_v23 = vadd.f32 %v956_v16, %v444_v15  ;;  %v976_v12 = vld [vmem:[%s2895_s29 + $0x578] sm:$0xff] }
  0xeb   : > { %1702 = vst [vmem:[%s2910_s21 + $0x428] sm:$0xff] %v1190_v21  ;;  %v446_v21 = vld [vmem:[%s2887_s19 + $0x4e8] sm:$0xff]  ;;  %v1213_v26 = vadd.f32 %v957_v19, %v445_v18  ;;  %v977_v15 = vld [vmem:[%s2895_s29 + $0x580] sm:$0xff] }
  0xec   : > { %1703 = vst [vmem:[%s2910_s21 + $0x430] sm:$0xff] %v1191_v24  ;;  %v447_v24 = vld [vmem:[%s2887_s19 + $0x4f0] sm:$0xff]  ;;  %v1214_v29 = vadd.f32 %v958_v22, %v446_v21  ;;  %v978_v18 = vld [vmem:[%s2895_s29 + $0x588] sm:$0xff] }
  0xed   : > { %1704 = vst [vmem:[%s2910_s21 + $0x438] sm:$0xff] %v1192_v27  ;;  %v448_v27 = vld [vmem:[%s2887_s19 + $0x4f8] sm:$0xff]  ;;  %v1215_v32 = vadd.f32 %v959_v25, %v447_v24  ;;  %v979_v21 = vld [vmem:[%s2895_s29 + $0x590] sm:$0xff] }
  0xee   : > { %1705 = vst [vmem:[%s2910_s21 + $0x440] sm:$0xff] %v1193_v30  ;;  %v449_v30 = vld [vmem:[%s2887_s19 + $0x500] sm:$0xff]  ;;  %v1216_v35 = vadd.f32 %v960_v28, %v448_v27  ;;  %v980_v24 = vld [vmem:[%s2895_s29 + $0x598] sm:$0xff] }
  0xef   : > { %1706 = vst [vmem:[%s2910_s21 + $0x448] sm:$0xff] %v1194_v33  ;;  %v450_v33 = vld [vmem:[%s2887_s19 + $0x508] sm:$0xff]  ;;  %v1217_v38 = vadd.f32 %v961_v31, %v449_v30  ;;  %v981_v27 = vld [vmem:[%s2895_s29 + $0x5a0] sm:$0xff] }
  0xf0   : > { %1707 = vst [vmem:[%s2910_s21 + $0x450] sm:$0xff] %v1195_v36  ;;  %v451_v36 = vld [vmem:[%s2887_s19 + $0x510] sm:$0xff]  ;;  %v1218_v41 = vadd.f32 %v962_v34, %v450_v33  ;;  %v982_v30 = vld [vmem:[%s2895_s29 + $0x5a8] sm:$0xff] }
  0xf1   : > { %1708 = vst [vmem:[%s2910_s21 + $0x458] sm:$0xff] %v1196_v39  ;;  %v452_v39 = vld [vmem:[%s2887_s19 + $0x518] sm:$0xff]  ;;  %v1219_v44 = vadd.f32 %v963_v37, %v451_v36  ;;  %v983_v33 = vld [vmem:[%s2895_s29 + $0x5b0] sm:$0xff] }
  0xf2   : > { %1709 = vst [vmem:[%s2910_s21 + $0x460] sm:$0xff] %v1197_v42  ;;  %v453_v42 = vld [vmem:[%s2887_s19 + $0x520] sm:$0xff]  ;;  %v1220_v47 = vadd.f32 %v964_v40, %v452_v39  ;;  %v984_v36 = vld [vmem:[%s2895_s29 + $0x5b8] sm:$0xff] }
  0xf3   : > { %1710 = vst [vmem:[%s2910_s21 + $0x468] sm:$0xff] %v1198_v45  ;;  %v454_v45 = vld [vmem:[%s2887_s19 + $0x528] sm:$0xff]  ;;  %v1221_v50 = vadd.f32 %v965_v43, %v453_v42  ;;  %v985_v39 = vld [vmem:[%s2895_s29 + $0x5c0] sm:$0xff] }
  0xf4   : > { %1711 = vst [vmem:[%s2910_s21 + $0x470] sm:$0xff] %v1199_v48  ;;  %v455_v48 = vld [vmem:[%s2887_s19 + $0x530] sm:$0xff]  ;;  %v1222_v53 = vadd.f32 %v966_v46, %v454_v45  ;;  %v986_v42 = vld [vmem:[%s2895_s29 + $0x5c8] sm:$0xff] }
  0xf5   : > { %1712 = vst [vmem:[%s2910_s21 + $0x478] sm:$0xff] %v1200_v51  ;;  %v456_v51 = vld [vmem:[%s2887_s19 + $0x538] sm:$0xff]  ;;  %v1223_v56 = vadd.f32 %v967_v49, %v455_v48  ;;  %v987_v45 = vld [vmem:[%s2895_s29 + $0x5d0] sm:$0xff] }
  0xf6   : > { %1713 = vst [vmem:[%s2910_s21 + $0x480] sm:$0xff] %v1201_v54  ;;  %v457_v54 = vld [vmem:[%s2887_s19 + $0x540] sm:$0xff]  ;;  %v1224_v59 = vadd.f32 %v968_v52, %v456_v51  ;;  %v988_v48 = vld [vmem:[%s2895_s29 + $0x5d8] sm:$0xff] }
  0xf7   : > { %1714 = vst [vmem:[%s2910_s21 + $0x488] sm:$0xff] %v1202_v57  ;;  %v458_v57 = vld [vmem:[%s2887_s19 + $0x548] sm:$0xff]  ;;  %v1225_v62 = vadd.f32 %v969_v55, %v457_v54  ;;  %v989_v51 = vld [vmem:[%s2895_s29 + $0x5e0] sm:$0xff] }
  0xf8   : > { %1715 = vst [vmem:[%s2910_s21 + $0x490] sm:$0xff] %v1203_v60  ;;  %v459_v60 = vld [vmem:[%s2887_s19 + $0x550] sm:$0xff]  ;;  %v1226_v1 = vadd.f32 %v970_v58, %v458_v57  ;;  %v990_v54 = vld [vmem:[%s2895_s29 + $0x5e8] sm:$0xff] }
  0xf9   : > { %1716 = vst [vmem:[%s2910_s21 + $0x498] sm:$0xff] %v1204_v63  ;;  %v460_v63 = vld [vmem:[%s2887_s19 + $0x558] sm:$0xff]  ;;  %v1227_v4 = vadd.f32 %v971_v61, %v459_v60  ;;  %v991_v57 = vld [vmem:[%s2895_s29 + $0x5f0] sm:$0xff] }
  0xfa   : > { %1717 = vst [vmem:[%s2910_s21 + $0x4a0] sm:$0xff] %v1205_v2  ;;  %v461_v2 = vld [vmem:[%s2887_s19 + $0x560] sm:$0xff]  ;;  %v1228_v7 = vadd.f32 %v972_v0, %v460_v63  ;;  %v992_v60 = vld [vmem:[%s2895_s29 + $0x5f8] sm:$0xff] }
  0xfb   : > { %1718 = vst [vmem:[%s2910_s21 + $0x4a8] sm:$0xff] %v1206_v5  ;;  %v462_v5 = vld [vmem:[%s2887_s19 + $0x568] sm:$0xff]  ;;  %v1229_v10 = vadd.f32 %v973_v3, %v461_v2  ;;  %v993_v63 = vld [vmem:[%s2895_s29 + $0x600] sm:$0xff] }
  0xfc   : > { %1719 = vst [vmem:[%s2910_s21 + $0x4b0] sm:$0xff] %v1207_v8  ;;  %v463_v8 = vld [vmem:[%s2887_s19 + $0x570] sm:$0xff]  ;;  %v1230_v13 = vadd.f32 %v974_v6, %v462_v5  ;;  %v994_v2 = vld [vmem:[%s2895_s29 + $0x608] sm:$0xff] }
  0xfd   : > { %1720 = vst [vmem:[%s2910_s21 + $0x4b8] sm:$0xff] %v1208_v11  ;;  %v464_v11 = vld [vmem:[%s2887_s19 + $0x578] sm:$0xff]  ;;  %v1231_v16 = vadd.f32 %v975_v9, %v463_v8  ;;  %v995_v5 = vld [vmem:[%s2895_s29 + $0x610] sm:$0xff] }
  0xfe   : > { %1721 = vst [vmem:[%s2910_s21 + $0x4c0] sm:$0xff] %v1209_v14  ;;  %v465_v14 = vld [vmem:[%s2887_s19 + $0x580] sm:$0xff]  ;;  %v1232_v19 = vadd.f32 %v976_v12, %v464_v11  ;;  %v996_v8 = vld [vmem:[%s2895_s29 + $0x618] sm:$0xff] }
  0xff   : > { %1722 = vst [vmem:[%s2910_s21 + $0x4c8] sm:$0xff] %v1210_v17  ;;  %v466_v17 = vld [vmem:[%s2887_s19 + $0x588] sm:$0xff]  ;;  %v1233_v22 = vadd.f32 %v977_v15, %v465_v14  ;;  %v997_v11 = vld [vmem:[%s2895_s29 + $0x620] sm:$0xff] }
 0x100   : > { %1723 = vst [vmem:[%s2910_s21 + $0x4d0] sm:$0xff] %v1211_v20  ;;  %v467_v20 = vld [vmem:[%s2887_s19 + $0x590] sm:$0xff]  ;;  %v1234_v25 = vadd.f32 %v978_v18, %v466_v17  ;;  %v998_v14 = vld [vmem:[%s2895_s29 + $0x628] sm:$0xff] }
 0x101   : > { %1724 = vst [vmem:[%s2910_s21 + $0x4d8] sm:$0xff] %v1212_v23  ;;  %v468_v23 = vld [vmem:[%s2887_s19 + $0x598] sm:$0xff]  ;;  %v1235_v28 = vadd.f32 %v979_v21, %v467_v20  ;;  %v999_v17 = vld [vmem:[%s2895_s29 + $0x630] sm:$0xff] }
 0x102   : > { %1725 = vst [vmem:[%s2910_s21 + $0x4e0] sm:$0xff] %v1213_v26  ;;  %v469_v26 = vld [vmem:[%s2887_s19 + $0x5a0] sm:$0xff]  ;;  %v1236_v31 = vadd.f32 %v980_v24, %v468_v23  ;;  %v1000_v20 = vld [vmem:[%s2895_s29 + $0x638] sm:$0xff] }
 0x103   : > { %1726 = vst [vmem:[%s2910_s21 + $0x4e8] sm:$0xff] %v1214_v29  ;;  %v470_v29 = vld [vmem:[%s2887_s19 + $0x5a8] sm:$0xff]  ;;  %v1237_v34 = vadd.f32 %v981_v27, %v469_v26  ;;  %v1001_v23 = vld [vmem:[%s2895_s29 + $0x640] sm:$0xff] }
 0x104   : > { %1727 = vst [vmem:[%s2910_s21 + $0x4f0] sm:$0xff] %v1215_v32  ;;  %v471_v32 = vld [vmem:[%s2887_s19 + $0x5b0] sm:$0xff]  ;;  %v1238_v37 = vadd.f32 %v982_v30, %v470_v29  ;;  %v1002_v26 = vld [vmem:[%s2895_s29 + $0x648] sm:$0xff] }
 0x105   : > { %1728 = vst [vmem:[%s2910_s21 + $0x4f8] sm:$0xff] %v1216_v35  ;;  %v472_v35 = vld [vmem:[%s2887_s19 + $0x5b8] sm:$0xff]  ;;  %v1239_v40 = vadd.f32 %v983_v33, %v471_v32  ;;  %v1003_v29 = vld [vmem:[%s2895_s29 + $0x650] sm:$0xff] }
 0x106   : > { %1729 = vst [vmem:[%s2910_s21 + $0x500] sm:$0xff] %v1217_v38  ;;  %v473_v38 = vld [vmem:[%s2887_s19 + $0x5c0] sm:$0xff]  ;;  %v1240_v43 = vadd.f32 %v984_v36, %v472_v35  ;;  %v1004_v32 = vld [vmem:[%s2895_s29 + $0x658] sm:$0xff] }
 0x107   : > { %1730 = vst [vmem:[%s2910_s21 + $0x508] sm:$0xff] %v1218_v41  ;;  %v474_v41 = vld [vmem:[%s2887_s19 + $0x5c8] sm:$0xff]  ;;  %v1241_v46 = vadd.f32 %v985_v39, %v473_v38  ;;  %v1005_v35 = vld [vmem:[%s2895_s29 + $0x660] sm:$0xff] }
 0x108   : > { %1731 = vst [vmem:[%s2910_s21 + $0x510] sm:$0xff] %v1219_v44  ;;  %v475_v44 = vld [vmem:[%s2887_s19 + $0x5d0] sm:$0xff]  ;;  %v1242_v49 = vadd.f32 %v986_v42, %v474_v41  ;;  %v1006_v38 = vld [vmem:[%s2895_s29 + $0x668] sm:$0xff] }
 0x109   : > { %1732 = vst [vmem:[%s2910_s21 + $0x518] sm:$0xff] %v1220_v47  ;;  %v476_v47 = vld [vmem:[%s2887_s19 + $0x5d8] sm:$0xff]  ;;  %v1243_v52 = vadd.f32 %v987_v45, %v475_v44  ;;  %v1007_v41 = vld [vmem:[%s2895_s29 + $0x670] sm:$0xff] }
 0x10a   : > { %1733 = vst [vmem:[%s2910_s21 + $0x520] sm:$0xff] %v1221_v50  ;;  %v477_v50 = vld [vmem:[%s2887_s19 + $0x5e0] sm:$0xff]  ;;  %v1244_v55 = vadd.f32 %v988_v48, %v476_v47  ;;  %v1008_v44 = vld [vmem:[%s2895_s29 + $0x678] sm:$0xff] }
 0x10b   : > { %1734 = vst [vmem:[%s2910_s21 + $0x528] sm:$0xff] %v1222_v53  ;;  %v478_v53 = vld [vmem:[%s2887_s19 + $0x5e8] sm:$0xff]  ;;  %v1245_v58 = vadd.f32 %v989_v51, %v477_v50  ;;  %v1009_v47 = vld [vmem:[%s2895_s29 + $0x680] sm:$0xff] }
 0x10c   : > { %1735 = vst [vmem:[%s2910_s21 + $0x530] sm:$0xff] %v1223_v56  ;;  %v479_v56 = vld [vmem:[%s2887_s19 + $0x5f0] sm:$0xff]  ;;  %v1246_v61 = vadd.f32 %v990_v54, %v478_v53  ;;  %v1010_v50 = vld [vmem:[%s2895_s29 + $0x688] sm:$0xff] }
 0x10d   : > { %1736 = vst [vmem:[%s2910_s21 + $0x538] sm:$0xff] %v1224_v59  ;;  %v480_v59 = vld [vmem:[%s2887_s19 + $0x5f8] sm:$0xff]  ;;  %v1247_v0 = vadd.f32 %v991_v57, %v479_v56  ;;  %v1011_v53 = vld [vmem:[%s2895_s29 + $0x690] sm:$0xff] }
 0x10e   : > { %1737 = vst [vmem:[%s2910_s21 + $0x540] sm:$0xff] %v1225_v62  ;;  %v481_v62 = vld [vmem:[%s2887_s19 + $0x600] sm:$0xff]  ;;  %v1248_v3 = vadd.f32 %v992_v60, %v480_v59  ;;  %v1012_v56 = vld [vmem:[%s2895_s29 + $0x698] sm:$0xff] }
 0x10f   : > { %1738 = vst [vmem:[%s2910_s21 + $0x548] sm:$0xff] %v1226_v1  ;;  %v482_v1 = vld [vmem:[%s2887_s19 + $0x608] sm:$0xff]  ;;  %v1249_v6 = vadd.f32 %v993_v63, %v481_v62  ;;  %v1013_v59 = vld [vmem:[%s2895_s29 + $0x6a0] sm:$0xff] }
 0x110   : > { %1739 = vst [vmem:[%s2910_s21 + $0x550] sm:$0xff] %v1227_v4  ;;  %v483_v4 = vld [vmem:[%s2887_s19 + $0x610] sm:$0xff]  ;;  %v1250_v9 = vadd.f32 %v994_v2, %v482_v1  ;;  %v1014_v62 = vld [vmem:[%s2895_s29 + $0x6a8] sm:$0xff] }
 0x111   : > { %1740 = vst [vmem:[%s2910_s21 + $0x558] sm:$0xff] %v1228_v7  ;;  %v484_v7 = vld [vmem:[%s2887_s19 + $0x618] sm:$0xff]  ;;  %v1251_v12 = vadd.f32 %v995_v5, %v483_v4  ;;  %v1015_v1 = vld [vmem:[%s2895_s29 + $0x6b0] sm:$0xff] }
 0x112   : > { %1741 = vst [vmem:[%s2910_s21 + $0x560] sm:$0xff] %v1229_v10  ;;  %v485_v10 = vld [vmem:[%s2887_s19 + $0x620] sm:$0xff]  ;;  %v1252_v15 = vadd.f32 %v996_v8, %v484_v7  ;;  %v1016_v4 = vld [vmem:[%s2895_s29 + $0x6b8] sm:$0xff] }
 0x113   : > { %1742 = vst [vmem:[%s2910_s21 + $0x568] sm:$0xff] %v1230_v13  ;;  %v486_v13 = vld [vmem:[%s2887_s19 + $0x628] sm:$0xff]  ;;  %v1253_v18 = vadd.f32 %v997_v11, %v485_v10  ;;  %v1017_v7 = vld [vmem:[%s2895_s29 + $0x6c0] sm:$0xff] }
 0x114   : > { %1743 = vst [vmem:[%s2910_s21 + $0x570] sm:$0xff] %v1231_v16  ;;  %v487_v16 = vld [vmem:[%s2887_s19 + $0x630] sm:$0xff]  ;;  %v1254_v21 = vadd.f32 %v998_v14, %v486_v13  ;;  %v1018_v10 = vld [vmem:[%s2895_s29 + $0x6c8] sm:$0xff] }
 0x115   : > { %1744 = vst [vmem:[%s2910_s21 + $0x578] sm:$0xff] %v1232_v19  ;;  %v488_v19 = vld [vmem:[%s2887_s19 + $0x638] sm:$0xff]  ;;  %v1255_v24 = vadd.f32 %v999_v17, %v487_v16  ;;  %v1019_v13 = vld [vmem:[%s2895_s29 + $0x6d0] sm:$0xff] }
 0x116   : > { %1745 = vst [vmem:[%s2910_s21 + $0x580] sm:$0xff] %v1233_v22  ;;  %v489_v22 = vld [vmem:[%s2887_s19 + $0x640] sm:$0xff]  ;;  %v1256_v27 = vadd.f32 %v1000_v20, %v488_v19  ;;  %v1020_v16 = vld [vmem:[%s2895_s29 + $0x6d8] sm:$0xff] }
 0x117   : > { %1746 = vst [vmem:[%s2910_s21 + $0x588] sm:$0xff] %v1234_v25  ;;  %v490_v25 = vld [vmem:[%s2887_s19 + $0x648] sm:$0xff]  ;;  %v1257_v30 = vadd.f32 %v1001_v23, %v489_v22  ;;  %v1021_v19 = vld [vmem:[%s2895_s29 + $0x6e0] sm:$0xff] }
 0x118   : > { %1747 = vst [vmem:[%s2910_s21 + $0x590] sm:$0xff] %v1235_v28  ;;  %v491_v28 = vld [vmem:[%s2887_s19 + $0x650] sm:$0xff]  ;;  %v1258_v33 = vadd.f32 %v1002_v26, %v490_v25  ;;  %v1022_v22 = vld [vmem:[%s2895_s29 + $0x6e8] sm:$0xff] }
 0x119   : > { %1748 = vst [vmem:[%s2910_s21 + $0x598] sm:$0xff] %v1236_v31  ;;  %v492_v31 = vld [vmem:[%s2887_s19 + $0x658] sm:$0xff]  ;;  %v1259_v36 = vadd.f32 %v1003_v29, %v491_v28  ;;  %v1023_v25 = vld [vmem:[%s2895_s29 + $0x6f0] sm:$0xff] }
 0x11a   : > { %1749 = vst [vmem:[%s2910_s21 + $0x5a0] sm:$0xff] %v1237_v34  ;;  %v493_v34 = vld [vmem:[%s2887_s19 + $0x660] sm:$0xff]  ;;  %v1260_v39 = vadd.f32 %v1004_v32, %v492_v31  ;;  %v1024_v28 = vld [vmem:[%s2895_s29 + $0x6f8] sm:$0xff] }
 0x11b   : > { %1750 = vst [vmem:[%s2910_s21 + $0x5a8] sm:$0xff] %v1238_v37  ;;  %v494_v37 = vld [vmem:[%s2887_s19 + $0x668] sm:$0xff]  ;;  %v1261_v42 = vadd.f32 %v1005_v35, %v493_v34  ;;  %v1025_v31 = vld [vmem:[%s2895_s29 + $0x700] sm:$0xff] }
 0x11c   : > { %1751 = vst [vmem:[%s2910_s21 + $0x5b0] sm:$0xff] %v1239_v40  ;;  %v495_v40 = vld [vmem:[%s2887_s19 + $0x670] sm:$0xff]  ;;  %v1262_v45 = vadd.f32 %v1006_v38, %v494_v37  ;;  %v1026_v34 = vld [vmem:[%s2895_s29 + $0x708] sm:$0xff] }
 0x11d   : > { %1752 = vst [vmem:[%s2910_s21 + $0x5b8] sm:$0xff] %v1240_v43  ;;  %v496_v43 = vld [vmem:[%s2887_s19 + $0x678] sm:$0xff]  ;;  %v1263_v48 = vadd.f32 %v1007_v41, %v495_v40  ;;  %v1027_v37 = vld [vmem:[%s2895_s29 + $0x710] sm:$0xff] }
 0x11e   : > { %1753 = vst [vmem:[%s2910_s21 + $0x5c0] sm:$0xff] %v1241_v46  ;;  %v497_v46 = vld [vmem:[%s2887_s19 + $0x680] sm:$0xff]  ;;  %v1264_v51 = vadd.f32 %v1008_v44, %v496_v43  ;;  %v1028_v40 = vld [vmem:[%s2895_s29 + $0x718] sm:$0xff] }
 0x11f   : > { %1754 = vst [vmem:[%s2910_s21 + $0x5c8] sm:$0xff] %v1242_v49  ;;  %v498_v49 = vld [vmem:[%s2887_s19 + $0x688] sm:$0xff]  ;;  %v1265_v54 = vadd.f32 %v1009_v47, %v497_v46  ;;  %v1029_v43 = vld [vmem:[%s2895_s29 + $0x720] sm:$0xff] }
 0x120   : > { %1755 = vst [vmem:[%s2910_s21 + $0x5d0] sm:$0xff] %v1243_v52  ;;  %v499_v52 = vld [vmem:[%s2887_s19 + $0x690] sm:$0xff]  ;;  %v1266_v57 = vadd.f32 %v1010_v50, %v498_v49  ;;  %v1030_v46 = vld [vmem:[%s2895_s29 + $0x728] sm:$0xff] }
 0x121   : > { %1756 = vst [vmem:[%s2910_s21 + $0x5d8] sm:$0xff] %v1244_v55  ;;  %v500_v55 = vld [vmem:[%s2887_s19 + $0x698] sm:$0xff]  ;;  %v1267_v60 = vadd.f32 %v1011_v53, %v499_v52  ;;  %v1031_v49 = vld [vmem:[%s2895_s29 + $0x730] sm:$0xff] }
 0x122   : > { %1757 = vst [vmem:[%s2910_s21 + $0x5e0] sm:$0xff] %v1245_v58  ;;  %v501_v58 = vld [vmem:[%s2887_s19 + $0x6a0] sm:$0xff]  ;;  %v1268_v63 = vadd.f32 %v1012_v56, %v500_v55  ;;  %v1032_v52 = vld [vmem:[%s2895_s29 + $0x738] sm:$0xff] }
 0x123   : > { %1758 = vst [vmem:[%s2910_s21 + $0x5e8] sm:$0xff] %v1246_v61  ;;  %v502_v61 = vld [vmem:[%s2887_s19 + $0x6a8] sm:$0xff]  ;;  %v1269_v2 = vadd.f32 %v1013_v59, %v501_v58  ;;  %v1033_v55 = vld [vmem:[%s2895_s29 + $0x740] sm:$0xff] }
 0x124   : > { %1759 = vst [vmem:[%s2910_s21 + $0x5f0] sm:$0xff] %v1247_v0  ;;  %v503_v0 = vld [vmem:[%s2887_s19 + $0x6b0] sm:$0xff]  ;;  %v1270_v5 = vadd.f32 %v1014_v62, %v502_v61  ;;  %v1034_v58 = vld [vmem:[%s2895_s29 + $0x748] sm:$0xff] }
 0x125   : > { %1760 = vst [vmem:[%s2910_s21 + $0x5f8] sm:$0xff] %v1248_v3  ;;  %v504_v3 = vld [vmem:[%s2887_s19 + $0x6b8] sm:$0xff]  ;;  %v1271_v8 = vadd.f32 %v1015_v1, %v503_v0  ;;  %v1035_v61 = vld [vmem:[%s2895_s29 + $0x750] sm:$0xff] }
 0x126   : > { %1761 = vst [vmem:[%s2910_s21 + $0x600] sm:$0xff] %v1249_v6  ;;  %v505_v6 = vld [vmem:[%s2887_s19 + $0x6c0] sm:$0xff]  ;;  %v1272_v11 = vadd.f32 %v1016_v4, %v504_v3  ;;  %v1036_v0 = vld [vmem:[%s2895_s29 + $0x758] sm:$0xff] }
 0x127   : > { %1762 = vst [vmem:[%s2910_s21 + $0x608] sm:$0xff] %v1250_v9  ;;  %v506_v9 = vld [vmem:[%s2887_s19 + $0x6c8] sm:$0xff]  ;;  %v1273_v14 = vadd.f32 %v1017_v7, %v505_v6  ;;  %v1037_v3 = vld [vmem:[%s2895_s29 + $0x760] sm:$0xff] }
 0x128   : > { %1763 = vst [vmem:[%s2910_s21 + $0x610] sm:$0xff] %v1251_v12  ;;  %v507_v12 = vld [vmem:[%s2887_s19 + $0x6d0] sm:$0xff]  ;;  %v1274_v17 = vadd.f32 %v1018_v10, %v506_v9  ;;  %v1038_v6 = vld [vmem:[%s2895_s29 + $0x768] sm:$0xff] }
 0x129   : > { %1764 = vst [vmem:[%s2910_s21 + $0x618] sm:$0xff] %v1252_v15  ;;  %v508_v15 = vld [vmem:[%s2887_s19 + $0x6d8] sm:$0xff]  ;;  %v1275_v20 = vadd.f32 %v1019_v13, %v507_v12  ;;  %v1039_v9 = vld [vmem:[%s2895_s29 + $0x770] sm:$0xff] }
 0x12a   : > { %1765 = vst [vmem:[%s2910_s21 + $0x620] sm:$0xff] %v1253_v18  ;;  %v509_v18 = vld [vmem:[%s2887_s19 + $0x6e0] sm:$0xff]  ;;  %v1276_v23 = vadd.f32 %v1020_v16, %v508_v15  ;;  %v1040_v12 = vld [vmem:[%s2895_s29 + $0x778] sm:$0xff] }
 0x12b   : > { %1766 = vst [vmem:[%s2910_s21 + $0x628] sm:$0xff] %v1254_v21  ;;  %v510_v21 = vld [vmem:[%s2887_s19 + $0x6e8] sm:$0xff]  ;;  %v1277_v26 = vadd.f32 %v1021_v19, %v509_v18  ;;  %v1041_v15 = vld [vmem:[%s2895_s29 + $0x780] sm:$0xff] }
 0x12c   : > { %1767 = vst [vmem:[%s2910_s21 + $0x630] sm:$0xff] %v1255_v24  ;;  %v511_v24 = vld [vmem:[%s2887_s19 + $0x6f0] sm:$0xff]  ;;  %v1278_v29 = vadd.f32 %v1022_v22, %v510_v21  ;;  %v1042_v18 = vld [vmem:[%s2895_s29 + $0x788] sm:$0xff] }
 0x12d   : > { %1768 = vst [vmem:[%s2910_s21 + $0x638] sm:$0xff] %v1256_v27  ;;  %v512_v27 = vld [vmem:[%s2887_s19 + $0x6f8] sm:$0xff]  ;;  %v1279_v32 = vadd.f32 %v1023_v25, %v511_v24  ;;  %v1043_v21 = vld [vmem:[%s2895_s29 + $0x790] sm:$0xff] }
 0x12e   : > { %1769 = vst [vmem:[%s2910_s21 + $0x640] sm:$0xff] %v1257_v30  ;;  %v513_v30 = vld [vmem:[%s2887_s19 + $0x700] sm:$0xff]  ;;  %v1280_v35 = vadd.f32 %v1024_v28, %v512_v27  ;;  %v1044_v24 = vld [vmem:[%s2895_s29 + $0x798] sm:$0xff] }
 0x12f   : > { %1770 = vst [vmem:[%s2910_s21 + $0x648] sm:$0xff] %v1258_v33  ;;  %v514_v33 = vld [vmem:[%s2887_s19 + $0x708] sm:$0xff]  ;;  %v1281_v38 = vadd.f32 %v1025_v31, %v513_v30  ;;  %v1045_v27 = vld [vmem:[%s2895_s29 + $0x7a0] sm:$0xff] }
 0x130   : > { %1771 = vst [vmem:[%s2910_s21 + $0x650] sm:$0xff] %v1259_v36  ;;  %v515_v36 = vld [vmem:[%s2887_s19 + $0x710] sm:$0xff]  ;;  %v1282_v41 = vadd.f32 %v1026_v34, %v514_v33  ;;  %v1046_v30 = vld [vmem:[%s2895_s29 + $0x7a8] sm:$0xff] }
 0x131   : > { %1772 = vst [vmem:[%s2910_s21 + $0x658] sm:$0xff] %v1260_v39  ;;  %v516_v39 = vld [vmem:[%s2887_s19 + $0x718] sm:$0xff]  ;;  %v1283_v44 = vadd.f32 %v1027_v37, %v515_v36  ;;  %v1047_v33 = vld [vmem:[%s2895_s29 + $0x7b0] sm:$0xff] }
 0x132   : > { %1773 = vst [vmem:[%s2910_s21 + $0x660] sm:$0xff] %v1261_v42  ;;  %v517_v42 = vld [vmem:[%s2887_s19 + $0x720] sm:$0xff]  ;;  %v1284_v47 = vadd.f32 %v1028_v40, %v516_v39  ;;  %v1048_v36 = vld [vmem:[%s2895_s29 + $0x7b8] sm:$0xff] }
 0x133   : > { %1774 = vst [vmem:[%s2910_s21 + $0x668] sm:$0xff] %v1262_v45  ;;  %v518_v45 = vld [vmem:[%s2887_s19 + $0x728] sm:$0xff]  ;;  %v1285_v50 = vadd.f32 %v1029_v43, %v517_v42  ;;  %v1049_v39 = vld [vmem:[%s2895_s29 + $0x7c0] sm:$0xff] }
 0x134   : > { %1775 = vst [vmem:[%s2910_s21 + $0x670] sm:$0xff] %v1263_v48  ;;  %v519_v48 = vld [vmem:[%s2887_s19 + $0x730] sm:$0xff]  ;;  %v1286_v53 = vadd.f32 %v1030_v46, %v518_v45  ;;  %v1050_v42 = vld [vmem:[%s2895_s29 + $0x7c8] sm:$0xff] }
 0x135   : > { %1776 = vst [vmem:[%s2910_s21 + $0x678] sm:$0xff] %v1264_v51  ;;  %v520_v51 = vld [vmem:[%s2887_s19 + $0x738] sm:$0xff]  ;;  %v1287_v56 = vadd.f32 %v1031_v49, %v519_v48  ;;  %v1051_v45 = vld [vmem:[%s2895_s29 + $0x7d0] sm:$0xff] }
 0x136   : > { %1777 = vst [vmem:[%s2910_s21 + $0x680] sm:$0xff] %v1265_v54  ;;  %v521_v54 = vld [vmem:[%s2887_s19 + $0x740] sm:$0xff]  ;;  %v1288_v59 = vadd.f32 %v1032_v52, %v520_v51  ;;  %v1052_v48 = vld [vmem:[%s2895_s29 + $0x7d8] sm:$0xff] }
 0x137   : > { %1778 = vst [vmem:[%s2910_s21 + $0x688] sm:$0xff] %v1266_v57  ;;  %v522_v57 = vld [vmem:[%s2887_s19 + $0x748] sm:$0xff]  ;;  %v1289_v62 = vadd.f32 %v1033_v55, %v521_v54  ;;  %v1053_v51 = vld [vmem:[%s2895_s29 + $0x7e0] sm:$0xff] }
 0x138   : > { %1779 = vst [vmem:[%s2910_s21 + $0x690] sm:$0xff] %v1267_v60  ;;  %v523_v60 = vld [vmem:[%s2887_s19 + $0x750] sm:$0xff]  ;;  %v1290_v1 = vadd.f32 %v1034_v58, %v522_v57  ;;  %v1054_v54 = vld [vmem:[%s2895_s29 + $0x7e8] sm:$0xff] }
 0x139   : > { %1780 = vst [vmem:[%s2910_s21 + $0x698] sm:$0xff] %v1268_v63  ;;  %v524_v63 = vld [vmem:[%s2887_s19 + $0x758] sm:$0xff]  ;;  %v1291_v4 = vadd.f32 %v1035_v61, %v523_v60  ;;  %v1055_v57 = vld [vmem:[%s2895_s29 + $0x7f0] sm:$0xff] }
 0x13a   : > { %1781 = vst [vmem:[%s2910_s21 + $0x6a0] sm:$0xff] %v1269_v2  ;;  %v525_v2 = vld [vmem:[%s2887_s19 + $0x760] sm:$0xff]  ;;  %v1292_v7 = vadd.f32 %v1036_v0, %v524_v63  ;;  %v1056_v60 = vld [vmem:[%s2895_s29 + $0x7f8] sm:$0xff]  ;;  %v546_v0 = vld [vmem:[%s2887_s19 + $0x808] sm:$0xff] }
 0x13b   : > { %1782 = vst [vmem:[%s2910_s21 + $0x6a8] sm:$0xff] %v1270_v5  ;;  %v526_v5 = vld [vmem:[%s2887_s19 + $0x768] sm:$0xff]  ;;  %v1293_v10 = vadd.f32 %v1037_v3, %v525_v2  ;;  %v547_v2 = vld [vmem:[%s2887_s19 + $0x810] sm:$0xff]  ;;  %v2366_v3 = vld [vmem:[%s2895_s29] sm:$0xff] }
 0x13c   : > { %1783 = vst [vmem:[%s2910_s21 + $0x6b0] sm:$0xff] %v1271_v8  ;;  %v527_v8 = vld [vmem:[%s2887_s19 + $0x770] sm:$0xff]  ;;  %v1294_v13 = vadd.f32 %v1038_v6, %v526_v5  ;;  %v548_v5 = vld [vmem:[%s2887_s19 + $0x818] sm:$0xff]  ;;  %v2367_v6 = vld [vmem:[%s2895_s29 + $0x8] sm:$0xff] }
 0x13d   : > { %1784 = vst [vmem:[%s2910_s21 + $0x6b8] sm:$0xff] %v1272_v11  ;;  %v528_v11 = vld [vmem:[%s2887_s19 + $0x778] sm:$0xff]  ;;  %v1295_v16 = vadd.f32 %v1039_v9, %v527_v8  ;;  %v549_v8 = vld [vmem:[%s2887_s19 + $0x820] sm:$0xff]  ;;  %v2368_v9 = vld [vmem:[%s2895_s29 + $0x10] sm:$0xff] }
 0x13e   : > { %1785 = vst [vmem:[%s2910_s21 + $0x6c0] sm:$0xff] %v1273_v14  ;;  %v529_v14 = vld [vmem:[%s2887_s19 + $0x780] sm:$0xff]  ;;  %v1296_v19 = vadd.f32 %v1040_v12, %v528_v11  ;;  %v550_v11 = vld [vmem:[%s2887_s19 + $0x828] sm:$0xff]  ;;  %v2369_v12 = vld [vmem:[%s2895_s29 + $0x18] sm:$0xff] }
 0x13f   : > { %1786 = vst [vmem:[%s2910_s21 + $0x6c8] sm:$0xff] %v1274_v17  ;;  %v530_v17 = vld [vmem:[%s2887_s19 + $0x788] sm:$0xff]  ;;  %v1297_v22 = vadd.f32 %v1041_v15, %v529_v14  ;;  %v551_v14 = vld [vmem:[%s2887_s19 + $0x830] sm:$0xff]  ;;  %v2370_v15 = vld [vmem:[%s2895_s29 + $0x20] sm:$0xff] }
 0x140   : > { %1787 = vst [vmem:[%s2910_s21 + $0x6d0] sm:$0xff] %v1275_v20  ;;  %v531_v20 = vld [vmem:[%s2887_s19 + $0x790] sm:$0xff]  ;;  %v1298_v25 = vadd.f32 %v1042_v18, %v530_v17  ;;  %v552_v17 = vld [vmem:[%s2887_s19 + $0x838] sm:$0xff]  ;;  %v2371_v18 = vld [vmem:[%s2895_s29 + $0x28] sm:$0xff] }
 0x141   : > { %1788 = vst [vmem:[%s2910_s21 + $0x6d8] sm:$0xff] %v1276_v23  ;;  %v532_v23 = vld [vmem:[%s2887_s19 + $0x798] sm:$0xff]  ;;  %v1299_v28 = vadd.f32 %v1043_v21, %v531_v20  ;;  %v553_v20 = vld [vmem:[%s2887_s19 + $0x840] sm:$0xff]  ;;  %v2372_v21 = vld [vmem:[%s2895_s29 + $0x30] sm:$0xff] }
 0x142   : > { %1789 = vst [vmem:[%s2910_s21 + $0x6e0] sm:$0xff] %v1277_v26  ;;  %v533_v26 = vld [vmem:[%s2887_s19 + $0x7a0] sm:$0xff]  ;;  %v1300_v31 = vadd.f32 %v1044_v24, %v532_v23  ;;  %v554_v23 = vld [vmem:[%s2887_s19 + $0x848] sm:$0xff]  ;;  %v2373_v24 = vld [vmem:[%s2895_s29 + $0x38] sm:$0xff] }
 0x143   : > { %1790 = vst [vmem:[%s2910_s21 + $0x6e8] sm:$0xff] %v1278_v29  ;;  %v534_v29 = vld [vmem:[%s2887_s19 + $0x7a8] sm:$0xff]  ;;  %v1301_v34 = vadd.f32 %v1045_v27, %v533_v26  ;;  %v555_v26 = vld [vmem:[%s2887_s19 + $0x850] sm:$0xff]  ;;  %v2374_v27 = vld [vmem:[%s2895_s29 + $0x40] sm:$0xff] }
 0x144   : > { %1791 = vst [vmem:[%s2910_s21 + $0x6f0] sm:$0xff] %v1279_v32  ;;  %v535_v32 = vld [vmem:[%s2887_s19 + $0x7b0] sm:$0xff]  ;;  %v1302_v37 = vadd.f32 %v1046_v30, %v534_v29  ;;  %v556_v29 = vld [vmem:[%s2887_s19 + $0x858] sm:$0xff]  ;;  %v2375_v30 = vld [vmem:[%s2895_s29 + $0x48] sm:$0xff] }
 0x145   : > { %1792 = vst [vmem:[%s2910_s21 + $0x6f8] sm:$0xff] %v1280_v35  ;;  %v536_v35 = vld [vmem:[%s2887_s19 + $0x7b8] sm:$0xff]  ;;  %v1303_v40 = vadd.f32 %v1047_v33, %v535_v32  ;;  %v557_v32 = vld [vmem:[%s2887_s19 + $0x860] sm:$0xff]  ;;  %v2376_v33 = vld [vmem:[%s2895_s29 + $0x50] sm:$0xff] }
 0x146   : > { %1793 = vst [vmem:[%s2910_s21 + $0x700] sm:$0xff] %v1281_v38  ;;  %v537_v38 = vld [vmem:[%s2887_s19 + $0x7c0] sm:$0xff]  ;;  %v1304_v43 = vadd.f32 %v1048_v36, %v536_v35  ;;  %v558_v35 = vld [vmem:[%s2887_s19 + $0x868] sm:$0xff]  ;;  %v2377_v36 = vld [vmem:[%s2895_s29 + $0x58] sm:$0xff] }
 0x147   : > { %1794 = vst [vmem:[%s2910_s21 + $0x708] sm:$0xff] %v1282_v41  ;;  %v538_v41 = vld [vmem:[%s2887_s19 + $0x7c8] sm:$0xff]  ;;  %v1305_v46 = vadd.f32 %v1049_v39, %v537_v38  ;;  %v559_v38 = vld [vmem:[%s2887_s19 + $0x870] sm:$0xff]  ;;  %v2378_v39 = vld [vmem:[%s2895_s29 + $0x60] sm:$0xff] }
 0x148   : > { %1795 = vst [vmem:[%s2910_s21 + $0x710] sm:$0xff] %v1283_v44  ;;  %v539_v44 = vld [vmem:[%s2887_s19 + $0x7d0] sm:$0xff]  ;;  %v1306_v49 = vadd.f32 %v1050_v42, %v538_v41  ;;  %v560_v41 = vld [vmem:[%s2887_s19 + $0x878] sm:$0xff]  ;;  %v2379_v42 = vld [vmem:[%s2895_s29 + $0x68] sm:$0xff] }
 0x149   : > { %1796 = vst [vmem:[%s2910_s21 + $0x718] sm:$0xff] %v1284_v47  ;;  %v540_v47 = vld [vmem:[%s2887_s19 + $0x7d8] sm:$0xff]  ;;  %v1307_v52 = vadd.f32 %v1051_v45, %v539_v44  ;;  %v561_v44 = vld [vmem:[%s2887_s19 + $0x880] sm:$0xff]  ;;  %v2380_v45 = vld [vmem:[%s2895_s29 + $0x70] sm:$0xff] }
 0x14a   : > { %1797 = vst [vmem:[%s2910_s21 + $0x720] sm:$0xff] %v1285_v50  ;;  %v541_v50 = vld [vmem:[%s2887_s19 + $0x7e0] sm:$0xff]  ;;  %v1308_v55 = vadd.f32 %v1052_v48, %v540_v47  ;;  %v562_v47 = vld [vmem:[%s2887_s19 + $0x888] sm:$0xff]  ;;  %v2381_v48 = vld [vmem:[%s2895_s29 + $0x78] sm:$0xff] }
 0x14b   : > { %1798 = vst [vmem:[%s2910_s21 + $0x728] sm:$0xff] %v1286_v53  ;;  %v542_v53 = vld [vmem:[%s2887_s19 + $0x7e8] sm:$0xff]  ;;  %v1309_v58 = vadd.f32 %v1053_v51, %v541_v50  ;;  %v563_v50 = vld [vmem:[%s2887_s19 + $0x890] sm:$0xff]  ;;  %v2382_v51 = vld [vmem:[%s2895_s29 + $0x80] sm:$0xff] }
 0x14c   : > { %1799 = vst [vmem:[%s2910_s21 + $0x730] sm:$0xff] %v1287_v56  ;;  %v543_v56 = vld [vmem:[%s2887_s19 + $0x7f0] sm:$0xff]  ;;  %v1310_v61 = vadd.f32 %v1054_v54, %v542_v53  ;;  %v564_v53 = vld [vmem:[%s2887_s19 + $0x898] sm:$0xff]  ;;  %v2383_v54 = vld [vmem:[%s2895_s29 + $0x88] sm:$0xff] }
 0x14d   : > { %1800 = vst [vmem:[%s2910_s21 + $0x738] sm:$0xff] %v1288_v59  ;;  %v544_v59 = vld [vmem:[%s2887_s19 + $0x7f8] sm:$0xff]  ;;  %v1311_v63 = vadd.f32 %v1055_v57, %v543_v56  ;;  %v565_v56 = vld [vmem:[%s2887_s19 + $0x8a0] sm:$0xff]  ;;  %v2384_v57 = vld [vmem:[%s2895_s29 + $0x90] sm:$0xff] }
 0x14e   : > { %1801 = vst [vmem:[%s2910_s21 + $0x740] sm:$0xff] %v1289_v62  ;;  %v545_v62 = vld [vmem:[%s2887_s19 + $0x800] sm:$0xff] }
 0x14f   : > { %1802 = vst [vmem:[%s2910_s21 + $0x748] sm:$0xff] %v1290_v1  ;;  %v1312_v1 = vadd.f32 %v1056_v60, %v544_v59  ;;  %v566_v59 = vld [vmem:[%s2887_s19 + $0x8a8] sm:$0xff]  ;;  %v2385_v60 = vld [vmem:[%s2895_s29 + $0x98] sm:$0xff] }
 0x150   : > { %1803 = vst [vmem:[%s2910_s21 + $0x750] sm:$0xff] %v1291_v4  ;;  %v1313_v4 = vadd.f32 %v2366_v3, %v545_v62  ;;  %v567_v62 = vld [vmem:[%s2887_s19 + $0x8b0] sm:$0xff] }
 0x151   : > { %1804 = vst [vmem:[%s2910_s21 + $0x758] sm:$0xff] %v1292_v7  ;;  %v1314_v7 = vadd.f32 %v2367_v6, %v546_v0 }
 0x152   : > { %1805 = vst [vmem:[%s2910_s21 + $0x760] sm:$0xff] %v1293_v10  ;;  %v1315_v10 = vadd.f32 %v2368_v9, %v547_v2  ;;  %v2387_v2 = vld [vmem:[%s2895_s29 + $0xa8] sm:$0xff] }
 0x153   : > { %1806 = vst [vmem:[%s2910_s21 + $0x768] sm:$0xff] %v1294_v13  ;;  %v1316_v13 = vadd.f32 %v2369_v12, %v548_v5  ;;  %v1334_v3 = vadd.f32 %v2387_v2, %v566_v59  ;;  %v2388_v5 = vld [vmem:[%s2895_s29 + $0xb0] sm:$0xff]  ;;  %v2406_v59 = vld [vmem:[%s2895_s29 + $0x140] sm:$0xff] }
 0x154   : > { %1807 = vst [vmem:[%s2910_s21 + $0x770] sm:$0xff] %v1295_v16  ;;  %v1317_v16 = vadd.f32 %v2370_v15, %v549_v8  ;;  %v1335_v6 = vadd.f32 %v2388_v5, %v567_v62  ;;  %v2389_v8 = vld [vmem:[%s2895_s29 + $0xb8] sm:$0xff]  ;;  %v2407_v62 = vld [vmem:[%s2895_s29 + $0x148] sm:$0xff] }
 0x155   : > { %1808 = vst [vmem:[%s2910_s21 + $0x778] sm:$0xff] %v1296_v19  ;;  %v1318_v19 = vadd.f32 %v2371_v18, %v550_v11  ;;  %v2390_v11 = vld [vmem:[%s2895_s29 + $0xc0] sm:$0xff] }
 0x156   : > { %1809 = vst [vmem:[%s2910_s21 + $0x780] sm:$0xff] %v1297_v22  ;;  %v1319_v22 = vadd.f32 %v2372_v21, %v551_v14  ;;  %v2391_v14 = vld [vmem:[%s2895_s29 + $0xc8] sm:$0xff] }
 0x157   : > { %1810 = vst [vmem:[%s2910_s21 + $0x788] sm:$0xff] %v1298_v25  ;;  %v1320_v25 = vadd.f32 %v2373_v24, %v552_v17  ;;  %v2392_v17 = vld [vmem:[%s2895_s29 + $0xd0] sm:$0xff] }
 0x158   : > { %1811 = vst [vmem:[%s2910_s21 + $0x790] sm:$0xff] %v1299_v28  ;;  %v1321_v28 = vadd.f32 %v2374_v27, %v553_v20  ;;  %v2393_v20 = vld [vmem:[%s2895_s29 + $0xd8] sm:$0xff] }
 0x159   : > { %1812 = vst [vmem:[%s2910_s21 + $0x798] sm:$0xff] %v1300_v31  ;;  %v1322_v31 = vadd.f32 %v2375_v30, %v554_v23  ;;  %v2394_v23 = vld [vmem:[%s2895_s29 + $0xe0] sm:$0xff] }
 0x15a   : > { %1813 = vst [vmem:[%s2910_s21 + $0x7a0] sm:$0xff] %v1301_v34  ;;  %v1323_v34 = vadd.f32 %v2376_v33, %v555_v26  ;;  %v2395_v26 = vld [vmem:[%s2895_s29 + $0xe8] sm:$0xff] }
 0x15b   : > { %1814 = vst [vmem:[%s2910_s21 + $0x7a8] sm:$0xff] %v1302_v37  ;;  %v1324_v37 = vadd.f32 %v2377_v36, %v556_v29  ;;  %v2396_v29 = vld [vmem:[%s2895_s29 + $0xf0] sm:$0xff] }
 0x15c   : > { %1815 = vst [vmem:[%s2910_s21 + $0x7b0] sm:$0xff] %v1303_v40  ;;  %v1325_v40 = vadd.f32 %v2378_v39, %v557_v32  ;;  %v2397_v32 = vld [vmem:[%s2895_s29 + $0xf8] sm:$0xff] }
 0x15d   : > { %1816 = vst [vmem:[%s2910_s21 + $0x7b8] sm:$0xff] %v1304_v43  ;;  %v1326_v43 = vadd.f32 %v2379_v42, %v558_v35  ;;  %v2398_v35 = vld [vmem:[%s2895_s29 + $0x100] sm:$0xff] }
 0x15e   : > { %1817 = vst [vmem:[%s2910_s21 + $0x7c0] sm:$0xff] %v1305_v46  ;;  %v1327_v46 = vadd.f32 %v2380_v45, %v559_v38  ;;  %v2399_v38 = vld [vmem:[%s2895_s29 + $0x108] sm:$0xff] }
 0x15f   : > { %1818 = vst [vmem:[%s2910_s21 + $0x7c8] sm:$0xff] %v1306_v49  ;;  %v1328_v49 = vadd.f32 %v2381_v48, %v560_v41  ;;  %v2400_v41 = vld [vmem:[%s2895_s29 + $0x110] sm:$0xff] }
 0x160   : > { %1819 = vst [vmem:[%s2910_s21 + $0x7d0] sm:$0xff] %v1307_v52  ;;  %v1329_v52 = vadd.f32 %v2382_v51, %v561_v44  ;;  %v2401_v44 = vld [vmem:[%s2895_s29 + $0x118] sm:$0xff] }
 0x161   : > { %1820 = vst [vmem:[%s2910_s21 + $0x7d8] sm:$0xff] %v1308_v55  ;;  %v1330_v55 = vadd.f32 %v2383_v54, %v562_v47  ;;  %v2402_v47 = vld [vmem:[%s2895_s29 + $0x120] sm:$0xff] }
 0x162   : > { %1821 = vst [vmem:[%s2910_s21 + $0x7e0] sm:$0xff] %v1309_v58  ;;  %v1331_v58 = vadd.f32 %v2384_v57, %v563_v50  ;;  %v2403_v50 = vld [vmem:[%s2895_s29 + $0x128] sm:$0xff] }
 0x163   : > { %1822 = vst [vmem:[%s2910_s21 + $0x7e8] sm:$0xff] %v1310_v61  ;;  %v1332_v61 = vadd.f32 %v2385_v60, %v564_v53  ;;  %v2404_v53 = vld [vmem:[%s2895_s29 + $0x130] sm:$0xff] }
 0x164   : > { %1823 = vst [vmem:[%s2910_s21 + $0x7f0] sm:$0xff] %v1311_v63  ;;  %v2386_v63 = vld [vmem:[%s2895_s29 + $0xa0] sm:$0xff] }
 0x165   : > { %1824 = vst [vmem:[%s2910_s21 + $0x7f8] sm:$0xff] %v1312_v1  ;;  %v1333_v0 = vadd.f32 %v2386_v63, %v565_v56  ;;  %v568_v1 = vld [vmem:[%s2887_s19 + $0x8b8] sm:$0xff] }
 0x166   : > { %1825 = vst [vmem:[%s2910_s21 + $0x800] sm:$0xff] %v1313_v4  ;;  %v569_v4 = vld [vmem:[%s2887_s19 + $0x8c0] sm:$0xff]  ;;  %v1336_v9 = vadd.f32 %v2389_v8, %v568_v1  ;;  %v2405_v56 = vld [vmem:[%s2895_s29 + $0x138] sm:$0xff]  ;;  %v2408_v1 = vld [vmem:[%s2895_s29 + $0x150] sm:$0xff] }
 0x167   : > { %1826 = vst [vmem:[%s2910_s21 + $0x808] sm:$0xff] %v1314_v7  ;;  %v570_v7 = vld [vmem:[%s2887_s19 + $0x8c8] sm:$0xff]  ;;  %v1337_v12 = vadd.f32 %v2390_v11, %v569_v4  ;;  %v2409_v4 = vld [vmem:[%s2895_s29 + $0x158] sm:$0xff] }
 0x168   : > { %1827 = vst [vmem:[%s2910_s21 + $0x810] sm:$0xff] %v1315_v10  ;;  %v571_v10 = vld [vmem:[%s2887_s19 + $0x8d0] sm:$0xff]  ;;  %v1338_v15 = vadd.f32 %v2391_v14, %v570_v7  ;;  %v2410_v7 = vld [vmem:[%s2895_s29 + $0x160] sm:$0xff] }
 0x169   : > { %1828 = vst [vmem:[%s2910_s21 + $0x818] sm:$0xff] %v1316_v13  ;;  %v572_v13 = vld [vmem:[%s2887_s19 + $0x8d8] sm:$0xff]  ;;  %v1339_v18 = vadd.f32 %v2392_v17, %v571_v10  ;;  %v2411_v10 = vld [vmem:[%s2895_s29 + $0x168] sm:$0xff] }
 0x16a   : > { %1829 = vst [vmem:[%s2910_s21 + $0x820] sm:$0xff] %v1317_v16  ;;  %v573_v16 = vld [vmem:[%s2887_s19 + $0x8e0] sm:$0xff]  ;;  %v1340_v21 = vadd.f32 %v2393_v20, %v572_v13  ;;  %v2412_v13 = vld [vmem:[%s2895_s29 + $0x170] sm:$0xff] }
 0x16b   : > { %1830 = vst [vmem:[%s2910_s21 + $0x828] sm:$0xff] %v1318_v19  ;;  %v574_v19 = vld [vmem:[%s2887_s19 + $0x8e8] sm:$0xff]  ;;  %v1341_v24 = vadd.f32 %v2394_v23, %v573_v16  ;;  %v2413_v16 = vld [vmem:[%s2895_s29 + $0x178] sm:$0xff] }
 0x16c   : > { %1831 = vst [vmem:[%s2910_s21 + $0x830] sm:$0xff] %v1319_v22  ;;  %v575_v22 = vld [vmem:[%s2887_s19 + $0x8f0] sm:$0xff]  ;;  %v1342_v27 = vadd.f32 %v2395_v26, %v574_v19  ;;  %v2414_v19 = vld [vmem:[%s2895_s29 + $0x180] sm:$0xff] }
 0x16d   : > { %1832 = vst [vmem:[%s2910_s21 + $0x838] sm:$0xff] %v1320_v25  ;;  %v576_v25 = vld [vmem:[%s2887_s19 + $0x8f8] sm:$0xff]  ;;  %v1343_v30 = vadd.f32 %v2396_v29, %v575_v22  ;;  %v2415_v22 = vld [vmem:[%s2895_s29 + $0x188] sm:$0xff] }
 0x16e   : > { %1833 = vst [vmem:[%s2910_s21 + $0x840] sm:$0xff] %v1321_v28  ;;  %v577_v28 = vld [vmem:[%s2887_s19 + $0x900] sm:$0xff]  ;;  %v1344_v33 = vadd.f32 %v2397_v32, %v576_v25  ;;  %v2416_v25 = vld [vmem:[%s2895_s29 + $0x190] sm:$0xff] }
 0x16f   : > { %1834 = vst [vmem:[%s2910_s21 + $0x848] sm:$0xff] %v1322_v31  ;;  %v578_v31 = vld [vmem:[%s2887_s19 + $0x908] sm:$0xff]  ;;  %v1345_v36 = vadd.f32 %v2398_v35, %v577_v28  ;;  %v2417_v28 = vld [vmem:[%s2895_s29 + $0x198] sm:$0xff] }
 0x170   : > { %1835 = vst [vmem:[%s2910_s21 + $0x850] sm:$0xff] %v1323_v34  ;;  %v579_v34 = vld [vmem:[%s2887_s19 + $0x910] sm:$0xff]  ;;  %v1346_v39 = vadd.f32 %v2399_v38, %v578_v31  ;;  %v2418_v31 = vld [vmem:[%s2895_s29 + $0x1a0] sm:$0xff] }
 0x171   : > { %1836 = vst [vmem:[%s2910_s21 + $0x858] sm:$0xff] %v1324_v37  ;;  %v580_v37 = vld [vmem:[%s2887_s19 + $0x918] sm:$0xff]  ;;  %v1347_v42 = vadd.f32 %v2400_v41, %v579_v34  ;;  %v2419_v34 = vld [vmem:[%s2895_s29 + $0x1a8] sm:$0xff] }
 0x172   : > { %1837 = vst [vmem:[%s2910_s21 + $0x860] sm:$0xff] %v1325_v40  ;;  %v581_v40 = vld [vmem:[%s2887_s19 + $0x920] sm:$0xff]  ;;  %v1348_v45 = vadd.f32 %v2401_v44, %v580_v37  ;;  %v2420_v37 = vld [vmem:[%s2895_s29 + $0x1b0] sm:$0xff] }
 0x173   : > { %1838 = vst [vmem:[%s2910_s21 + $0x868] sm:$0xff] %v1326_v43  ;;  %v582_v43 = vld [vmem:[%s2887_s19 + $0x928] sm:$0xff]  ;;  %v1349_v48 = vadd.f32 %v2402_v47, %v581_v40  ;;  %v2421_v40 = vld [vmem:[%s2895_s29 + $0x1b8] sm:$0xff] }
 0x174   : > { %1839 = vst [vmem:[%s2910_s21 + $0x870] sm:$0xff] %v1327_v46  ;;  %v583_v46 = vld [vmem:[%s2887_s19 + $0x930] sm:$0xff]  ;;  %v1350_v51 = vadd.f32 %v2403_v50, %v582_v43  ;;  %v2422_v43 = vld [vmem:[%s2895_s29 + $0x1c0] sm:$0xff] }
 0x175   : > { %1840 = vst [vmem:[%s2910_s21 + $0x878] sm:$0xff] %v1328_v49  ;;  %v584_v49 = vld [vmem:[%s2887_s19 + $0x938] sm:$0xff]  ;;  %v1351_v54 = vadd.f32 %v2404_v53, %v583_v46  ;;  %v2423_v46 = vld [vmem:[%s2895_s29 + $0x1c8] sm:$0xff] }
 0x176   : > { %1841 = vst [vmem:[%s2910_s21 + $0x880] sm:$0xff] %v1329_v52  ;;  %v585_v52 = vld [vmem:[%s2887_s19 + $0x940] sm:$0xff]  ;;  %v1352_v57 = vadd.f32 %v2405_v56, %v584_v49  ;;  %v2424_v49 = vld [vmem:[%s2895_s29 + $0x1d0] sm:$0xff] }
 0x177   : > { %1842 = vst [vmem:[%s2910_s21 + $0x888] sm:$0xff] %v1330_v55  ;;  %v586_v55 = vld [vmem:[%s2887_s19 + $0x948] sm:$0xff]  ;;  %v1353_v60 = vadd.f32 %v2406_v59, %v585_v52  ;;  %v2425_v52 = vld [vmem:[%s2895_s29 + $0x1d8] sm:$0xff] }
 0x178   : > { %1843 = vst [vmem:[%s2910_s21 + $0x890] sm:$0xff] %v1331_v58  ;;  %v587_v58 = vld [vmem:[%s2887_s19 + $0x950] sm:$0xff]  ;;  %v1354_v63 = vadd.f32 %v2407_v62, %v586_v55  ;;  %v2426_v55 = vld [vmem:[%s2895_s29 + $0x1e0] sm:$0xff] }
 0x179   : > { %1844 = vst [vmem:[%s2910_s21 + $0x898] sm:$0xff] %v1332_v61  ;;  %v588_v61 = vld [vmem:[%s2887_s19 + $0x958] sm:$0xff]  ;;  %v1355_v2 = vadd.f32 %v2408_v1, %v587_v58  ;;  %v2427_v58 = vld [vmem:[%s2895_s29 + $0x1e8] sm:$0xff] }
 0x17a   : > { %1845 = vst [vmem:[%s2910_s21 + $0x8a0] sm:$0xff] %v1333_v0  ;;  %v589_v0 = vld [vmem:[%s2887_s19 + $0x960] sm:$0xff]  ;;  %v1356_v5 = vadd.f32 %v2409_v4, %v588_v61  ;;  %v2428_v61 = vld [vmem:[%s2895_s29 + $0x1f0] sm:$0xff] }
 0x17b   : > { %1846 = vst [vmem:[%s2910_s21 + $0x8a8] sm:$0xff] %v1334_v3  ;;  %v590_v3 = vld [vmem:[%s2887_s19 + $0x968] sm:$0xff]  ;;  %v1357_v8 = vadd.f32 %v2410_v7, %v589_v0  ;;  %v2429_v0 = vld [vmem:[%s2895_s29 + $0x1f8] sm:$0xff] }
 0x17c   : > { %1847 = vst [vmem:[%s2910_s21 + $0x8b0] sm:$0xff] %v1335_v6  ;;  %v591_v6 = vld [vmem:[%s2887_s19 + $0x970] sm:$0xff]  ;;  %v1358_v11 = vadd.f32 %v2411_v10, %v590_v3  ;;  %v2430_v3 = vld [vmem:[%s2895_s29 + $0x200] sm:$0xff] }
 0x17d   : > { %1848 = vst [vmem:[%s2910_s21 + $0x8b8] sm:$0xff] %v1336_v9  ;;  %v592_v9 = vld [vmem:[%s2887_s19 + $0x978] sm:$0xff]  ;;  %v1359_v14 = vadd.f32 %v2412_v13, %v591_v6  ;;  %v2431_v6 = vld [vmem:[%s2895_s29 + $0x208] sm:$0xff] }
 0x17e   : > { %1849 = vst [vmem:[%s2910_s21 + $0x8c0] sm:$0xff] %v1337_v12  ;;  %v593_v12 = vld [vmem:[%s2887_s19 + $0x980] sm:$0xff]  ;;  %v1360_v17 = vadd.f32 %v2413_v16, %v592_v9  ;;  %v2432_v9 = vld [vmem:[%s2895_s29 + $0x210] sm:$0xff] }
 0x17f   : > { %1850 = vst [vmem:[%s2910_s21 + $0x8c8] sm:$0xff] %v1338_v15  ;;  %v594_v15 = vld [vmem:[%s2887_s19 + $0x988] sm:$0xff]  ;;  %v1361_v20 = vadd.f32 %v2414_v19, %v593_v12  ;;  %v2433_v12 = vld [vmem:[%s2895_s29 + $0x218] sm:$0xff] }
 0x180   : > { %1851 = vst [vmem:[%s2910_s21 + $0x8d0] sm:$0xff] %v1339_v18  ;;  %v595_v18 = vld [vmem:[%s2887_s19 + $0x990] sm:$0xff]  ;;  %v1362_v23 = vadd.f32 %v2415_v22, %v594_v15  ;;  %v2434_v15 = vld [vmem:[%s2895_s29 + $0x220] sm:$0xff] }
 0x181   : > { %1852 = vst [vmem:[%s2910_s21 + $0x8d8] sm:$0xff] %v1340_v21  ;;  %v596_v21 = vld [vmem:[%s2887_s19 + $0x998] sm:$0xff]  ;;  %v1363_v26 = vadd.f32 %v2416_v25, %v595_v18  ;;  %v2435_v18 = vld [vmem:[%s2895_s29 + $0x228] sm:$0xff] }
 0x182   : > { %1853 = vst [vmem:[%s2910_s21 + $0x8e0] sm:$0xff] %v1341_v24  ;;  %v597_v24 = vld [vmem:[%s2887_s19 + $0x9a0] sm:$0xff]  ;;  %v1364_v29 = vadd.f32 %v2417_v28, %v596_v21  ;;  %v2436_v21 = vld [vmem:[%s2895_s29 + $0x230] sm:$0xff] }
 0x183   : > { %1854 = vst [vmem:[%s2910_s21 + $0x8e8] sm:$0xff] %v1342_v27  ;;  %v598_v27 = vld [vmem:[%s2887_s19 + $0x9a8] sm:$0xff]  ;;  %v1365_v32 = vadd.f32 %v2418_v31, %v597_v24  ;;  %v2437_v24 = vld [vmem:[%s2895_s29 + $0x238] sm:$0xff] }
 0x184   : > { %1855 = vst [vmem:[%s2910_s21 + $0x8f0] sm:$0xff] %v1343_v30  ;;  %v599_v30 = vld [vmem:[%s2887_s19 + $0x9b0] sm:$0xff]  ;;  %v1366_v35 = vadd.f32 %v2419_v34, %v598_v27  ;;  %v2438_v27 = vld [vmem:[%s2895_s29 + $0x240] sm:$0xff] }
 0x185   : > { %1856 = vst [vmem:[%s2910_s21 + $0x8f8] sm:$0xff] %v1344_v33  ;;  %v600_v33 = vld [vmem:[%s2887_s19 + $0x9b8] sm:$0xff]  ;;  %v1367_v38 = vadd.f32 %v2420_v37, %v599_v30  ;;  %v2439_v30 = vld [vmem:[%s2895_s29 + $0x248] sm:$0xff] }
 0x186   : > { %1857 = vst [vmem:[%s2910_s21 + $0x900] sm:$0xff] %v1345_v36  ;;  %v601_v36 = vld [vmem:[%s2887_s19 + $0x9c0] sm:$0xff]  ;;  %v1368_v41 = vadd.f32 %v2421_v40, %v600_v33  ;;  %v2440_v33 = vld [vmem:[%s2895_s29 + $0x250] sm:$0xff] }
 0x187   : > { %1858 = vst [vmem:[%s2910_s21 + $0x908] sm:$0xff] %v1346_v39  ;;  %v602_v39 = vld [vmem:[%s2887_s19 + $0x9c8] sm:$0xff]  ;;  %v1369_v44 = vadd.f32 %v2422_v43, %v601_v36  ;;  %v2441_v36 = vld [vmem:[%s2895_s29 + $0x258] sm:$0xff] }
 0x188   : > { %1859 = vst [vmem:[%s2910_s21 + $0x910] sm:$0xff] %v1347_v42  ;;  %v603_v42 = vld [vmem:[%s2887_s19 + $0x9d0] sm:$0xff]  ;;  %v1370_v47 = vadd.f32 %v2423_v46, %v602_v39  ;;  %v2442_v39 = vld [vmem:[%s2895_s29 + $0x260] sm:$0xff] }
 0x189   : > { %1860 = vst [vmem:[%s2910_s21 + $0x918] sm:$0xff] %v1348_v45  ;;  %v604_v45 = vld [vmem:[%s2887_s19 + $0x9d8] sm:$0xff]  ;;  %v1371_v50 = vadd.f32 %v2424_v49, %v603_v42  ;;  %v2443_v42 = vld [vmem:[%s2895_s29 + $0x268] sm:$0xff] }
 0x18a   : > { %1861 = vst [vmem:[%s2910_s21 + $0x920] sm:$0xff] %v1349_v48  ;;  %v605_v48 = vld [vmem:[%s2887_s19 + $0x9e0] sm:$0xff]  ;;  %v1372_v53 = vadd.f32 %v2425_v52, %v604_v45  ;;  %v2444_v45 = vld [vmem:[%s2895_s29 + $0x270] sm:$0xff] }
 0x18b   : > { %1862 = vst [vmem:[%s2910_s21 + $0x928] sm:$0xff] %v1350_v51  ;;  %v606_v51 = vld [vmem:[%s2887_s19 + $0x9e8] sm:$0xff]  ;;  %v1373_v56 = vadd.f32 %v2426_v55, %v605_v48  ;;  %v2445_v48 = vld [vmem:[%s2895_s29 + $0x278] sm:$0xff] }
 0x18c   : > { %1863 = vst [vmem:[%s2910_s21 + $0x930] sm:$0xff] %v1351_v54  ;;  %v607_v54 = vld [vmem:[%s2887_s19 + $0x9f0] sm:$0xff]  ;;  %v1374_v59 = vadd.f32 %v2427_v58, %v606_v51  ;;  %v2446_v51 = vld [vmem:[%s2895_s29 + $0x280] sm:$0xff] }
 0x18d   : > { %1864 = vst [vmem:[%s2910_s21 + $0x938] sm:$0xff] %v1352_v57  ;;  %v608_v57 = vld [vmem:[%s2887_s19 + $0x9f8] sm:$0xff]  ;;  %v1375_v62 = vadd.f32 %v2428_v61, %v607_v54  ;;  %v2447_v54 = vld [vmem:[%s2895_s29 + $0x288] sm:$0xff] }
 0x18e   : > { %1865 = vst [vmem:[%s2910_s21 + $0x940] sm:$0xff] %v1353_v60  ;;  %v609_v60 = vld [vmem:[%s2887_s19 + $0xa00] sm:$0xff]  ;;  %v1376_v1 = vadd.f32 %v2429_v0, %v608_v57  ;;  %v2448_v57 = vld [vmem:[%s2895_s29 + $0x290] sm:$0xff] }
 0x18f   : > { %1866 = vst [vmem:[%s2910_s21 + $0x948] sm:$0xff] %v1354_v63  ;;  %v610_v63 = vld [vmem:[%s2887_s19 + $0xa08] sm:$0xff]  ;;  %v1377_v4 = vadd.f32 %v2430_v3, %v609_v60  ;;  %v2449_v60 = vld [vmem:[%s2895_s29 + $0x298] sm:$0xff] }
 0x190   : > { %1867 = vst [vmem:[%s2910_s21 + $0x950] sm:$0xff] %v1355_v2  ;;  %v611_v2 = vld [vmem:[%s2887_s19 + $0xa10] sm:$0xff]  ;;  %v1378_v7 = vadd.f32 %v2431_v6, %v610_v63  ;;  %v2450_v63 = vld [vmem:[%s2895_s29 + $0x2a0] sm:$0xff] }
 0x191   : > { %1868 = vst [vmem:[%s2910_s21 + $0x958] sm:$0xff] %v1356_v5  ;;  %v612_v5 = vld [vmem:[%s2887_s19 + $0xa18] sm:$0xff]  ;;  %v1379_v10 = vadd.f32 %v2432_v9, %v611_v2  ;;  %v2451_v2 = vld [vmem:[%s2895_s29 + $0x2a8] sm:$0xff] }
 0x192   : > { %1869 = vst [vmem:[%s2910_s21 + $0x960] sm:$0xff] %v1357_v8  ;;  %v613_v8 = vld [vmem:[%s2887_s19 + $0xa20] sm:$0xff]  ;;  %v1380_v13 = vadd.f32 %v2433_v12, %v612_v5  ;;  %v2452_v5 = vld [vmem:[%s2895_s29 + $0x2b0] sm:$0xff] }
 0x193   : > { %1870 = vst [vmem:[%s2910_s21 + $0x968] sm:$0xff] %v1358_v11  ;;  %v614_v11 = vld [vmem:[%s2887_s19 + $0xa28] sm:$0xff]  ;;  %v1381_v16 = vadd.f32 %v2434_v15, %v613_v8  ;;  %v2453_v8 = vld [vmem:[%s2895_s29 + $0x2b8] sm:$0xff] }
 0x194   : > { %1871 = vst [vmem:[%s2910_s21 + $0x970] sm:$0xff] %v1359_v14  ;;  %v615_v14 = vld [vmem:[%s2887_s19 + $0xa30] sm:$0xff]  ;;  %v1382_v19 = vadd.f32 %v2435_v18, %v614_v11  ;;  %v2454_v11 = vld [vmem:[%s2895_s29 + $0x2c0] sm:$0xff] }
 0x195   : > { %1872 = vst [vmem:[%s2910_s21 + $0x978] sm:$0xff] %v1360_v17  ;;  %v616_v17 = vld [vmem:[%s2887_s19 + $0xa38] sm:$0xff]  ;;  %v1383_v22 = vadd.f32 %v2436_v21, %v615_v14  ;;  %v2455_v14 = vld [vmem:[%s2895_s29 + $0x2c8] sm:$0xff] }
 0x196   : > { %1873 = vst [vmem:[%s2910_s21 + $0x980] sm:$0xff] %v1361_v20  ;;  %v617_v20 = vld [vmem:[%s2887_s19 + $0xa40] sm:$0xff]  ;;  %v1384_v25 = vadd.f32 %v2437_v24, %v616_v17  ;;  %v2456_v17 = vld [vmem:[%s2895_s29 + $0x2d0] sm:$0xff] }
 0x197   : > { %1874 = vst [vmem:[%s2910_s21 + $0x988] sm:$0xff] %v1362_v23  ;;  %v618_v23 = vld [vmem:[%s2887_s19 + $0xa48] sm:$0xff]  ;;  %v1385_v28 = vadd.f32 %v2438_v27, %v617_v20  ;;  %v2457_v20 = vld [vmem:[%s2895_s29 + $0x2d8] sm:$0xff] }
 0x198   : > { %1875 = vst [vmem:[%s2910_s21 + $0x990] sm:$0xff] %v1363_v26  ;;  %v619_v26 = vld [vmem:[%s2887_s19 + $0xa50] sm:$0xff]  ;;  %v1386_v31 = vadd.f32 %v2439_v30, %v618_v23  ;;  %v2458_v23 = vld [vmem:[%s2895_s29 + $0x2e0] sm:$0xff] }
 0x199   : > { %1876 = vst [vmem:[%s2910_s21 + $0x998] sm:$0xff] %v1364_v29  ;;  %v620_v29 = vld [vmem:[%s2887_s19 + $0xa58] sm:$0xff]  ;;  %v1387_v34 = vadd.f32 %v2440_v33, %v619_v26  ;;  %v2459_v26 = vld [vmem:[%s2895_s29 + $0x2e8] sm:$0xff] }
 0x19a   : > { %1877 = vst [vmem:[%s2910_s21 + $0x9a0] sm:$0xff] %v1365_v32  ;;  %v621_v32 = vld [vmem:[%s2887_s19 + $0xa60] sm:$0xff]  ;;  %v1388_v37 = vadd.f32 %v2441_v36, %v620_v29  ;;  %v2460_v29 = vld [vmem:[%s2895_s29 + $0x2f0] sm:$0xff] }
 0x19b   : > { %1878 = vst [vmem:[%s2910_s21 + $0x9a8] sm:$0xff] %v1366_v35  ;;  %v622_v35 = vld [vmem:[%s2887_s19 + $0xa68] sm:$0xff]  ;;  %v1389_v40 = vadd.f32 %v2442_v39, %v621_v32  ;;  %v2461_v32 = vld [vmem:[%s2895_s29 + $0x2f8] sm:$0xff] }
 0x19c   : > { %1879 = vst [vmem:[%s2910_s21 + $0x9b0] sm:$0xff] %v1367_v38  ;;  %v623_v38 = vld [vmem:[%s2887_s19 + $0xa70] sm:$0xff]  ;;  %v1390_v43 = vadd.f32 %v2443_v42, %v622_v35  ;;  %v2462_v35 = vld [vmem:[%s2895_s29 + $0x300] sm:$0xff] }
 0x19d   : > { %1880 = vst [vmem:[%s2910_s21 + $0x9b8] sm:$0xff] %v1368_v41  ;;  %v624_v41 = vld [vmem:[%s2887_s19 + $0xa78] sm:$0xff]  ;;  %v1391_v46 = vadd.f32 %v2444_v45, %v623_v38  ;;  %v2463_v38 = vld [vmem:[%s2895_s29 + $0x308] sm:$0xff] }
 0x19e   : > { %1881 = vst [vmem:[%s2910_s21 + $0x9c0] sm:$0xff] %v1369_v44  ;;  %v625_v44 = vld [vmem:[%s2887_s19 + $0xa80] sm:$0xff]  ;;  %v1392_v49 = vadd.f32 %v2445_v48, %v624_v41  ;;  %v2464_v41 = vld [vmem:[%s2895_s29 + $0x310] sm:$0xff] }
 0x19f   : > { %1882 = vst [vmem:[%s2910_s21 + $0x9c8] sm:$0xff] %v1370_v47  ;;  %v626_v47 = vld [vmem:[%s2887_s19 + $0xa88] sm:$0xff]  ;;  %v1393_v52 = vadd.f32 %v2446_v51, %v625_v44  ;;  %v2465_v44 = vld [vmem:[%s2895_s29 + $0x318] sm:$0xff] }
 0x1a0   : > { %1883 = vst [vmem:[%s2910_s21 + $0x9d0] sm:$0xff] %v1371_v50  ;;  %v627_v50 = vld [vmem:[%s2887_s19 + $0xa90] sm:$0xff]  ;;  %v1394_v55 = vadd.f32 %v2447_v54, %v626_v47  ;;  %v2466_v47 = vld [vmem:[%s2895_s29 + $0x320] sm:$0xff] }
 0x1a1   : > { %1884 = vst [vmem:[%s2910_s21 + $0x9d8] sm:$0xff] %v1372_v53  ;;  %v628_v53 = vld [vmem:[%s2887_s19 + $0xa98] sm:$0xff]  ;;  %v1395_v58 = vadd.f32 %v2448_v57, %v627_v50  ;;  %v2467_v50 = vld [vmem:[%s2895_s29 + $0x328] sm:$0xff] }
 0x1a2   : > { %1885 = vst [vmem:[%s2910_s21 + $0x9e0] sm:$0xff] %v1373_v56  ;;  %v629_v56 = vld [vmem:[%s2887_s19 + $0xaa0] sm:$0xff]  ;;  %v1396_v61 = vadd.f32 %v2449_v60, %v628_v53  ;;  %v2468_v53 = vld [vmem:[%s2895_s29 + $0x330] sm:$0xff] }
 0x1a3   : > { %1886 = vst [vmem:[%s2910_s21 + $0x9e8] sm:$0xff] %v1374_v59  ;;  %v630_v59 = vld [vmem:[%s2887_s19 + $0xaa8] sm:$0xff]  ;;  %v1397_v0 = vadd.f32 %v2450_v63, %v629_v56  ;;  %v2469_v56 = vld [vmem:[%s2895_s29 + $0x338] sm:$0xff] }
 0x1a4   : > { %1887 = vst [vmem:[%s2910_s21 + $0x9f0] sm:$0xff] %v1375_v62  ;;  %v631_v62 = vld [vmem:[%s2887_s19 + $0xab0] sm:$0xff]  ;;  %v1398_v3 = vadd.f32 %v2451_v2, %v630_v59  ;;  %v2470_v59 = vld [vmem:[%s2895_s29 + $0x340] sm:$0xff] }
 0x1a5   : > { %1888 = vst [vmem:[%s2910_s21 + $0x9f8] sm:$0xff] %v1376_v1  ;;  %v632_v1 = vld [vmem:[%s2887_s19 + $0xab8] sm:$0xff]  ;;  %v1399_v6 = vadd.f32 %v2452_v5, %v631_v62  ;;  %v2471_v62 = vld [vmem:[%s2895_s29 + $0x348] sm:$0xff] }
 0x1a6   : > { %1889 = vst [vmem:[%s2910_s21 + $0xa00] sm:$0xff] %v1377_v4  ;;  %v633_v4 = vld [vmem:[%s2887_s19 + $0xac0] sm:$0xff]  ;;  %v1400_v9 = vadd.f32 %v2453_v8, %v632_v1  ;;  %v2472_v1 = vld [vmem:[%s2895_s29 + $0x350] sm:$0xff] }
 0x1a7   : > { %1890 = vst [vmem:[%s2910_s21 + $0xa08] sm:$0xff] %v1378_v7  ;;  %v634_v7 = vld [vmem:[%s2887_s19 + $0xac8] sm:$0xff]  ;;  %v1401_v12 = vadd.f32 %v2454_v11, %v633_v4  ;;  %v2473_v4 = vld [vmem:[%s2895_s29 + $0x358] sm:$0xff] }
 0x1a8   : > { %1891 = vst [vmem:[%s2910_s21 + $0xa10] sm:$0xff] %v1379_v10  ;;  %v635_v10 = vld [vmem:[%s2887_s19 + $0xad0] sm:$0xff]  ;;  %v1402_v15 = vadd.f32 %v2455_v14, %v634_v7  ;;  %v2474_v7 = vld [vmem:[%s2895_s29 + $0x360] sm:$0xff] }
 0x1a9   : > { %1892 = vst [vmem:[%s2910_s21 + $0xa18] sm:$0xff] %v1380_v13  ;;  %v636_v13 = vld [vmem:[%s2887_s19 + $0xad8] sm:$0xff]  ;;  %v1403_v18 = vadd.f32 %v2456_v17, %v635_v10  ;;  %v2475_v10 = vld [vmem:[%s2895_s29 + $0x368] sm:$0xff] }
 0x1aa   : > { %1893 = vst [vmem:[%s2910_s21 + $0xa20] sm:$0xff] %v1381_v16  ;;  %v637_v16 = vld [vmem:[%s2887_s19 + $0xae0] sm:$0xff]  ;;  %v1404_v21 = vadd.f32 %v2457_v20, %v636_v13  ;;  %v2476_v13 = vld [vmem:[%s2895_s29 + $0x370] sm:$0xff] }
 0x1ab   : > { %1894 = vst [vmem:[%s2910_s21 + $0xa28] sm:$0xff] %v1382_v19  ;;  %v638_v19 = vld [vmem:[%s2887_s19 + $0xae8] sm:$0xff]  ;;  %v1405_v24 = vadd.f32 %v2458_v23, %v637_v16  ;;  %v2477_v16 = vld [vmem:[%s2895_s29 + $0x378] sm:$0xff] }
 0x1ac   : > { %1895 = vst [vmem:[%s2910_s21 + $0xa30] sm:$0xff] %v1383_v22  ;;  %v639_v22 = vld [vmem:[%s2887_s19 + $0xaf0] sm:$0xff]  ;;  %v1406_v27 = vadd.f32 %v2459_v26, %v638_v19  ;;  %v2478_v19 = vld [vmem:[%s2895_s29 + $0x380] sm:$0xff] }
 0x1ad   : > { %1896 = vst [vmem:[%s2910_s21 + $0xa38] sm:$0xff] %v1384_v25  ;;  %v640_v25 = vld [vmem:[%s2887_s19 + $0xaf8] sm:$0xff]  ;;  %v1407_v30 = vadd.f32 %v2460_v29, %v639_v22  ;;  %v2479_v22 = vld [vmem:[%s2895_s29 + $0x388] sm:$0xff] }
 0x1ae   : > { %1897 = vst [vmem:[%s2910_s21 + $0xa40] sm:$0xff] %v1385_v28  ;;  %v641_v28 = vld [vmem:[%s2887_s19 + $0xb00] sm:$0xff]  ;;  %v1408_v33 = vadd.f32 %v2461_v32, %v640_v25  ;;  %v2480_v25 = vld [vmem:[%s2895_s29 + $0x390] sm:$0xff] }
 0x1af   : > { %1898 = vst [vmem:[%s2910_s21 + $0xa48] sm:$0xff] %v1386_v31  ;;  %v642_v31 = vld [vmem:[%s2887_s19 + $0xb08] sm:$0xff]  ;;  %v1409_v36 = vadd.f32 %v2462_v35, %v641_v28  ;;  %v2481_v28 = vld [vmem:[%s2895_s29 + $0x398] sm:$0xff] }
 0x1b0   : > { %1899 = vst [vmem:[%s2910_s21 + $0xa50] sm:$0xff] %v1387_v34  ;;  %v643_v34 = vld [vmem:[%s2887_s19 + $0xb10] sm:$0xff]  ;;  %v1410_v39 = vadd.f32 %v2463_v38, %v642_v31  ;;  %v2482_v31 = vld [vmem:[%s2895_s29 + $0x3a0] sm:$0xff] }
 0x1b1   : > { %1900 = vst [vmem:[%s2910_s21 + $0xa58] sm:$0xff] %v1388_v37  ;;  %v644_v37 = vld [vmem:[%s2887_s19 + $0xb18] sm:$0xff]  ;;  %v1411_v42 = vadd.f32 %v2464_v41, %v643_v34  ;;  %v2483_v34 = vld [vmem:[%s2895_s29 + $0x3a8] sm:$0xff] }
 0x1b2   : > { %1901 = vst [vmem:[%s2910_s21 + $0xa60] sm:$0xff] %v1389_v40  ;;  %v645_v40 = vld [vmem:[%s2887_s19 + $0xb20] sm:$0xff]  ;;  %v1412_v45 = vadd.f32 %v2465_v44, %v644_v37  ;;  %v2484_v37 = vld [vmem:[%s2895_s29 + $0x3b0] sm:$0xff] }
 0x1b3   : > { %1902 = vst [vmem:[%s2910_s21 + $0xa68] sm:$0xff] %v1390_v43  ;;  %v646_v43 = vld [vmem:[%s2887_s19 + $0xb28] sm:$0xff]  ;;  %v1413_v48 = vadd.f32 %v2466_v47, %v645_v40  ;;  %v2485_v40 = vld [vmem:[%s2895_s29 + $0x3b8] sm:$0xff] }
 0x1b4   : > { %1903 = vst [vmem:[%s2910_s21 + $0xa70] sm:$0xff] %v1391_v46  ;;  %v647_v46 = vld [vmem:[%s2887_s19 + $0xb30] sm:$0xff]  ;;  %v1414_v51 = vadd.f32 %v2467_v50, %v646_v43  ;;  %v2486_v43 = vld [vmem:[%s2895_s29 + $0x3c0] sm:$0xff] }
 0x1b5   : > { %1904 = vst [vmem:[%s2910_s21 + $0xa78] sm:$0xff] %v1392_v49  ;;  %v648_v49 = vld [vmem:[%s2887_s19 + $0xb38] sm:$0xff]  ;;  %v1415_v54 = vadd.f32 %v2468_v53, %v647_v46  ;;  %v2487_v46 = vld [vmem:[%s2895_s29 + $0x3c8] sm:$0xff] }
 0x1b6   : > { %1905 = vst [vmem:[%s2910_s21 + $0xa80] sm:$0xff] %v1393_v52  ;;  %v649_v52 = vld [vmem:[%s2887_s19 + $0xb40] sm:$0xff]  ;;  %v1416_v57 = vadd.f32 %v2469_v56, %v648_v49  ;;  %v2488_v49 = vld [vmem:[%s2895_s29 + $0x3d0] sm:$0xff] }
 0x1b7   : > { %1906 = vst [vmem:[%s2910_s21 + $0xa88] sm:$0xff] %v1394_v55  ;;  %v650_v55 = vld [vmem:[%s2887_s19 + $0xb48] sm:$0xff]  ;;  %v1417_v60 = vadd.f32 %v2470_v59, %v649_v52  ;;  %v2489_v52 = vld [vmem:[%s2895_s29 + $0x3d8] sm:$0xff] }
 0x1b8   : > { %1907 = vst [vmem:[%s2910_s21 + $0xa90] sm:$0xff] %v1395_v58  ;;  %v651_v58 = vld [vmem:[%s2887_s19 + $0xb50] sm:$0xff]  ;;  %v1418_v63 = vadd.f32 %v2471_v62, %v650_v55  ;;  %v2490_v55 = vld [vmem:[%s2895_s29 + $0x3e0] sm:$0xff] }
 0x1b9   : > { %1908 = vst [vmem:[%s2910_s21 + $0xa98] sm:$0xff] %v1396_v61  ;;  %v652_v61 = vld [vmem:[%s2887_s19 + $0xb58] sm:$0xff]  ;;  %v1419_v2 = vadd.f32 %v2472_v1, %v651_v58  ;;  %v2491_v58 = vld [vmem:[%s2895_s29 + $0x3e8] sm:$0xff] }
 0x1ba   : > { %1909 = vst [vmem:[%s2910_s21 + $0xaa0] sm:$0xff] %v1397_v0  ;;  %v653_v0 = vld [vmem:[%s2887_s19 + $0xb60] sm:$0xff]  ;;  %v1420_v5 = vadd.f32 %v2473_v4, %v652_v61  ;;  %v2492_v61 = vld [vmem:[%s2895_s29 + $0x3f0] sm:$0xff] }
 0x1bb   : > { %1910 = vst [vmem:[%s2910_s21 + $0xaa8] sm:$0xff] %v1398_v3  ;;  %v654_v3 = vld [vmem:[%s2887_s19 + $0xb68] sm:$0xff]  ;;  %v1421_v8 = vadd.f32 %v2474_v7, %v653_v0  ;;  %v2493_v0 = vld [vmem:[%s2895_s29 + $0x3f8] sm:$0xff] }
 0x1bc   : > { %1911 = vst [vmem:[%s2910_s21 + $0xab0] sm:$0xff] %v1399_v6  ;;  %v655_v6 = vld [vmem:[%s2887_s19 + $0xb70] sm:$0xff]  ;;  %v1422_v11 = vadd.f32 %v2475_v10, %v654_v3  ;;  %v2494_v3 = vld [vmem:[%s2895_s29 + $0x400] sm:$0xff] }
 0x1bd   : > { %1912 = vst [vmem:[%s2910_s21 + $0xab8] sm:$0xff] %v1400_v9  ;;  %v656_v9 = vld [vmem:[%s2887_s19 + $0xb78] sm:$0xff]  ;;  %v1423_v14 = vadd.f32 %v2476_v13, %v655_v6  ;;  %v2495_v6 = vld [vmem:[%s2895_s29 + $0x408] sm:$0xff] }
 0x1be   : > { %1913 = vst [vmem:[%s2910_s21 + $0xac0] sm:$0xff] %v1401_v12  ;;  %v657_v12 = vld [vmem:[%s2887_s19 + $0xb80] sm:$0xff]  ;;  %v1424_v17 = vadd.f32 %v2477_v16, %v656_v9  ;;  %v2496_v9 = vld [vmem:[%s2895_s29 + $0x410] sm:$0xff] }
 0x1bf   : > { %1914 = vst [vmem:[%s2910_s21 + $0xac8] sm:$0xff] %v1402_v15  ;;  %v658_v15 = vld [vmem:[%s2887_s19 + $0xb88] sm:$0xff]  ;;  %v1425_v20 = vadd.f32 %v2478_v19, %v657_v12  ;;  %v2497_v12 = vld [vmem:[%s2895_s29 + $0x418] sm:$0xff] }
 0x1c0   : > { %1915 = vst [vmem:[%s2910_s21 + $0xad0] sm:$0xff] %v1403_v18  ;;  %v659_v18 = vld [vmem:[%s2887_s19 + $0xb90] sm:$0xff]  ;;  %v1426_v23 = vadd.f32 %v2479_v22, %v658_v15  ;;  %v2498_v15 = vld [vmem:[%s2895_s29 + $0x420] sm:$0xff] }
 0x1c1   : > { %1916 = vst [vmem:[%s2910_s21 + $0xad8] sm:$0xff] %v1404_v21  ;;  %v660_v21 = vld [vmem:[%s2887_s19 + $0xb98] sm:$0xff]  ;;  %v1427_v26 = vadd.f32 %v2480_v25, %v659_v18  ;;  %v2499_v18 = vld [vmem:[%s2895_s29 + $0x428] sm:$0xff] }
 0x1c2   : > { %1917 = vst [vmem:[%s2910_s21 + $0xae0] sm:$0xff] %v1405_v24  ;;  %v661_v24 = vld [vmem:[%s2887_s19 + $0xba0] sm:$0xff]  ;;  %v1428_v29 = vadd.f32 %v2481_v28, %v660_v21  ;;  %v2500_v21 = vld [vmem:[%s2895_s29 + $0x430] sm:$0xff] }
 0x1c3   : > { %1918 = vst [vmem:[%s2910_s21 + $0xae8] sm:$0xff] %v1406_v27  ;;  %v662_v27 = vld [vmem:[%s2887_s19 + $0xba8] sm:$0xff]  ;;  %v1429_v32 = vadd.f32 %v2482_v31, %v661_v24  ;;  %v2501_v24 = vld [vmem:[%s2895_s29 + $0x438] sm:$0xff] }
 0x1c4   : > { %1919 = vst [vmem:[%s2910_s21 + $0xaf0] sm:$0xff] %v1407_v30  ;;  %v663_v30 = vld [vmem:[%s2887_s19 + $0xbb0] sm:$0xff]  ;;  %v1430_v35 = vadd.f32 %v2483_v34, %v662_v27  ;;  %v2502_v27 = vld [vmem:[%s2895_s29 + $0x440] sm:$0xff] }
 0x1c5   : > { %1920 = vst [vmem:[%s2910_s21 + $0xaf8] sm:$0xff] %v1408_v33  ;;  %v664_v33 = vld [vmem:[%s2887_s19 + $0xbb8] sm:$0xff]  ;;  %v1431_v38 = vadd.f32 %v2484_v37, %v663_v30  ;;  %v2503_v30 = vld [vmem:[%s2895_s29 + $0x448] sm:$0xff] }
 0x1c6   : > { %1921 = vst [vmem:[%s2910_s21 + $0xb00] sm:$0xff] %v1409_v36  ;;  %v665_v36 = vld [vmem:[%s2887_s19 + $0xbc0] sm:$0xff]  ;;  %v1432_v41 = vadd.f32 %v2485_v40, %v664_v33  ;;  %v2504_v33 = vld [vmem:[%s2895_s29 + $0x450] sm:$0xff] }
 0x1c7   : > { %1922 = vst [vmem:[%s2910_s21 + $0xb08] sm:$0xff] %v1410_v39  ;;  %v666_v39 = vld [vmem:[%s2887_s19 + $0xbc8] sm:$0xff]  ;;  %v1433_v44 = vadd.f32 %v2486_v43, %v665_v36  ;;  %v2505_v36 = vld [vmem:[%s2895_s29 + $0x458] sm:$0xff] }
 0x1c8   : > { %1923 = vst [vmem:[%s2910_s21 + $0xb10] sm:$0xff] %v1411_v42  ;;  %v667_v42 = vld [vmem:[%s2887_s19 + $0xbd0] sm:$0xff]  ;;  %v1434_v47 = vadd.f32 %v2487_v46, %v666_v39  ;;  %v2506_v39 = vld [vmem:[%s2895_s29 + $0x460] sm:$0xff] }
 0x1c9   : > { %1924 = vst [vmem:[%s2910_s21 + $0xb18] sm:$0xff] %v1412_v45  ;;  %v668_v45 = vld [vmem:[%s2887_s19 + $0xbd8] sm:$0xff]  ;;  %v1435_v50 = vadd.f32 %v2488_v49, %v667_v42  ;;  %v2507_v42 = vld [vmem:[%s2895_s29 + $0x468] sm:$0xff] }
 0x1ca   : > { %1925 = vst [vmem:[%s2910_s21 + $0xb20] sm:$0xff] %v1413_v48  ;;  %v669_v48 = vld [vmem:[%s2887_s19 + $0xbe0] sm:$0xff]  ;;  %v1436_v53 = vadd.f32 %v2489_v52, %v668_v45  ;;  %v2508_v45 = vld [vmem:[%s2895_s29 + $0x470] sm:$0xff] }
 0x1cb   : > { %1926 = vst [vmem:[%s2910_s21 + $0xb28] sm:$0xff] %v1414_v51  ;;  %v670_v51 = vld [vmem:[%s2887_s19 + $0xbe8] sm:$0xff]  ;;  %v1437_v56 = vadd.f32 %v2490_v55, %v669_v48  ;;  %v2509_v48 = vld [vmem:[%s2895_s29 + $0x478] sm:$0xff] }
 0x1cc   : > { %1927 = vst [vmem:[%s2910_s21 + $0xb30] sm:$0xff] %v1415_v54  ;;  %v671_v54 = vld [vmem:[%s2887_s19 + $0xbf0] sm:$0xff]  ;;  %v1438_v59 = vadd.f32 %v2491_v58, %v670_v51  ;;  %v2510_v51 = vld [vmem:[%s2895_s29 + $0x480] sm:$0xff] }
 0x1cd   : > { %1928 = vst [vmem:[%s2910_s21 + $0xb38] sm:$0xff] %v1416_v57  ;;  %v672_v57 = vld [vmem:[%s2887_s19 + $0xbf8] sm:$0xff]  ;;  %v1439_v62 = vadd.f32 %v2492_v61, %v671_v54  ;;  %v2511_v54 = vld [vmem:[%s2895_s29 + $0x488] sm:$0xff] }
 0x1ce   : > { %1929 = vst [vmem:[%s2910_s21 + $0xb40] sm:$0xff] %v1417_v60  ;;  %v673_v60 = vld [vmem:[%s2887_s19 + $0xc00] sm:$0xff]  ;;  %v1440_v1 = vadd.f32 %v2493_v0, %v672_v57  ;;  %v2512_v57 = vld [vmem:[%s2895_s29 + $0x490] sm:$0xff] }
 0x1cf   : > { %1930 = vst [vmem:[%s2910_s21 + $0xb48] sm:$0xff] %v1418_v63  ;;  %v674_v63 = vld [vmem:[%s2887_s19 + $0xc08] sm:$0xff]  ;;  %v1441_v4 = vadd.f32 %v2494_v3, %v673_v60  ;;  %v2513_v60 = vld [vmem:[%s2895_s29 + $0x498] sm:$0xff] }
 0x1d0   : > { %1931 = vst [vmem:[%s2910_s21 + $0xb50] sm:$0xff] %v1419_v2  ;;  %v675_v2 = vld [vmem:[%s2887_s19 + $0xc10] sm:$0xff]  ;;  %v1442_v7 = vadd.f32 %v2495_v6, %v674_v63  ;;  %v2514_v63 = vld [vmem:[%s2895_s29 + $0x4a0] sm:$0xff] }
 0x1d1   : > { %1932 = vst [vmem:[%s2910_s21 + $0xb58] sm:$0xff] %v1420_v5  ;;  %v676_v5 = vld [vmem:[%s2887_s19 + $0xc18] sm:$0xff]  ;;  %v1443_v10 = vadd.f32 %v2496_v9, %v675_v2  ;;  %v2515_v2 = vld [vmem:[%s2895_s29 + $0x4a8] sm:$0xff] }
 0x1d2   : > { %1933 = vst [vmem:[%s2910_s21 + $0xb60] sm:$0xff] %v1421_v8  ;;  %v677_v8 = vld [vmem:[%s2887_s19 + $0xc20] sm:$0xff]  ;;  %v1444_v13 = vadd.f32 %v2497_v12, %v676_v5  ;;  %v2516_v5 = vld [vmem:[%s2895_s29 + $0x4b0] sm:$0xff] }
 0x1d3   : > { %1934 = vst [vmem:[%s2910_s21 + $0xb68] sm:$0xff] %v1422_v11  ;;  %v678_v11 = vld [vmem:[%s2887_s19 + $0xc28] sm:$0xff]  ;;  %v1445_v16 = vadd.f32 %v2498_v15, %v677_v8  ;;  %v2517_v8 = vld [vmem:[%s2895_s29 + $0x4b8] sm:$0xff] }
 0x1d4   : > { %1935 = vst [vmem:[%s2910_s21 + $0xb70] sm:$0xff] %v1423_v14  ;;  %v679_v14 = vld [vmem:[%s2887_s19 + $0xc30] sm:$0xff]  ;;  %v1446_v19 = vadd.f32 %v2499_v18, %v678_v11  ;;  %v2518_v11 = vld [vmem:[%s2895_s29 + $0x4c0] sm:$0xff] }
 0x1d5   : > { %1936 = vst [vmem:[%s2910_s21 + $0xb78] sm:$0xff] %v1424_v17  ;;  %v680_v17 = vld [vmem:[%s2887_s19 + $0xc38] sm:$0xff]  ;;  %v1447_v22 = vadd.f32 %v2500_v21, %v679_v14  ;;  %v2519_v14 = vld [vmem:[%s2895_s29 + $0x4c8] sm:$0xff] }
 0x1d6   : > { %1937 = vst [vmem:[%s2910_s21 + $0xb80] sm:$0xff] %v1425_v20  ;;  %v681_v20 = vld [vmem:[%s2887_s19 + $0xc40] sm:$0xff]  ;;  %v1448_v25 = vadd.f32 %v2501_v24, %v680_v17  ;;  %v2520_v17 = vld [vmem:[%s2895_s29 + $0x4d0] sm:$0xff] }
 0x1d7   : > { %1938 = vst [vmem:[%s2910_s21 + $0xb88] sm:$0xff] %v1426_v23  ;;  %v682_v23 = vld [vmem:[%s2887_s19 + $0xc48] sm:$0xff]  ;;  %v1449_v28 = vadd.f32 %v2502_v27, %v681_v20  ;;  %v2521_v20 = vld [vmem:[%s2895_s29 + $0x4d8] sm:$0xff] }
 0x1d8   : > { %1939 = vst [vmem:[%s2910_s21 + $0xb90] sm:$0xff] %v1427_v26  ;;  %v683_v26 = vld [vmem:[%s2887_s19 + $0xc50] sm:$0xff]  ;;  %v1450_v31 = vadd.f32 %v2503_v30, %v682_v23  ;;  %v2522_v23 = vld [vmem:[%s2895_s29 + $0x4e0] sm:$0xff] }
 0x1d9   : > { %1940 = vst [vmem:[%s2910_s21 + $0xb98] sm:$0xff] %v1428_v29  ;;  %v684_v29 = vld [vmem:[%s2887_s19 + $0xc58] sm:$0xff]  ;;  %v1451_v34 = vadd.f32 %v2504_v33, %v683_v26  ;;  %v2523_v26 = vld [vmem:[%s2895_s29 + $0x4e8] sm:$0xff] }
 0x1da   : > { %1941 = vst [vmem:[%s2910_s21 + $0xba0] sm:$0xff] %v1429_v32  ;;  %v685_v32 = vld [vmem:[%s2887_s19 + $0xc60] sm:$0xff]  ;;  %v1452_v37 = vadd.f32 %v2505_v36, %v684_v29  ;;  %v2524_v29 = vld [vmem:[%s2895_s29 + $0x4f0] sm:$0xff] }
 0x1db   : > { %1942 = vst [vmem:[%s2910_s21 + $0xba8] sm:$0xff] %v1430_v35  ;;  %v686_v35 = vld [vmem:[%s2887_s19 + $0xc68] sm:$0xff]  ;;  %v1453_v40 = vadd.f32 %v2506_v39, %v685_v32  ;;  %v2525_v32 = vld [vmem:[%s2895_s29 + $0x4f8] sm:$0xff] }
 0x1dc   : > { %1943 = vst [vmem:[%s2910_s21 + $0xbb0] sm:$0xff] %v1431_v38  ;;  %v687_v38 = vld [vmem:[%s2887_s19 + $0xc70] sm:$0xff]  ;;  %v1454_v43 = vadd.f32 %v2507_v42, %v686_v35  ;;  %v2526_v35 = vld [vmem:[%s2895_s29 + $0x500] sm:$0xff] }
 0x1dd   : > { %1944 = vst [vmem:[%s2910_s21 + $0xbb8] sm:$0xff] %v1432_v41  ;;  %v688_v41 = vld [vmem:[%s2887_s19 + $0xc78] sm:$0xff]  ;;  %v1455_v46 = vadd.f32 %v2508_v45, %v687_v38  ;;  %v2527_v38 = vld [vmem:[%s2895_s29 + $0x508] sm:$0xff] }
 0x1de   : > { %1945 = vst [vmem:[%s2910_s21 + $0xbc0] sm:$0xff] %v1433_v44  ;;  %v689_v44 = vld [vmem:[%s2887_s19 + $0xc80] sm:$0xff]  ;;  %v1456_v49 = vadd.f32 %v2509_v48, %v688_v41  ;;  %v2528_v41 = vld [vmem:[%s2895_s29 + $0x510] sm:$0xff] }
 0x1df   : > { %1946 = vst [vmem:[%s2910_s21 + $0xbc8] sm:$0xff] %v1434_v47  ;;  %v690_v47 = vld [vmem:[%s2887_s19 + $0xc88] sm:$0xff]  ;;  %v1457_v52 = vadd.f32 %v2510_v51, %v689_v44  ;;  %v2529_v44 = vld [vmem:[%s2895_s29 + $0x518] sm:$0xff] }
 0x1e0   : > { %1947 = vst [vmem:[%s2910_s21 + $0xbd0] sm:$0xff] %v1435_v50  ;;  %v691_v50 = vld [vmem:[%s2887_s19 + $0xc90] sm:$0xff]  ;;  %v1458_v55 = vadd.f32 %v2511_v54, %v690_v47  ;;  %v2530_v47 = vld [vmem:[%s2895_s29 + $0x520] sm:$0xff] }
 0x1e1   : > { %1948 = vst [vmem:[%s2910_s21 + $0xbd8] sm:$0xff] %v1436_v53  ;;  %v692_v53 = vld [vmem:[%s2887_s19 + $0xc98] sm:$0xff]  ;;  %v1459_v58 = vadd.f32 %v2512_v57, %v691_v50  ;;  %v2531_v50 = vld [vmem:[%s2895_s29 + $0x528] sm:$0xff] }
 0x1e2   : > { %1949 = vst [vmem:[%s2910_s21 + $0xbe0] sm:$0xff] %v1437_v56  ;;  %v693_v56 = vld [vmem:[%s2887_s19 + $0xca0] sm:$0xff]  ;;  %v1460_v61 = vadd.f32 %v2513_v60, %v692_v53  ;;  %v2532_v53 = vld [vmem:[%s2895_s29 + $0x530] sm:$0xff] }
 0x1e3   : > { %1950 = vst [vmem:[%s2910_s21 + $0xbe8] sm:$0xff] %v1438_v59  ;;  %v694_v59 = vld [vmem:[%s2887_s19 + $0xca8] sm:$0xff]  ;;  %v1461_v0 = vadd.f32 %v2514_v63, %v693_v56  ;;  %v2533_v56 = vld [vmem:[%s2895_s29 + $0x538] sm:$0xff] }
 0x1e4   : > { %1951 = vst [vmem:[%s2910_s21 + $0xbf0] sm:$0xff] %v1439_v62  ;;  %v695_v62 = vld [vmem:[%s2887_s19 + $0xcb0] sm:$0xff]  ;;  %v1462_v3 = vadd.f32 %v2515_v2, %v694_v59  ;;  %v2534_v59 = vld [vmem:[%s2895_s29 + $0x540] sm:$0xff] }
 0x1e5   : > { %1952 = vst [vmem:[%s2910_s21 + $0xbf8] sm:$0xff] %v1440_v1  ;;  %v696_v1 = vld [vmem:[%s2887_s19 + $0xcb8] sm:$0xff]  ;;  %v1463_v6 = vadd.f32 %v2516_v5, %v695_v62  ;;  %v2535_v62 = vld [vmem:[%s2895_s29 + $0x548] sm:$0xff] }
 0x1e6   : > { %1953 = vst [vmem:[%s2910_s21 + $0xc00] sm:$0xff] %v1441_v4  ;;  %v697_v4 = vld [vmem:[%s2887_s19 + $0xcc0] sm:$0xff]  ;;  %v1464_v9 = vadd.f32 %v2517_v8, %v696_v1  ;;  %v2536_v1 = vld [vmem:[%s2895_s29 + $0x550] sm:$0xff] }
 0x1e7   : > { %1954 = vst [vmem:[%s2910_s21 + $0xc08] sm:$0xff] %v1442_v7  ;;  %v698_v7 = vld [vmem:[%s2887_s19 + $0xcc8] sm:$0xff]  ;;  %v1465_v12 = vadd.f32 %v2518_v11, %v697_v4  ;;  %v2537_v4 = vld [vmem:[%s2895_s29 + $0x558] sm:$0xff] }
 0x1e8   : > { %1955 = vst [vmem:[%s2910_s21 + $0xc10] sm:$0xff] %v1443_v10  ;;  %v699_v10 = vld [vmem:[%s2887_s19 + $0xcd0] sm:$0xff]  ;;  %v1466_v15 = vadd.f32 %v2519_v14, %v698_v7  ;;  %v2538_v7 = vld [vmem:[%s2895_s29 + $0x560] sm:$0xff] }
 0x1e9   : > { %1956 = vst [vmem:[%s2910_s21 + $0xc18] sm:$0xff] %v1444_v13  ;;  %v700_v13 = vld [vmem:[%s2887_s19 + $0xcd8] sm:$0xff]  ;;  %v1467_v18 = vadd.f32 %v2520_v17, %v699_v10  ;;  %v2539_v10 = vld [vmem:[%s2895_s29 + $0x568] sm:$0xff] }
 0x1ea   : > { %1957 = vst [vmem:[%s2910_s21 + $0xc20] sm:$0xff] %v1445_v16  ;;  %v701_v16 = vld [vmem:[%s2887_s19 + $0xce0] sm:$0xff]  ;;  %v1468_v21 = vadd.f32 %v2521_v20, %v700_v13  ;;  %v2540_v13 = vld [vmem:[%s2895_s29 + $0x570] sm:$0xff] }
 0x1eb   : > { %1958 = vst [vmem:[%s2910_s21 + $0xc28] sm:$0xff] %v1446_v19  ;;  %v702_v19 = vld [vmem:[%s2887_s19 + $0xce8] sm:$0xff]  ;;  %v1469_v24 = vadd.f32 %v2522_v23, %v701_v16  ;;  %v2541_v16 = vld [vmem:[%s2895_s29 + $0x578] sm:$0xff] }
 0x1ec   : > { %1959 = vst [vmem:[%s2910_s21 + $0xc30] sm:$0xff] %v1447_v22  ;;  %v703_v22 = vld [vmem:[%s2887_s19 + $0xcf0] sm:$0xff]  ;;  %v1470_v27 = vadd.f32 %v2523_v26, %v702_v19  ;;  %v2542_v19 = vld [vmem:[%s2895_s29 + $0x580] sm:$0xff] }
 0x1ed   : > { %1960 = vst [vmem:[%s2910_s21 + $0xc38] sm:$0xff] %v1448_v25  ;;  %v704_v25 = vld [vmem:[%s2887_s19 + $0xcf8] sm:$0xff]  ;;  %v1471_v30 = vadd.f32 %v2524_v29, %v703_v22  ;;  %v2543_v22 = vld [vmem:[%s2895_s29 + $0x588] sm:$0xff] }
 0x1ee   : > { %1961 = vst [vmem:[%s2910_s21 + $0xc40] sm:$0xff] %v1449_v28  ;;  %v705_v28 = vld [vmem:[%s2887_s19 + $0xd00] sm:$0xff]  ;;  %v1472_v33 = vadd.f32 %v2525_v32, %v704_v25  ;;  %v2544_v25 = vld [vmem:[%s2895_s29 + $0x590] sm:$0xff] }
 0x1ef   : > { %1962 = vst [vmem:[%s2910_s21 + $0xc48] sm:$0xff] %v1450_v31  ;;  %v706_v31 = vld [vmem:[%s2887_s19 + $0xd08] sm:$0xff]  ;;  %v1473_v36 = vadd.f32 %v2526_v35, %v705_v28  ;;  %v2545_v28 = vld [vmem:[%s2895_s29 + $0x598] sm:$0xff] }
 0x1f0   : > { %1963 = vst [vmem:[%s2910_s21 + $0xc50] sm:$0xff] %v1451_v34  ;;  %v707_v34 = vld [vmem:[%s2887_s19 + $0xd10] sm:$0xff]  ;;  %v1474_v39 = vadd.f32 %v2527_v38, %v706_v31  ;;  %v2546_v31 = vld [vmem:[%s2895_s29 + $0x5a0] sm:$0xff] }
 0x1f1   : > { %1964 = vst [vmem:[%s2910_s21 + $0xc58] sm:$0xff] %v1452_v37  ;;  %v708_v37 = vld [vmem:[%s2887_s19 + $0xd18] sm:$0xff]  ;;  %v1475_v42 = vadd.f32 %v2528_v41, %v707_v34  ;;  %v2547_v34 = vld [vmem:[%s2895_s29 + $0x5a8] sm:$0xff] }
 0x1f2   : > { %1965 = vst [vmem:[%s2910_s21 + $0xc60] sm:$0xff] %v1453_v40  ;;  %v709_v40 = vld [vmem:[%s2887_s19 + $0xd20] sm:$0xff]  ;;  %v1476_v45 = vadd.f32 %v2529_v44, %v708_v37  ;;  %v2548_v37 = vld [vmem:[%s2895_s29 + $0x5b0] sm:$0xff] }
 0x1f3   : > { %1966 = vst [vmem:[%s2910_s21 + $0xc68] sm:$0xff] %v1454_v43  ;;  %v710_v43 = vld [vmem:[%s2887_s19 + $0xd28] sm:$0xff]  ;;  %v1477_v48 = vadd.f32 %v2530_v47, %v709_v40  ;;  %v2549_v40 = vld [vmem:[%s2895_s29 + $0x5b8] sm:$0xff] }
 0x1f4   : > { %1967 = vst [vmem:[%s2910_s21 + $0xc70] sm:$0xff] %v1455_v46  ;;  %v711_v46 = vld [vmem:[%s2887_s19 + $0xd30] sm:$0xff]  ;;  %v1478_v51 = vadd.f32 %v2531_v50, %v710_v43  ;;  %v2550_v43 = vld [vmem:[%s2895_s29 + $0x5c0] sm:$0xff] }
 0x1f5   : > { %1968 = vst [vmem:[%s2910_s21 + $0xc78] sm:$0xff] %v1456_v49  ;;  %v712_v49 = vld [vmem:[%s2887_s19 + $0xd38] sm:$0xff]  ;;  %v1479_v54 = vadd.f32 %v2532_v53, %v711_v46  ;;  %v2551_v46 = vld [vmem:[%s2895_s29 + $0x5c8] sm:$0xff] }
 0x1f6   : > { %1969 = vst [vmem:[%s2910_s21 + $0xc80] sm:$0xff] %v1457_v52  ;;  %v713_v52 = vld [vmem:[%s2887_s19 + $0xd40] sm:$0xff]  ;;  %v1480_v57 = vadd.f32 %v2533_v56, %v712_v49  ;;  %v2552_v49 = vld [vmem:[%s2895_s29 + $0x5d0] sm:$0xff] }
 0x1f7   : > { %1970 = vst [vmem:[%s2910_s21 + $0xc88] sm:$0xff] %v1458_v55  ;;  %v714_v55 = vld [vmem:[%s2887_s19 + $0xd48] sm:$0xff]  ;;  %v1481_v60 = vadd.f32 %v2534_v59, %v713_v52  ;;  %v2553_v52 = vld [vmem:[%s2895_s29 + $0x5d8] sm:$0xff] }
 0x1f8   : > { %1971 = vst [vmem:[%s2910_s21 + $0xc90] sm:$0xff] %v1459_v58  ;;  %v715_v58 = vld [vmem:[%s2887_s19 + $0xd50] sm:$0xff]  ;;  %v1482_v63 = vadd.f32 %v2535_v62, %v714_v55  ;;  %v2554_v55 = vld [vmem:[%s2895_s29 + $0x5e0] sm:$0xff] }
 0x1f9   : > { %1972 = vst [vmem:[%s2910_s21 + $0xc98] sm:$0xff] %v1460_v61  ;;  %v716_v61 = vld [vmem:[%s2887_s19 + $0xd58] sm:$0xff]  ;;  %v1483_v2 = vadd.f32 %v2536_v1, %v715_v58  ;;  %v2555_v58 = vld [vmem:[%s2895_s29 + $0x5e8] sm:$0xff] }
 0x1fa   : > { %1973 = vst [vmem:[%s2910_s21 + $0xca0] sm:$0xff] %v1461_v0  ;;  %v717_v0 = vld [vmem:[%s2887_s19 + $0xd60] sm:$0xff]  ;;  %v1484_v5 = vadd.f32 %v2537_v4, %v716_v61  ;;  %v2556_v61 = vld [vmem:[%s2895_s29 + $0x5f0] sm:$0xff] }
 0x1fb   : > { %1974 = vst [vmem:[%s2910_s21 + $0xca8] sm:$0xff] %v1462_v3  ;;  %v718_v3 = vld [vmem:[%s2887_s19 + $0xd68] sm:$0xff]  ;;  %v1485_v8 = vadd.f32 %v2538_v7, %v717_v0  ;;  %v2557_v0 = vld [vmem:[%s2895_s29 + $0x5f8] sm:$0xff] }
 0x1fc   : > { %1975 = vst [vmem:[%s2910_s21 + $0xcb0] sm:$0xff] %v1463_v6  ;;  %v719_v6 = vld [vmem:[%s2887_s19 + $0xd70] sm:$0xff]  ;;  %v1486_v11 = vadd.f32 %v2539_v10, %v718_v3  ;;  %v2558_v3 = vld [vmem:[%s2895_s29 + $0x600] sm:$0xff] }
 0x1fd   : > { %1976 = vst [vmem:[%s2910_s21 + $0xcb8] sm:$0xff] %v1464_v9  ;;  %v720_v9 = vld [vmem:[%s2887_s19 + $0xd78] sm:$0xff]  ;;  %v1487_v14 = vadd.f32 %v2540_v13, %v719_v6  ;;  %v2559_v6 = vld [vmem:[%s2895_s29 + $0x608] sm:$0xff] }
 0x1fe   : > { %1977 = vst [vmem:[%s2910_s21 + $0xcc0] sm:$0xff] %v1465_v12  ;;  %v721_v12 = vld [vmem:[%s2887_s19 + $0xd80] sm:$0xff]  ;;  %v1488_v17 = vadd.f32 %v2541_v16, %v720_v9  ;;  %v2560_v9 = vld [vmem:[%s2895_s29 + $0x610] sm:$0xff] }
 0x1ff   : > { %1978 = vst [vmem:[%s2910_s21 + $0xcc8] sm:$0xff] %v1466_v15  ;;  %v722_v15 = vld [vmem:[%s2887_s19 + $0xd88] sm:$0xff]  ;;  %v1489_v20 = vadd.f32 %v2542_v19, %v721_v12  ;;  %v2561_v12 = vld [vmem:[%s2895_s29 + $0x618] sm:$0xff] }
 0x200   : > { %1979 = vst [vmem:[%s2910_s21 + $0xcd0] sm:$0xff] %v1467_v18  ;;  %v723_v18 = vld [vmem:[%s2887_s19 + $0xd90] sm:$0xff]  ;;  %v1490_v23 = vadd.f32 %v2543_v22, %v722_v15  ;;  %v2562_v15 = vld [vmem:[%s2895_s29 + $0x620] sm:$0xff] }
 0x201   : > { %1980 = vst [vmem:[%s2910_s21 + $0xcd8] sm:$0xff] %v1468_v21  ;;  %v724_v21 = vld [vmem:[%s2887_s19 + $0xd98] sm:$0xff]  ;;  %v1491_v26 = vadd.f32 %v2544_v25, %v723_v18  ;;  %v2563_v18 = vld [vmem:[%s2895_s29 + $0x628] sm:$0xff] }
 0x202   : > { %1981 = vst [vmem:[%s2910_s21 + $0xce0] sm:$0xff] %v1469_v24  ;;  %v725_v24 = vld [vmem:[%s2887_s19 + $0xda0] sm:$0xff]  ;;  %v1492_v29 = vadd.f32 %v2545_v28, %v724_v21  ;;  %v2564_v21 = vld [vmem:[%s2895_s29 + $0x630] sm:$0xff] }
 0x203   : > { %1982 = vst [vmem:[%s2910_s21 + $0xce8] sm:$0xff] %v1470_v27  ;;  %v726_v27 = vld [vmem:[%s2887_s19 + $0xda8] sm:$0xff]  ;;  %v1493_v32 = vadd.f32 %v2546_v31, %v725_v24  ;;  %v2565_v24 = vld [vmem:[%s2895_s29 + $0x638] sm:$0xff] }
 0x204   : > { %1983 = vst [vmem:[%s2910_s21 + $0xcf0] sm:$0xff] %v1471_v30  ;;  %v727_v30 = vld [vmem:[%s2887_s19 + $0xdb0] sm:$0xff]  ;;  %v1494_v35 = vadd.f32 %v2547_v34, %v726_v27  ;;  %v2566_v27 = vld [vmem:[%s2895_s29 + $0x640] sm:$0xff] }
 0x205   : > { %1984 = vst [vmem:[%s2910_s21 + $0xcf8] sm:$0xff] %v1472_v33  ;;  %v728_v33 = vld [vmem:[%s2887_s19 + $0xdb8] sm:$0xff]  ;;  %v1495_v38 = vadd.f32 %v2548_v37, %v727_v30  ;;  %v2567_v30 = vld [vmem:[%s2895_s29 + $0x648] sm:$0xff] }
 0x206   : > { %1985 = vst [vmem:[%s2910_s21 + $0xd00] sm:$0xff] %v1473_v36  ;;  %v729_v36 = vld [vmem:[%s2887_s19 + $0xdc0] sm:$0xff]  ;;  %v1496_v41 = vadd.f32 %v2549_v40, %v728_v33  ;;  %v2568_v33 = vld [vmem:[%s2895_s29 + $0x650] sm:$0xff] }
 0x207   : > { %1986 = vst [vmem:[%s2910_s21 + $0xd08] sm:$0xff] %v1474_v39  ;;  %v730_v39 = vld [vmem:[%s2887_s19 + $0xdc8] sm:$0xff]  ;;  %v1497_v44 = vadd.f32 %v2550_v43, %v729_v36  ;;  %v2569_v36 = vld [vmem:[%s2895_s29 + $0x658] sm:$0xff] }
 0x208   : > { %1987 = vst [vmem:[%s2910_s21 + $0xd10] sm:$0xff] %v1475_v42  ;;  %v731_v42 = vld [vmem:[%s2887_s19 + $0xdd0] sm:$0xff]  ;;  %v1498_v47 = vadd.f32 %v2551_v46, %v730_v39  ;;  %v2570_v39 = vld [vmem:[%s2895_s29 + $0x660] sm:$0xff] }
 0x209   : > { %1988 = vst [vmem:[%s2910_s21 + $0xd18] sm:$0xff] %v1476_v45  ;;  %v732_v45 = vld [vmem:[%s2887_s19 + $0xdd8] sm:$0xff]  ;;  %v1499_v50 = vadd.f32 %v2552_v49, %v731_v42  ;;  %v2571_v42 = vld [vmem:[%s2895_s29 + $0x668] sm:$0xff] }
 0x20a   : > { %1989 = vst [vmem:[%s2910_s21 + $0xd20] sm:$0xff] %v1477_v48  ;;  %v733_v48 = vld [vmem:[%s2887_s19 + $0xde0] sm:$0xff]  ;;  %v1500_v53 = vadd.f32 %v2553_v52, %v732_v45  ;;  %v2572_v45 = vld [vmem:[%s2895_s29 + $0x670] sm:$0xff] }
 0x20b   : > { %1990 = vst [vmem:[%s2910_s21 + $0xd28] sm:$0xff] %v1478_v51  ;;  %v734_v51 = vld [vmem:[%s2887_s19 + $0xde8] sm:$0xff]  ;;  %v1501_v56 = vadd.f32 %v2554_v55, %v733_v48  ;;  %v2573_v48 = vld [vmem:[%s2895_s29 + $0x678] sm:$0xff] }
 0x20c   : > { %1991 = vst [vmem:[%s2910_s21 + $0xd30] sm:$0xff] %v1479_v54  ;;  %v735_v54 = vld [vmem:[%s2887_s19 + $0xdf0] sm:$0xff]  ;;  %v1502_v59 = vadd.f32 %v2555_v58, %v734_v51  ;;  %v2574_v51 = vld [vmem:[%s2895_s29 + $0x680] sm:$0xff] }
 0x20d   : > { %1992 = vst [vmem:[%s2910_s21 + $0xd38] sm:$0xff] %v1480_v57  ;;  %v736_v57 = vld [vmem:[%s2887_s19 + $0xdf8] sm:$0xff]  ;;  %v1503_v62 = vadd.f32 %v2556_v61, %v735_v54  ;;  %v2575_v54 = vld [vmem:[%s2895_s29 + $0x688] sm:$0xff] }
 0x20e   : > { %1993 = vst [vmem:[%s2910_s21 + $0xd40] sm:$0xff] %v1481_v60  ;;  %v737_v60 = vld [vmem:[%s2887_s19 + $0xe00] sm:$0xff]  ;;  %v1504_v1 = vadd.f32 %v2557_v0, %v736_v57  ;;  %v2576_v57 = vld [vmem:[%s2895_s29 + $0x690] sm:$0xff] }
 0x20f   : > { %1994 = vst [vmem:[%s2910_s21 + $0xd48] sm:$0xff] %v1482_v63  ;;  %v738_v63 = vld [vmem:[%s2887_s19 + $0xe08] sm:$0xff]  ;;  %v1505_v4 = vadd.f32 %v2558_v3, %v737_v60  ;;  %v2577_v60 = vld [vmem:[%s2895_s29 + $0x698] sm:$0xff] }
 0x210   : > { %1995 = vst [vmem:[%s2910_s21 + $0xd50] sm:$0xff] %v1483_v2  ;;  %v739_v2 = vld [vmem:[%s2887_s19 + $0xe10] sm:$0xff]  ;;  %v1506_v7 = vadd.f32 %v2559_v6, %v738_v63  ;;  %v2578_v63 = vld [vmem:[%s2895_s29 + $0x6a0] sm:$0xff] }
 0x211   : > { %1996 = vst [vmem:[%s2910_s21 + $0xd58] sm:$0xff] %v1484_v5  ;;  %v740_v5 = vld [vmem:[%s2887_s19 + $0xe18] sm:$0xff]  ;;  %v1507_v10 = vadd.f32 %v2560_v9, %v739_v2  ;;  %v2579_v2 = vld [vmem:[%s2895_s29 + $0x6a8] sm:$0xff] }
 0x212   : > { %1997 = vst [vmem:[%s2910_s21 + $0xd60] sm:$0xff] %v1485_v8  ;;  %v741_v8 = vld [vmem:[%s2887_s19 + $0xe20] sm:$0xff]  ;;  %v1508_v13 = vadd.f32 %v2561_v12, %v740_v5  ;;  %v2580_v5 = vld [vmem:[%s2895_s29 + $0x6b0] sm:$0xff] }
 0x213   : > { %1998 = vst [vmem:[%s2910_s21 + $0xd68] sm:$0xff] %v1486_v11  ;;  %v742_v11 = vld [vmem:[%s2887_s19 + $0xe28] sm:$0xff]  ;;  %v1509_v16 = vadd.f32 %v2562_v15, %v741_v8  ;;  %v2581_v8 = vld [vmem:[%s2895_s29 + $0x6b8] sm:$0xff] }
 0x214   : > { %1999 = vst [vmem:[%s2910_s21 + $0xd70] sm:$0xff] %v1487_v14  ;;  %v743_v14 = vld [vmem:[%s2887_s19 + $0xe30] sm:$0xff]  ;;  %v1510_v19 = vadd.f32 %v2563_v18, %v742_v11  ;;  %v2582_v11 = vld [vmem:[%s2895_s29 + $0x6c0] sm:$0xff] }
 0x215   : > { %2000 = vst [vmem:[%s2910_s21 + $0xd78] sm:$0xff] %v1488_v17  ;;  %v744_v17 = vld [vmem:[%s2887_s19 + $0xe38] sm:$0xff]  ;;  %v1511_v22 = vadd.f32 %v2564_v21, %v743_v14  ;;  %v2583_v14 = vld [vmem:[%s2895_s29 + $0x6c8] sm:$0xff] }
 0x216   : > { %2001 = vst [vmem:[%s2910_s21 + $0xd80] sm:$0xff] %v1489_v20  ;;  %v745_v20 = vld [vmem:[%s2887_s19 + $0xe40] sm:$0xff]  ;;  %v1512_v25 = vadd.f32 %v2565_v24, %v744_v17  ;;  %v2584_v17 = vld [vmem:[%s2895_s29 + $0x6d0] sm:$0xff] }
 0x217   : > { %2002 = vst [vmem:[%s2910_s21 + $0xd88] sm:$0xff] %v1490_v23  ;;  %v746_v23 = vld [vmem:[%s2887_s19 + $0xe48] sm:$0xff]  ;;  %v1513_v28 = vadd.f32 %v2566_v27, %v745_v20  ;;  %v2585_v20 = vld [vmem:[%s2895_s29 + $0x6d8] sm:$0xff] }
 0x218   : > { %2003 = vst [vmem:[%s2910_s21 + $0xd90] sm:$0xff] %v1491_v26  ;;  %v747_v26 = vld [vmem:[%s2887_s19 + $0xe50] sm:$0xff]  ;;  %v1514_v31 = vadd.f32 %v2567_v30, %v746_v23  ;;  %v2586_v23 = vld [vmem:[%s2895_s29 + $0x6e0] sm:$0xff] }
 0x219   : > { %2004 = vst [vmem:[%s2910_s21 + $0xd98] sm:$0xff] %v1492_v29  ;;  %v748_v29 = vld [vmem:[%s2887_s19 + $0xe58] sm:$0xff]  ;;  %v1515_v34 = vadd.f32 %v2568_v33, %v747_v26  ;;  %v2587_v26 = vld [vmem:[%s2895_s29 + $0x6e8] sm:$0xff] }
 0x21a   : > { %2005 = vst [vmem:[%s2910_s21 + $0xda0] sm:$0xff] %v1493_v32  ;;  %v749_v32 = vld [vmem:[%s2887_s19 + $0xe60] sm:$0xff]  ;;  %v1516_v37 = vadd.f32 %v2569_v36, %v748_v29  ;;  %v2588_v29 = vld [vmem:[%s2895_s29 + $0x6f0] sm:$0xff] }
 0x21b   : > { %2006 = vst [vmem:[%s2910_s21 + $0xda8] sm:$0xff] %v1494_v35  ;;  %v750_v35 = vld [vmem:[%s2887_s19 + $0xe68] sm:$0xff]  ;;  %v1517_v40 = vadd.f32 %v2570_v39, %v749_v32  ;;  %v2589_v32 = vld [vmem:[%s2895_s29 + $0x6f8] sm:$0xff] }
 0x21c   : > { %2007 = vst [vmem:[%s2910_s21 + $0xdb0] sm:$0xff] %v1495_v38  ;;  %v751_v38 = vld [vmem:[%s2887_s19 + $0xe70] sm:$0xff]  ;;  %v1518_v43 = vadd.f32 %v2571_v42, %v750_v35  ;;  %v2590_v35 = vld [vmem:[%s2895_s29 + $0x700] sm:$0xff] }
 0x21d   : > { %2008 = vst [vmem:[%s2910_s21 + $0xdb8] sm:$0xff] %v1496_v41  ;;  %v752_v41 = vld [vmem:[%s2887_s19 + $0xe78] sm:$0xff]  ;;  %v1519_v46 = vadd.f32 %v2572_v45, %v751_v38  ;;  %v2591_v38 = vld [vmem:[%s2895_s29 + $0x708] sm:$0xff] }
 0x21e   : > { %2009 = vst [vmem:[%s2910_s21 + $0xdc0] sm:$0xff] %v1497_v44  ;;  %v753_v44 = vld [vmem:[%s2887_s19 + $0xe80] sm:$0xff]  ;;  %v1520_v49 = vadd.f32 %v2573_v48, %v752_v41  ;;  %v2592_v41 = vld [vmem:[%s2895_s29 + $0x710] sm:$0xff] }
 0x21f   : > { %2010 = vst [vmem:[%s2910_s21 + $0xdc8] sm:$0xff] %v1498_v47  ;;  %v754_v47 = vld [vmem:[%s2887_s19 + $0xe88] sm:$0xff]  ;;  %v1521_v52 = vadd.f32 %v2574_v51, %v753_v44  ;;  %v2593_v44 = vld [vmem:[%s2895_s29 + $0x718] sm:$0xff] }
 0x220   : > { %2011 = vst [vmem:[%s2910_s21 + $0xdd0] sm:$0xff] %v1499_v50  ;;  %v755_v50 = vld [vmem:[%s2887_s19 + $0xe90] sm:$0xff]  ;;  %v1522_v55 = vadd.f32 %v2575_v54, %v754_v47  ;;  %v2594_v47 = vld [vmem:[%s2895_s29 + $0x720] sm:$0xff] }
 0x221   : > { %2012 = vst [vmem:[%s2910_s21 + $0xdd8] sm:$0xff] %v1500_v53  ;;  %v756_v53 = vld [vmem:[%s2887_s19 + $0xe98] sm:$0xff]  ;;  %v1523_v58 = vadd.f32 %v2576_v57, %v755_v50  ;;  %v2595_v50 = vld [vmem:[%s2895_s29 + $0x728] sm:$0xff] }
 0x222   : > { %2013 = vst [vmem:[%s2910_s21 + $0xde0] sm:$0xff] %v1501_v56  ;;  %v757_v56 = vld [vmem:[%s2887_s19 + $0xea0] sm:$0xff]  ;;  %v1524_v61 = vadd.f32 %v2577_v60, %v756_v53  ;;  %v2596_v53 = vld [vmem:[%s2895_s29 + $0x730] sm:$0xff] }
 0x223   : > { %2014 = vst [vmem:[%s2910_s21 + $0xde8] sm:$0xff] %v1502_v59  ;;  %v758_v59 = vld [vmem:[%s2887_s19 + $0xea8] sm:$0xff]  ;;  %v1525_v0 = vadd.f32 %v2578_v63, %v757_v56  ;;  %v2597_v56 = vld [vmem:[%s2895_s29 + $0x738] sm:$0xff] }
 0x224   : > { %2015 = vst [vmem:[%s2910_s21 + $0xdf0] sm:$0xff] %v1503_v62  ;;  %v759_v62 = vld [vmem:[%s2887_s19 + $0xeb0] sm:$0xff]  ;;  %v1526_v3 = vadd.f32 %v2579_v2, %v758_v59  ;;  %v2598_v59 = vld [vmem:[%s2895_s29 + $0x740] sm:$0xff] }
 0x225   : > { %2016 = vst [vmem:[%s2910_s21 + $0xdf8] sm:$0xff] %v1504_v1  ;;  %v760_v1 = vld [vmem:[%s2887_s19 + $0xeb8] sm:$0xff]  ;;  %v1527_v6 = vadd.f32 %v2580_v5, %v759_v62  ;;  %v2599_v62 = vld [vmem:[%s2895_s29 + $0x748] sm:$0xff] }
 0x226   : > { %2017 = vst [vmem:[%s2910_s21 + $0xe00] sm:$0xff] %v1505_v4  ;;  %v761_v4 = vld [vmem:[%s2887_s19 + $0xec0] sm:$0xff]  ;;  %v1528_v9 = vadd.f32 %v2581_v8, %v760_v1  ;;  %v2600_v1 = vld [vmem:[%s2895_s29 + $0x750] sm:$0xff] }
 0x227   : > { %2018 = vst [vmem:[%s2910_s21 + $0xe08] sm:$0xff] %v1506_v7  ;;  %v762_v7 = vld [vmem:[%s2887_s19 + $0xec8] sm:$0xff]  ;;  %v1529_v12 = vadd.f32 %v2582_v11, %v761_v4  ;;  %v2601_v4 = vld [vmem:[%s2895_s29 + $0x758] sm:$0xff] }
 0x228   : > { %2019 = vst [vmem:[%s2910_s21 + $0xe10] sm:$0xff] %v1507_v10  ;;  %v763_v10 = vld [vmem:[%s2887_s19 + $0xed0] sm:$0xff]  ;;  %v1530_v15 = vadd.f32 %v2583_v14, %v762_v7  ;;  %v2602_v7 = vld [vmem:[%s2895_s29 + $0x760] sm:$0xff] }
 0x229   : > { %2020 = vst [vmem:[%s2910_s21 + $0xe18] sm:$0xff] %v1508_v13  ;;  %v764_v13 = vld [vmem:[%s2887_s19 + $0xed8] sm:$0xff]  ;;  %v1531_v18 = vadd.f32 %v2584_v17, %v763_v10  ;;  %v2603_v10 = vld [vmem:[%s2895_s29 + $0x768] sm:$0xff] }
 0x22a   : > { %2021 = vst [vmem:[%s2910_s21 + $0xe20] sm:$0xff] %v1509_v16  ;;  %v765_v16 = vld [vmem:[%s2887_s19 + $0xee0] sm:$0xff]  ;;  %v1532_v21 = vadd.f32 %v2585_v20, %v764_v13  ;;  %v2604_v13 = vld [vmem:[%s2895_s29 + $0x770] sm:$0xff] }
 0x22b   : > { %2022 = vst [vmem:[%s2910_s21 + $0xe28] sm:$0xff] %v1510_v19  ;;  %v766_v19 = vld [vmem:[%s2887_s19 + $0xee8] sm:$0xff]  ;;  %v1533_v24 = vadd.f32 %v2586_v23, %v765_v16  ;;  %v2605_v16 = vld [vmem:[%s2895_s29 + $0x778] sm:$0xff] }
 0x22c   : > { %2023 = vst [vmem:[%s2910_s21 + $0xe30] sm:$0xff] %v1511_v22  ;;  %v767_v22 = vld [vmem:[%s2887_s19 + $0xef0] sm:$0xff]  ;;  %v1534_v27 = vadd.f32 %v2587_v26, %v766_v19  ;;  %v2606_v19 = vld [vmem:[%s2895_s29 + $0x780] sm:$0xff] }
 0x22d   : > { %2024 = vst [vmem:[%s2910_s21 + $0xe38] sm:$0xff] %v1512_v25  ;;  %v768_v25 = vld [vmem:[%s2887_s19 + $0xef8] sm:$0xff]  ;;  %v1535_v30 = vadd.f32 %v2588_v29, %v767_v22  ;;  %v2607_v22 = vld [vmem:[%s2895_s29 + $0x788] sm:$0xff] }
 0x22e   : > { %2025 = vst [vmem:[%s2910_s21 + $0xe40] sm:$0xff] %v1513_v28  ;;  %v769_v28 = vld [vmem:[%s2887_s19 + $0xf00] sm:$0xff]  ;;  %v1536_v33 = vadd.f32 %v2589_v32, %v768_v25  ;;  %v2608_v25 = vld [vmem:[%s2895_s29 + $0x790] sm:$0xff] }
 0x22f   : > { %2026 = vst [vmem:[%s2910_s21 + $0xe48] sm:$0xff] %v1514_v31  ;;  %v770_v31 = vld [vmem:[%s2887_s19 + $0xf08] sm:$0xff]  ;;  %v1537_v36 = vadd.f32 %v2590_v35, %v769_v28  ;;  %v2609_v28 = vld [vmem:[%s2895_s29 + $0x798] sm:$0xff] }
 0x230   : > { %2027 = vst [vmem:[%s2910_s21 + $0xe50] sm:$0xff] %v1515_v34  ;;  %v771_v34 = vld [vmem:[%s2887_s19 + $0xf10] sm:$0xff]  ;;  %v1538_v39 = vadd.f32 %v2591_v38, %v770_v31  ;;  %v2610_v31 = vld [vmem:[%s2895_s29 + $0x7a0] sm:$0xff] }
 0x231   : > { %2028 = vst [vmem:[%s2910_s21 + $0xe58] sm:$0xff] %v1516_v37  ;;  %v772_v37 = vld [vmem:[%s2887_s19 + $0xf18] sm:$0xff]  ;;  %v1539_v42 = vadd.f32 %v2592_v41, %v771_v34  ;;  %v2611_v34 = vld [vmem:[%s2895_s29 + $0x7a8] sm:$0xff] }
 0x232   : > { %2029 = vst [vmem:[%s2910_s21 + $0xe60] sm:$0xff] %v1517_v40  ;;  %v773_v40 = vld [vmem:[%s2887_s19 + $0xf20] sm:$0xff]  ;;  %v1540_v45 = vadd.f32 %v2593_v44, %v772_v37  ;;  %v2612_v37 = vld [vmem:[%s2895_s29 + $0x7b0] sm:$0xff] }
 0x233   : > { %2030 = vst [vmem:[%s2910_s21 + $0xe68] sm:$0xff] %v1518_v43  ;;  %v774_v43 = vld [vmem:[%s2887_s19 + $0xf28] sm:$0xff]  ;;  %v1541_v48 = vadd.f32 %v2594_v47, %v773_v40  ;;  %v2613_v40 = vld [vmem:[%s2895_s29 + $0x7b8] sm:$0xff] }
 0x234   : > { %2031 = vst [vmem:[%s2910_s21 + $0xe70] sm:$0xff] %v1519_v46  ;;  %v775_v46 = vld [vmem:[%s2887_s19 + $0xf30] sm:$0xff]  ;;  %v1542_v51 = vadd.f32 %v2595_v50, %v774_v43  ;;  %v2614_v43 = vld [vmem:[%s2895_s29 + $0x7c0] sm:$0xff] }
 0x235   : > { %2032 = vst [vmem:[%s2910_s21 + $0xe78] sm:$0xff] %v1520_v49  ;;  %v776_v49 = vld [vmem:[%s2887_s19 + $0xf38] sm:$0xff]  ;;  %v1543_v54 = vadd.f32 %v2596_v53, %v775_v46  ;;  %v2615_v46 = vld [vmem:[%s2895_s29 + $0x7c8] sm:$0xff] }
 0x236   : > { %2033 = vst [vmem:[%s2910_s21 + $0xe80] sm:$0xff] %v1521_v52  ;;  %v777_v52 = vld [vmem:[%s2887_s19 + $0xf40] sm:$0xff]  ;;  %v1544_v57 = vadd.f32 %v2597_v56, %v776_v49  ;;  %v2616_v49 = vld [vmem:[%s2895_s29 + $0x7d0] sm:$0xff] }
 0x237   : > { %2034 = vst [vmem:[%s2910_s21 + $0xe88] sm:$0xff] %v1522_v55  ;;  %v778_v55 = vld [vmem:[%s2887_s19 + $0xf48] sm:$0xff]  ;;  %v1545_v60 = vadd.f32 %v2598_v59, %v777_v52  ;;  %v2617_v52 = vld [vmem:[%s2895_s29 + $0x7d8] sm:$0xff] }
 0x238   : > { %2035 = vst [vmem:[%s2910_s21 + $0xe90] sm:$0xff] %v1523_v58  ;;  %v779_v58 = vld [vmem:[%s2887_s19 + $0xf50] sm:$0xff]  ;;  %v1546_v63 = vadd.f32 %v2599_v62, %v778_v55  ;;  %v2618_v55 = vld [vmem:[%s2895_s29 + $0x7e0] sm:$0xff]  ;;  %v2621_v62 = vld [vmem:[%s2895_s29 + $0x7f8] sm:$0xff] }
 0x239   : > { %2036 = vst [vmem:[%s2910_s21 + $0xe98] sm:$0xff] %v1524_v61  ;;  %v780_v61 = vld [vmem:[%s2887_s19 + $0xf58] sm:$0xff]  ;;  %v1547_v2 = vadd.f32 %v2600_v1, %v779_v58  ;;  %v2619_v58 = vld [vmem:[%s2895_s29 + $0x7e8] sm:$0xff] }
 0x23a   : > { %2037 = vst [vmem:[%s2910_s21 + $0xea0] sm:$0xff] %v1525_v0  ;;  %v781_v0 = vld [vmem:[%s2887_s19 + $0xf60] sm:$0xff]  ;;  %v1548_v5 = vadd.f32 %v2601_v4, %v780_v61 }
 0x23b   : > { %2038 = vst [vmem:[%s2910_s21 + $0xea8] sm:$0xff] %v1526_v3  ;;  %v782_v3 = vld [vmem:[%s2887_s19 + $0xf68] sm:$0xff]  ;;  %v1549_v8 = vadd.f32 %v2602_v7, %v781_v0 }
 0x23c   : > { %2039 = vst [vmem:[%s2910_s21 + $0xeb0] sm:$0xff] %v1527_v6  ;;  %v783_v6 = vld [vmem:[%s2887_s19 + $0xf70] sm:$0xff]  ;;  %v1550_v11 = vadd.f32 %v2603_v10, %v782_v3 }
 0x23d   : > { %2040 = vst [vmem:[%s2910_s21 + $0xeb8] sm:$0xff] %v1528_v9  ;;  %v784_v9 = vld [vmem:[%s2887_s19 + $0xf78] sm:$0xff]  ;;  %v1551_v14 = vadd.f32 %v2604_v13, %v783_v6 }
 0x23e   : > { %2041 = vst [vmem:[%s2910_s21 + $0xec0] sm:$0xff] %v1529_v12  ;;  %v785_v12 = vld [vmem:[%s2887_s19 + $0xf80] sm:$0xff]  ;;  %v1552_v17 = vadd.f32 %v2605_v16, %v784_v9 }
 0x23f   : > { %2042 = vst [vmem:[%s2910_s21 + $0xec8] sm:$0xff] %v1530_v15  ;;  %v786_v15 = vld [vmem:[%s2887_s19 + $0xf88] sm:$0xff]  ;;  %v1553_v20 = vadd.f32 %v2606_v19, %v785_v12 }
 0x240   : > { %2043 = vst [vmem:[%s2910_s21 + $0xed0] sm:$0xff] %v1531_v18  ;;  %v787_v18 = vld [vmem:[%s2887_s19 + $0xf90] sm:$0xff]  ;;  %v1554_v23 = vadd.f32 %v2607_v22, %v786_v15 }
 0x241   : > { %2044 = vst [vmem:[%s2910_s21 + $0xed8] sm:$0xff] %v1532_v21  ;;  %v788_v21 = vld [vmem:[%s2887_s19 + $0xf98] sm:$0xff]  ;;  %v1555_v26 = vadd.f32 %v2608_v25, %v787_v18 }
 0x242   : > { %2045 = vst [vmem:[%s2910_s21 + $0xee0] sm:$0xff] %v1533_v24  ;;  %v789_v24 = vld [vmem:[%s2887_s19 + $0xfa0] sm:$0xff]  ;;  %v1556_v29 = vadd.f32 %v2609_v28, %v788_v21 }
 0x243   : > { %2046 = vst [vmem:[%s2910_s21 + $0xee8] sm:$0xff] %v1534_v27  ;;  %v790_v27 = vld [vmem:[%s2887_s19 + $0xfa8] sm:$0xff]  ;;  %v1557_v32 = vadd.f32 %v2610_v31, %v789_v24 }
 0x244   : > { %2047 = vst [vmem:[%s2910_s21 + $0xef0] sm:$0xff] %v1535_v30  ;;  %v791_v30 = vld [vmem:[%s2887_s19 + $0xfb0] sm:$0xff]  ;;  %v1558_v35 = vadd.f32 %v2611_v34, %v790_v27 }
 0x245   : > { %2048 = vst [vmem:[%s2910_s21 + $0xef8] sm:$0xff] %v1536_v33  ;;  %v792_v33 = vld [vmem:[%s2887_s19 + $0xfb8] sm:$0xff]  ;;  %v1559_v38 = vadd.f32 %v2612_v37, %v791_v30 }
 0x246   : > { %2049 = vst [vmem:[%s2910_s21 + $0xf00] sm:$0xff] %v1537_v36  ;;  %v793_v36 = vld [vmem:[%s2887_s19 + $0xfc0] sm:$0xff]  ;;  %v1560_v41 = vadd.f32 %v2613_v40, %v792_v33 }
 0x247   : > { %2050 = vst [vmem:[%s2910_s21 + $0xf08] sm:$0xff] %v1538_v39  ;;  %v794_v39 = vld [vmem:[%s2887_s19 + $0xfc8] sm:$0xff]  ;;  %v1561_v44 = vadd.f32 %v2614_v43, %v793_v36 }
 0x248   : > { %2051 = vst [vmem:[%s2910_s21 + $0xf10] sm:$0xff] %v1539_v42  ;;  %v795_v42 = vld [vmem:[%s2887_s19 + $0xfd0] sm:$0xff]  ;;  %v1562_v47 = vadd.f32 %v2615_v46, %v794_v39 }
 0x249   : > { %2052 = vst [vmem:[%s2910_s21 + $0xf18] sm:$0xff] %v1540_v45  ;;  %v796_v45 = vld [vmem:[%s2887_s19 + $0xfd8] sm:$0xff]  ;;  %v1563_v50 = vadd.f32 %v2616_v49, %v795_v42 }
 0x24a   : > { %2053 = vst [vmem:[%s2910_s21 + $0xf20] sm:$0xff] %v1541_v48  ;;  %v797_v48 = vld [vmem:[%s2887_s19 + $0xfe0] sm:$0xff]  ;;  %v1564_v53 = vadd.f32 %v2617_v52, %v796_v45 }
 0x24b   : > { %2054 = vst [vmem:[%s2910_s21 + $0xf28] sm:$0xff] %v1542_v51  ;;  %v798_v51 = vld [vmem:[%s2887_s19 + $0xfe8] sm:$0xff]  ;;  %v1565_v56 = vadd.f32 %v2618_v55, %v797_v48 }
 0x24c   : > { %2055 = vst [vmem:[%s2910_s21 + $0xf30] sm:$0xff] %v1543_v54  ;;  %v799_v54 = vld [vmem:[%s2887_s19 + $0xff0] sm:$0xff]  ;;  %v1566_v59 = vadd.f32 %v2619_v58, %v798_v51 }
 0x24d   : > { %2056 = vst [vmem:[%s2910_s21 + $0xf38] sm:$0xff] %v1544_v57  ;;  %v800_v57 = vld [vmem:[%s2887_s19 + $0xff8] sm:$0xff] }
 0x24e   : > { %2057 = vst [vmem:[%s2910_s21 + $0xf40] sm:$0xff] %v1545_v60  ;;  %v2620_v60 = vld [vmem:[%s2895_s29 + $0x7f0] sm:$0xff] }
 0x24f   : > { %2058 = vst [vmem:[%s2910_s21 + $0xf48] sm:$0xff] %v1546_v63  ;;  %v1567_v61 = vadd.f32 %v2620_v60, %v799_v54  ;;  %v1568_v63 = vadd.f32 %v2621_v62, %v800_v57 }
 0x250   : > { %2059 = vst [vmem:[%s2910_s21 + $0xf50] sm:$0xff] %v1547_v2 }
 0x251   : > { %2060 = vst [vmem:[%s2910_s21 + $0xf58] sm:$0xff] %v1548_v5 }
 0x252   : > { %2061 = vst [vmem:[%s2910_s21 + $0xf60] sm:$0xff] %v1549_v8 }
 0x253   : > { %2062 = vst [vmem:[%s2910_s21 + $0xf68] sm:$0xff] %v1550_v11 }
 0x254   : > { %2063 = vst [vmem:[%s2910_s21 + $0xf70] sm:$0xff] %v1551_v14 }
 0x255   : > { %2064 = vst [vmem:[%s2910_s21 + $0xf78] sm:$0xff] %v1552_v17 }
 0x256   : > { %2065 = vst [vmem:[%s2910_s21 + $0xf80] sm:$0xff] %v1553_v20 }
 0x257   : > { %2066 = vst [vmem:[%s2910_s21 + $0xf88] sm:$0xff] %v1554_v23 }
 0x258   : > { %2067 = vst [vmem:[%s2910_s21 + $0xf90] sm:$0xff] %v1555_v26 }
 0x259   : > { %2068 = vst [vmem:[%s2910_s21 + $0xf98] sm:$0xff] %v1556_v29 }
 0x25a   : > { %2069 = vst [vmem:[%s2910_s21 + $0xfa0] sm:$0xff] %v1557_v32 }
 0x25b   : > { %2070 = vst [vmem:[%s2910_s21 + $0xfa8] sm:$0xff] %v1558_v35 }
 0x25c   : > { %2071 = vst [vmem:[%s2910_s21 + $0xfb0] sm:$0xff] %v1559_v38 }
 0x25d   : > { %2072 = vst [vmem:[%s2910_s21 + $0xfb8] sm:$0xff] %v1560_v41 }
 0x25e   : > { %2073 = vst [vmem:[%s2910_s21 + $0xfc0] sm:$0xff] %v1561_v44 }
 0x25f   : > { %2074 = vst [vmem:[%s2910_s21 + $0xfc8] sm:$0xff] %v1562_v47 }
 0x260   : > { %2075 = vst [vmem:[%s2910_s21 + $0xfd0] sm:$0xff] %v1563_v50 }
 0x261   : > { %2076 = vst [vmem:[%s2910_s21 + $0xfd8] sm:$0xff] %v1564_v53  ;;  %2088 = sbr.rel (!%p2801_p9) target bundleno = 633 (0x279), region = 40 }
 0x262   : > { %2077 = vst [vmem:[%s2910_s21 + $0xfe0] sm:$0xff] %v1565_v56 }
 0x263   : > { %2078 = vst [vmem:[%s2910_s21 + $0xfe8] sm:$0xff] %v1566_v59 }
 0x264   : > { %2079 = vst [vmem:[%s2910_s21 + $0xff0] sm:$0xff] %v1567_v61 }
 0x265   : > { %2080 = vst [vmem:[%s2910_s21 + $0xff8] sm:$0xff] %v1568_v63 }
 0x266   : > { %s2273_s8 = sshll.u32 %s2711_s12, 6 }
 0x267   : > { %s2091_s16 = ssub.s32 216, %s2273_s8 }
 0x268   : > { %p2092_p8 = scmp.lt.s32.totalorder %s2091_s16, 64 }
 0x26a   : > { %s4510_s16 = smov (!%p2092_p8, %s2091_s16), 64 }
 0x26b   : > { %s2292_s17 = sshll.u32 %s4510_s16, 6 }
 0x26c   : > { %s2096_s28 = ssub.s32 4096, %s2292_s17 }
 0x26d   : > { %s2097_s27 = sshll.u32 %s2096_s28, 4 }
 0x26e   : > { %2098 = vsyncadd %s2082_s3, %s2097_s27  ;;  %p4448_p2 = scmp.ne.s32.totalorder %s2292_s17, 0  ;;  %s2294_s4 = sshll.u32 %s2711_s12, 11 }
 0x26f   : > { %s2104_s26 = scalar_lea.hbm %s4487_s2, %s2294_s4  ;;  %s2117_s25 = sshll.u32 %s2910_s21, 4  ;;  %s2118_s25 = int_to_ptr.vmem [resolvable:$true] %s2117_s25 }
 0x270   : > { %s2119_s5 = sshll.u32 %s2104_s26, 4  ;;  %s2296_s15 = sshll.u32 %s4510_s16, 10  ;;  %s2120_s5 = int_to_ptr.hbm [resolvable:$true] %s2119_s5 }
 0x271   : > { %s2729_s19 = smov 32768   ;;  %s2730_s18 = smov 110592  }
 0x272   : > { %2126 = sst [smem:[#allocation11]] %s2729_s19  ;;  %s2731_s30 = smov 512  }
 0x273   : > { %2128 = sst [smem:[#allocation11 + $0x1]] %s2730_s18  ;;  %s2732_s12 = smov 32  }
 0x274   : > { %2130 = sst [smem:[#allocation11 + $0x2]] %s4510_s16  ;;  %s2733_s29 = smov [#allocation10]  }
 0x275   : > { %2132 = sst [smem:[#allocation11 + $0x3]] %s2731_s30  ;;  %s2734_s8 = smov 0  }
 0x276   : > { %2134 = sst [smem:[#allocation11 + $0x4]] %s2731_s30 }
 0x277   : > { %2136 = sst [smem:[#allocation11 + $0x5]] %s2732_s12 }
 0x278   : > { %2138 = dma.general (%p4448_p2), %s2118_s25, %s2296_s15, %s2120_s5, %s2082_s3, %s2733_s29, [#allocation11], %s2734_s8, 0  }
 0x279 PF: > { %p2304_p9 = scmp.ge.s32.totalorder %s2719_s14, 2  ;;  %s2147_s21 = sand.u32 1, %s2699_s9  }
 0x27a   : > { %s2148_s16 = scalar_lea.sflag [#allocation4], %s2147_s21 }
 0x27b   : > { %p2301_p6 = pnand %p2304_p9, %p2808_p11 }
 0x27d   : > { %p2302_p7 = pneg %p2301_p6 }
 0x27f   : > { %2694 = dma.done.wait (%p2302_p7), %s2148_s16, 65536  }
 0x280   : > { %2696 = vsyncadd (%p2302_p7), %s2148_s16, 4294901760  ;;  %s21_s14 = sadd.s32 1, %s2719_s14   ;;  %s4497_s7 = sld [smem:[#allocation15_spill]] }
 0x281   : > { %p18_p10 = scmp.ge.s32.totalorder %s21_s14, 6   ;;  %s4498_s9 = smov %s2703_s10 }
 0x282   : > { %s4499_s10 = smov %s2707_s11  ;;  %s4500_s11 = smov %s2806_s23 }
 0x283   : > { %s4501_s12 = smov %s2715_s13  ;;  %20 = sbr.rel (!%p18_p10) target bundleno = 8 (0x8), region = 96 }
 0x286   : > { %s4502_s13 = smov %s4497_s7 }
 0x288   :  { %2154 = vsyncpa [#allocation3], 1 }
 0x289   :  { %2156 = vsyncpa [#allocation3 + $0x1], 1 }
 0x28a   :  { %2157 = vsyncpa [#allocation6], 1 }
 0x28b   :  { %2159 = vsyncpa [#allocation6 + $0x1], 1 }
 0x28c   :  { %2160 = vsyncpa [#allocation4], 1 }
 0x28d   :  { %2162 = vsyncpa [#allocation4 + $0x1], 1 }

</bundles_post_ra>
